<compile_context>
chip_gen: v5e
topology: v5e:2x2
jax: 0.10.0
libtpu: 0.0.40
codegen_flags: <defaults>
</compile_context>

<pallas_src>
import functools

import jax
import jax.numpy as jnp
import numpy as np
from jax import lax
from jax.experimental import pallas as pl
from jax.experimental.pallas import tpu as pltpu


def _attention_kernel(x_ref, wqkv_ref, bqkv_ref, wo_ref, bo_ref, cos_ref, sin_ref,
                      o_ref, attn_ref, *, num_heads, head_dim, block_batch, seq_len):
    """One grid step == `block_batch` batch elements. Everything lives in VMEM."""
    bt, S, hd = block_batch, seq_len, head_dim
    hd2 = hd // 2
    H = x_ref.shape[-1]
    H2 = H // 2
    M = bt * S                       # rows fed to the MXU for the projection matmuls

    # ---- fused QKV projection: ONE (M, H) x (H, 3H) MXU pass, bf16 operands, f32 accum ----
    x = x_ref[...].reshape(M, H).astype(jnp.bfloat16)
    qkv = jnp.dot(x, wqkv_ref[...], preferred_element_type=jnp.float32) + bqkv_ref[...]
    q = qkv[:, :H]           # half-slab layout: [x1 of all heads | x2 of all heads]
    k = qkv[:, H:2 * H]      # same layout; 1/sqrt(hd) already folded into Wq/bq host-side
    v = qkv[:, 2 * H:]       # original per-head-contiguous layout (untouched)

    # ---- RoPE as full-width rotate-half: rot = q*cos + roll(q, H/2)*sin_signed ----
    # The half-slab layout makes the RoPE partner an exact 128-lane circular rotate by H/2
    # (the +H/2 and -H/2 shifts coincide mod H), so RoPE is two wide f32 multiplies, one
    # add and one XLU rotate per slab — no narrow slices, no per-head math.
    cos = cos_ref[...]
    sin = sin_ref[...]                       # pre-signed: [-sin | +sin] columns
    q_rot = q * cos + pltpu.roll(q, H2, 1) * sin
    k_rot = k * cos + pltpu.roll(k, H2, 1) * sin
    v_bf = v.astype(jnp.bfloat16)

    dn = (((1,), (1,)), ((), ()))   # contract last dim of both operands -> no k transpose

    for h in range(num_heads):
        a = h * hd2
        c = h * hd
        # Assemble this head's rotated q/k contiguously in registers once (hoisted over the
        # batch loop) so each score is ONE MXU dot with K = hd instead of two K = hd/2 dots.
        qh = jnp.concatenate([q_rot[:, a:a + hd2], q_rot[:, H2 + a:H2 + a + hd2]],
                             axis=1).astype(jnp.bfloat16)
        kh = jnp.concatenate([k_rot[:, a:a + hd2], k_rot[:, H2 + a:H2 + a + hd2]],
                             axis=1).astype(jnp.bfloat16)
        vh = v_bf[:, c:c + hd]
        for b in range(bt):
            r = b * S
            s = lax.dot_general(qh[r:r + S], kh[r:r + S], dn,
                                preferred_element_type=jnp.float32)
            s = s - jnp.max(s, axis=-1, keepdims=True)
            p = jnp.exp(s)
            # Normalize AFTER the PV matmul: S*hd elements scaled instead of S*S.
            inv_l = pl.reciprocal(jnp.sum(p, axis=-1, keepdims=True), approx=True)
            o_h = jnp.dot(p.astype(jnp.bfloat16), vh[r:r + S],
                          preferred_element_type=jnp.float32)
            attn_ref[r:r + S, c:c + hd] = (o_h * inv_l).astype(jnp.bfloat16)

    # ---- output projection: (M, H) x (H, H); bf16 scratch read back with no extra cast ----
    out = jnp.dot(attn_ref[...], wo_ref[...], preferred_element_type=jnp.float32) + bo_ref[...]
    o_ref[...] = out.reshape(bt, S, H).astype(o_ref.dtype)


def attention_forward(x, params, num_heads, block_batch=None):
    """Pallas wrapper. x: (B, S, H) float32. Linear weights are (in, out): y = x @ W + b."""
    B, S, H = x.shape
    hd = H // num_heads
    wq, bq, wk, bk, wv, bv, wo, bo = params

    # Batch elements per grid step: fill the MXU M dimension (>= ~128 rows) while keeping
    # B % block_batch == 0. (For B == 1 on v7x, a parallel query-tile axis would be needed
    # to keep both TensorCores busy; not required at these sizes.)
    if block_batch is None:
        block_batch = min(B, max(1, 128 // S))
        while B % block_batch:
            block_batch -= 1
    bt = block_batch
    assert B % bt == 0, "batch must be divisible by block_batch"
    M = bt * S

    # 1/sqrt(hd) folded into the q projection (RoPE is linear -> identical result).
    scale = float(hd) ** -0.5

    # Column permutation for q/k projections: half-slab layout
    # [even (x1) components, head-major | odd (x2) components, head-major].
    cols = np.arange(H).reshape(num_heads, hd)
    perm = np.concatenate([cols[:, 0::2].reshape(-1), cols[:, 1::2].reshape(-1)])
    wq_p, bq_p = (wq * scale)[:, perm], (bq * scale)[:, perm]
    wk_p, bk_p = wk[:, perm], bk[:, perm]

    # Fused QKV weights in bf16 for the MXU; biases stay f32 (added after f32 accumulate).
    wqkv = jnp.concatenate([wq_p, wk_p, wv], axis=1).astype(jnp.bfloat16)   # (H, 3H)
    bqkv = jnp.concatenate([bq_p, bk_p, bv], axis=1).astype(jnp.float32)    # (1, 3H)
    wo_bf = wo.astype(jnp.bfloat16)
    bo_f = bo.astype(jnp.float32)

    # Rotary tables in the half-slab layout, tiled over heads, halves and the bt batch rows,
    # so in-kernel RoPE is one wide (M, H) elementwise pass. Matches RotaryEmbedding(hd).
    inv_freq = 1.0 / (10000.0 ** (np.arange(0, hd, 2, dtype=np.float32) / hd))
    t = np.arange(S, dtype=np.float32)
    freqs = t[:, None] * inv_freq[None, :]                                # (S, hd/2)
    cos_h = np.tile(np.cos(freqs), (1, 2 * num_heads))                    # (S, H)
    sin_h = np.concatenate([-np.tile(np.sin(freqs), (1, num_heads)),
                            np.tile(np.sin(freqs), (1, num_heads))], axis=1)  # (S, H), signed
    cos_t = jnp.asarray(np.tile(cos_h, (bt, 1)), dtype=jnp.float32)       # (bt*S, H)
    sin_t = jnp.asarray(np.tile(sin_h, (bt, 1)), dtype=jnp.float32)       # (bt*S, H)

    kernel = functools.partial(_attention_kernel, num_heads=num_heads, head_dim=hd,
                               block_batch=bt, seq_len=S)
    const = lambda i: (0, 0)

    # NOTE: weight/bias/table inputs have constant index maps -> fetched once, not re-DMA'd
    # per grid step. For very large H, single-buffer them (pipeline_mode=pl.Buffered(1)) and
    # tile the 3H output columns; unnecessary at H = 128.
    grid_spec = pltpu.PrefetchScalarGridSpec(
        num_scalar_prefetch=0,
        grid=(B // bt,),
        in_specs=[
            pl.BlockSpec((bt, S, H), lambda i: (i, 0, 0)),   # x: bt batch elements per step
            pl.BlockSpec((H, 3 * H), const),                 # Wqkv (bf16)
            pl.BlockSpec((1, 3 * H), const),                 # bqkv
            pl.BlockSpec((H, H), const),                     # Wo (bf16)
            pl.BlockSpec((1, H), const),                     # bo
            pl.BlockSpec((M, H), const),                     # cos table (half-slab layout)
            pl.BlockSpec((M, H), const),                     # signed sin table
        ],
        out_specs=pl.BlockSpec((bt, S, H), lambda i: (i, 0, 0)),
        scratch_shapes=[pltpu.VMEM((M, H), jnp.bfloat16)],   # bf16 per-head attn output slab
    )

    flops = int(B * (8 * S * H * H + 4 * S * S * H))
    bytes_accessed = int(2 * B * S * H * 4                   # x in + out (f32)
                         + 4 * H * H * 2                     # bf16 Wqkv + Wo (fetched once)
                         + 4 * H * 4 + 2 * M * H * 4)        # biases + rotary tables
    cost = pl.CostEstimate(flops=flops,
                           transcendentals=int(B * num_heads * S * S),
                           bytes_accessed=bytes_accessed)

    return pl.pallas_call(
        kernel,
        out_shape=jax.ShapeDtypeStruct((B, S, H), x.dtype),
        grid_spec=grid_spec,
        compiler_params=pltpu.CompilerParams(
            dimension_semantics=("parallel",),
            vmem_limit_bytes=32 * 1024 * 1024),
        cost_estimate=cost,
    )(x, wqkv, bqkv, wo_bf, bo_f, cos_t, sin_t)


def attention_ref(x, params, num_heads):
    """Pure-JAX f32 reference mirroring the PyTorch forward (mask=None)."""
    wq, bq, wk, bk, wv, bv, wo, bo = params
    B, S, H = x.shape
    hd = H // num_heads

    def proj(w, b):
        return (x @ w + b).reshape(B, S, num_heads, hd).transpose(0, 2, 1, 3)

    q, k, v = proj(wq, bq), proj(wk, bk), proj(wv, bv)

    inv_freq = 1.0 / (10000.0 ** (jnp.arange(0, hd, 2, dtype=jnp.float32) / hd))
    t = jnp.arange(S, dtype=jnp.float32)
    freqs = t[:, None] * inv_freq[None, :]
    emb = jnp.concatenate([freqs, freqs], axis=-1)
    cos, sin = jnp.cos(emb)[None, None], jnp.sin(emb)[None, None]

    def rope(z):
        z1, z2 = z[..., 0::2], z[..., 1::2]
        c, s = cos[..., :z1.shape[-1]], sin[..., :z1.shape[-1]]
        return jnp.concatenate([z1 * c - z2 * s, z1 * s + z2 * c], axis=-1)

    q = rope(q) * (hd ** -0.5)
    k = rope(k)
    w = jax.nn.softmax(q @ jnp.swapaxes(k, -2, -1), axis=-1)
    o = (w @ v).transpose(0, 2, 1, 3).reshape(B, S, H)
    return o @ wo + bo


if __name__ == "__main__":
    # Small shapes consistent with the module: hidden_size=128, num_heads=8, batch_size=4.
    B, S, H, NH = 4, 16, 128, 8

    key = jax.random.PRNGKey(0)
    keys = jax.random.split(key, 9)
    x = jax.random.normal(keys[0], (B, S, H), dtype=jnp.float32)

    def init_linear(kw, kb):
        w = jax.random.normal(kw, (H, H), dtype=jnp.float32) * (1.0 / np.sqrt(H))
        b = jax.random.normal(kb, (1, H), dtype=jnp.float32) * 0.01
        return w, b

    wq, bq = init_linear(keys[1], keys[2])
    wk, bk = init_linear(keys[3], keys[4])
    wv, bv = init_linear(keys[5], keys[6])
    wo, bo = init_linear(keys[7], keys[8])
    params = (wq, bq, wk, bk, wv, bv, wo, bo)

    # block_batch=2 -> grid=(2,) so the batch-parallel grid axis is actually exercised.
    out = attention_forward(x, params, NH, block_batch=2)
    out = jax.block_until_ready(out)

    ref = attention_ref(x, params, NH)
    # Tolerance loosened vs the f32 reference: bf16 MXU operands (f32 accumulation) and an
    # approximate EUP reciprocal in the softmax denominator.
    np.testing.assert_allclose(np.asarray(out), np.asarray(ref), rtol=5e-2, atol=5e-2)

    print("KERNEL_OK")
</pallas_src>

<mosaic_0001>
module attributes {stable_mosaic.version = 11 : i64} {
  func.func @_attention_kernel(%arg0: i32, %arg1: memref<2x16x128xf32, #tpu.memory_space<vmem>>, %arg2: memref<128x384xbf16, #tpu.memory_space<vmem>>, %arg3: memref<1x384xf32, #tpu.memory_space<vmem>>, %arg4: memref<128x128xbf16, #tpu.memory_space<vmem>>, %arg5: memref<1x128xf32, #tpu.memory_space<vmem>>, %arg6: memref<32x128xf32, #tpu.memory_space<vmem>>, %arg7: memref<32x128xf32, #tpu.memory_space<vmem>>, %arg8: memref<2x16x128xf32, #tpu.memory_space<vmem>>, %arg9: memref<32x128xbf16, #tpu.memory_space<vmem>>) attributes {dimension_semantics = [#tpu.dimension_semantics<parallel>], iteration_bounds = array<i64: 2>, scalar_prefetch = 0 : i64, scratch_operands = 1 : i64, tpu.core_type = #tpu.core_type<tc>, window_params = [{transform_indices = @transform_0, window_bounds = array<i64: 2, 16, 128>}, {pipeline_mode = #tpu.pipeline_mode<synchronous>, transform_indices = @transform_1, window_bounds = array<i64: 128, 384>}, {pipeline_mode = #tpu.pipeline_mode<synchronous>, transform_indices = @transform_2, window_bounds = array<i64: 1, 384>}, {pipeline_mode = #tpu.pipeline_mode<synchronous>, transform_indices = @transform_3, window_bounds = array<i64: 128, 128>}, {pipeline_mode = #tpu.pipeline_mode<synchronous>, transform_indices = @transform_4, window_bounds = array<i64: 1, 128>}, {pipeline_mode = #tpu.pipeline_mode<synchronous>, transform_indices = @transform_5, window_bounds = array<i64: 32, 128>}, {pipeline_mode = #tpu.pipeline_mode<synchronous>, transform_indices = @transform_6, window_bounds = array<i64: 32, 128>}, {transform_indices = @transform_7, window_bounds = array<i64: 2, 16, 128>}]} {
    %c0 = arith.constant 0 : index
    %c0_0 = arith.constant 0 : index
    %c0_1 = arith.constant 0 : index
    %0 = vector.load %arg1[%c0, %c0_0, %c0_1] : memref<2x16x128xf32, #tpu.memory_space<vmem>>, vector<2x16x128xf32>
    %1 = vector.shape_cast %0 : vector<2x16x128xf32> to vector<32x128xf32>
    %2 = arith.truncf %1 : vector<32x128xf32> to vector<32x128xbf16>
    %c0_2 = arith.constant 0 : index
    %c0_3 = arith.constant 0 : index
    %3 = vector.load %arg2[%c0_2, %c0_3] : memref<128x384xbf16, #tpu.memory_space<vmem>>, vector<128x384xbf16>
    %cst = arith.constant dense<0.000000e+00> : vector<32x384xf32>
    %4 = tpu.matmul %2, %3, %cst {dimension_numbers = #tpu.dot_dimension_numbers<[1], [0], [0], [1], [0, 0, 1, 1], [], []>} : vector<32x128xbf16>, vector<128x384xbf16>, vector<32x384xf32> -> vector<32x384xf32>
    %c0_4 = arith.constant 0 : index
    %c0_5 = arith.constant 0 : index
    %5 = vector.load %arg3[%c0_4, %c0_5] : memref<1x384xf32, #tpu.memory_space<vmem>>, vector<1x384xf32>
    %6 = vector.broadcast %5 : vector<1x384xf32> to vector<32x384xf32>
    %7 = arith.addf %4, %6 : vector<32x384xf32>
    %8 = vector.extract_strided_slice %7 {offsets = [0, 0], sizes = [32, 128], strides = [1, 1]} : vector<32x384xf32> to vector<32x128xf32>
    %9 = vector.extract_strided_slice %7 {offsets = [0, 128], sizes = [32, 128], strides = [1, 1]} : vector<32x384xf32> to vector<32x128xf32>
    %10 = vector.extract_strided_slice %7 {offsets = [0, 256], sizes = [32, 128], strides = [1, 1]} : vector<32x384xf32> to vector<32x128xf32>
    %c0_6 = arith.constant 0 : index
    %c0_7 = arith.constant 0 : index
    %11 = vector.load %arg6[%c0_6, %c0_7] : memref<32x128xf32, #tpu.memory_space<vmem>>, vector<32x128xf32>
    %c0_8 = arith.constant 0 : index
    %c0_9 = arith.constant 0 : index
    %12 = vector.load %arg7[%c0_8, %c0_9] : memref<32x128xf32, #tpu.memory_space<vmem>>, vector<32x128xf32>
    %13 = arith.mulf %8, %11 : vector<32x128xf32>
    %c64_i32 = arith.constant 64 : i32
    %14 = tpu.dynamic_rotate %8 by %c64_i32 dim 1 : vector<32x128xf32>, i32 -> vector<32x128xf32>
    %15 = arith.mulf %14, %12 : vector<32x128xf32>
    %16 = arith.addf %13, %15 : vector<32x128xf32>
    %17 = arith.mulf %9, %11 : vector<32x128xf32>
    %c64_i32_10 = arith.constant 64 : i32
    %18 = tpu.dynamic_rotate %9 by %c64_i32_10 dim 1 : vector<32x128xf32>, i32 -> vector<32x128xf32>
    %19 = arith.mulf %18, %12 : vector<32x128xf32>
    %20 = arith.addf %17, %19 : vector<32x128xf32>
    %21 = arith.truncf %10 : vector<32x128xf32> to vector<32x128xbf16>
    %22 = vector.extract_strided_slice %16 {offsets = [0, 0], sizes = [32, 8], strides = [1, 1]} : vector<32x128xf32> to vector<32x8xf32>
    %23 = vector.extract_strided_slice %16 {offsets = [0, 64], sizes = [32, 8], strides = [1, 1]} : vector<32x128xf32> to vector<32x8xf32>
    %24 = tpu.concatenate %22, %23 in 1 : vector<32x8xf32>, vector<32x8xf32> -> vector<32x16xf32>
    %25 = arith.truncf %24 : vector<32x16xf32> to vector<32x16xbf16>
    %26 = vector.extract_strided_slice %20 {offsets = [0, 0], sizes = [32, 8], strides = [1, 1]} : vector<32x128xf32> to vector<32x8xf32>
    %27 = vector.extract_strided_slice %20 {offsets = [0, 64], sizes = [32, 8], strides = [1, 1]} : vector<32x128xf32> to vector<32x8xf32>
    %28 = tpu.concatenate %26, %27 in 1 : vector<32x8xf32>, vector<32x8xf32> -> vector<32x16xf32>
    %29 = arith.truncf %28 : vector<32x16xf32> to vector<32x16xbf16>
    %30 = vector.extract_strided_slice %21 {offsets = [0, 0], sizes = [32, 16], strides = [1, 1]} : vector<32x128xbf16> to vector<32x16xbf16>
    %31 = vector.extract_strided_slice %25 {offsets = [0, 0], sizes = [16, 16], strides = [1, 1]} : vector<32x16xbf16> to vector<16x16xbf16>
    %32 = vector.extract_strided_slice %29 {offsets = [0, 0], sizes = [16, 16], strides = [1, 1]} : vector<32x16xbf16> to vector<16x16xbf16>
    %cst_11 = arith.constant dense<0.000000e+00> : vector<16x16xf32>
    %33 = tpu.matmul %31, %32, %cst_11 {dimension_numbers = #tpu.dot_dimension_numbers<[1], [1], [0], [0], [0, 0, 1, 0], [], []>} : vector<16x16xbf16>, vector<16x16xbf16>, vector<16x16xf32> -> vector<16x16xf32>
    %cst_12 = arith.constant dense<0xFF800000> : vector<16xf32>
    %34 = vector.multi_reduction <maximumf>, %33, %cst_12 [1] : vector<16x16xf32> to vector<16xf32>
    %35 = vector.shape_cast %34 : vector<16xf32> to vector<16x1xf32>
    %36 = vector.broadcast %35 : vector<16x1xf32> to vector<16x16xf32>
    %37 = arith.subf %33, %36 : vector<16x16xf32>
    %38 = math.exp %37 : vector<16x16xf32>
    %cst_13 = arith.constant dense<0.000000e+00> : vector<16xf32>
    %39 = vector.multi_reduction <add>, %38, %cst_13 [1] : vector<16x16xf32> to vector<16xf32>
    %40 = vector.shape_cast %39 : vector<16xf32> to vector<16x1xf32>
    %41 = tpu.reciprocal %40 {approx = true} : vector<16x1xf32> -> vector<16x1xf32>
    %42 = arith.truncf %38 : vector<16x16xf32> to vector<16x16xbf16>
    %43 = vector.extract_strided_slice %30 {offsets = [0, 0], sizes = [16, 16], strides = [1, 1]} : vector<32x16xbf16> to vector<16x16xbf16>
    %cst_14 = arith.constant dense<0.000000e+00> : vector<16x16xf32>
    %44 = tpu.matmul %42, %43, %cst_14 {dimension_numbers = #tpu.dot_dimension_numbers<[1], [0], [0], [1], [0, 0, 1, 1], [], []>} : vector<16x16xbf16>, vector<16x16xbf16>, vector<16x16xf32> -> vector<16x16xf32>
    %45 = vector.broadcast %41 : vector<16x1xf32> to vector<16x16xf32>
    %46 = arith.mulf %44, %45 : vector<16x16xf32>
    %47 = arith.truncf %46 : vector<16x16xf32> to vector<16x16xbf16>
    %c0_15 = arith.constant 0 : index
    %c0_16 = arith.constant 0 : index
    %48 = vector.load %arg9[%c0_15, %c0_16] : memref<32x128xbf16, #tpu.memory_space<vmem>>, vector<16x16xbf16>
    tpu.vector_store %arg9[%c0_15, %c0_16], %47 {strides = array<i32>} : memref<32x128xbf16, #tpu.memory_space<vmem>>, vector<16x16xbf16>,
    %49 = vector.extract_strided_slice %25 {offsets = [16, 0], sizes = [16, 16], strides = [1, 1]} : vector<32x16xbf16> to vector<16x16xbf16>
    %50 = vector.extract_strided_slice %29 {offsets = [16, 0], sizes = [16, 16], strides = [1, 1]} : vector<32x16xbf16> to vector<16x16xbf16>
    %cst_17 = arith.constant dense<0.000000e+00> : vector<16x16xf32>
    %51 = tpu.matmul %49, %50, %cst_17 {dimension_numbers = #tpu.dot_dimension_numbers<[1], [1], [0], [0], [0, 0, 1, 0], [], []>} : vector<16x16xbf16>, vector<16x16xbf16>, vector<16x16xf32> -> vector<16x16xf32>
    %cst_18 = arith.constant dense<0xFF800000> : vector<16xf32>
    %52 = vector.multi_reduction <maximumf>, %51, %cst_18 [1] : vector<16x16xf32> to vector<16xf32>
    %53 = vector.shape_cast %52 : vector<16xf32> to vector<16x1xf32>
    %54 = vector.broadcast %53 : vector<16x1xf32> to vector<16x16xf32>
    %55 = arith.subf %51, %54 : vector<16x16xf32>
    %56 = math.exp %55 : vector<16x16xf32>
    %cst_19 = arith.constant dense<0.000000e+00> : vector<16xf32>
    %57 = vector.multi_reduction <add>, %56, %cst_19 [1] : vector<16x16xf32> to vector<16xf32>
    %58 = vector.shape_cast %57 : vector<16xf32> to vector<16x1xf32>
    %59 = tpu.reciprocal %58 {approx = true} : vector<16x1xf32> -> vector<16x1xf32>
    %60 = arith.truncf %56 : vector<16x16xf32> to vector<16x16xbf16>
    %61 = vector.extract_strided_slice %30 {offsets = [16, 0], sizes = [16, 16], strides = [1, 1]} : vector<32x16xbf16> to vector<16x16xbf16>
    %cst_20 = arith.constant dense<0.000000e+00> : vector<16x16xf32>
    %62 = tpu.matmul %60, %61, %cst_20 {dimension_numbers = #tpu.dot_dimension_numbers<[1], [0], [0], [1], [0, 0, 1, 1], [], []>} : vector<16x16xbf16>, vector<16x16xbf16>, vector<16x16xf32> -> vector<16x16xf32>
    %63 = vector.broadcast %59 : vector<16x1xf32> to vector<16x16xf32>
    %64 = arith.mulf %62, %63 : vector<16x16xf32>
    %65 = arith.truncf %64 : vector<16x16xf32> to vector<16x16xbf16>
    %c16 = arith.constant 16 : index
    %c0_21 = arith.constant 0 : index
    %66 = vector.load %arg9[%c16, %c0_21] : memref<32x128xbf16, #tpu.memory_space<vmem>>, vector<16x16xbf16>
    tpu.vector_store %arg9[%c16, %c0_21], %65 {strides = array<i32>} : memref<32x128xbf16, #tpu.memory_space<vmem>>, vector<16x16xbf16>,
    %67 = vector.extract_strided_slice %16 {offsets = [0, 8], sizes = [32, 8], strides = [1, 1]} : vector<32x128xf32> to vector<32x8xf32>
    %68 = vector.extract_strided_slice %16 {offsets = [0, 72], sizes = [32, 8], strides = [1, 1]} : vector<32x128xf32> to vector<32x8xf32>
    %69 = tpu.concatenate %67, %68 in 1 : vector<32x8xf32>, vector<32x8xf32> -> vector<32x16xf32>
    %70 = arith.truncf %69 : vector<32x16xf32> to vector<32x16xbf16>
    %71 = vector.extract_strided_slice %20 {offsets = [0, 8], sizes = [32, 8], strides = [1, 1]} : vector<32x128xf32> to vector<32x8xf32>
    %72 = vector.extract_strided_slice %20 {offsets = [0, 72], sizes = [32, 8], strides = [1, 1]} : vector<32x128xf32> to vector<32x8xf32>
    %73 = tpu.concatenate %71, %72 in 1 : vector<32x8xf32>, vector<32x8xf32> -> vector<32x16xf32>
    %74 = arith.truncf %73 : vector<32x16xf32> to vector<32x16xbf16>
    %75 = vector.extract_strided_slice %21 {offsets = [0, 16], sizes = [32, 16], strides = [1, 1]} : vector<32x128xbf16> to vector<32x16xbf16>
    %76 = vector.extract_strided_slice %70 {offsets = [0, 0], sizes = [16, 16], strides = [1, 1]} : vector<32x16xbf16> to vector<16x16xbf16>
    %77 = vector.extract_strided_slice %74 {offsets = [0, 0], sizes = [16, 16], strides = [1, 1]} : vector<32x16xbf16> to vector<16x16xbf16>
    %cst_22 = arith.constant dense<0.000000e+00> : vector<16x16xf32>
    %78 = tpu.matmul %76, %77, %cst_22 {dimension_numbers = #tpu.dot_dimension_numbers<[1], [1], [0], [0], [0, 0, 1, 0], [], []>} : vector<16x16xbf16>, vector<16x16xbf16>, vector<16x16xf32> -> vector<16x16xf32>
    %cst_23 = arith.constant dense<0xFF800000> : vector<16xf32>
    %79 = vector.multi_reduction <maximumf>, %78, %cst_23 [1] : vector<16x16xf32> to vector<16xf32>
    %80 = vector.shape_cast %79 : vector<16xf32> to vector<16x1xf32>
    %81 = vector.broadcast %80 : vector<16x1xf32> to vector<16x16xf32>
    %82 = arith.subf %78, %81 : vector<16x16xf32>
    %83 = math.exp %82 : vector<16x16xf32>
    %cst_24 = arith.constant dense<0.000000e+00> : vector<16xf32>
    %84 = vector.multi_reduction <add>, %83, %cst_24 [1] : vector<16x16xf32> to vector<16xf32>
    %85 = vector.shape_cast %84 : vector<16xf32> to vector<16x1xf32>
    %86 = tpu.reciprocal %85 {approx = true} : vector<16x1xf32> -> vector<16x1xf32>
    %87 = arith.truncf %83 : vector<16x16xf32> to vector<16x16xbf16>
    %88 = vector.extract_strided_slice %75 {offsets = [0, 0], sizes = [16, 16], strides = [1, 1]} : vector<32x16xbf16> to vector<16x16xbf16>
    %cst_25 = arith.constant dense<0.000000e+00> : vector<16x16xf32>
    %89 = tpu.matmul %87, %88, %cst_25 {dimension_numbers = #tpu.dot_dimension_numbers<[1], [0], [0], [1], [0, 0, 1, 1], [], []>} : vector<16x16xbf16>, vector<16x16xbf16>, vector<16x16xf32> -> vector<16x16xf32>
    %90 = vector.broadcast %86 : vector<16x1xf32> to vector<16x16xf32>
    %91 = arith.mulf %89, %90 : vector<16x16xf32>
    %92 = arith.truncf %91 : vector<16x16xf32> to vector<16x16xbf16>
    %c0_26 = arith.constant 0 : index
    %c16_27 = arith.constant 16 : index
    %93 = vector.load %arg9[%c0_26, %c16_27] : memref<32x128xbf16, #tpu.memory_space<vmem>>, vector<16x16xbf16>
    tpu.vector_store %arg9[%c0_26, %c16_27], %92 {strides = array<i32>} : memref<32x128xbf16, #tpu.memory_space<vmem>>, vector<16x16xbf16>,
    %94 = vector.extract_strided_slice %70 {offsets = [16, 0], sizes = [16, 16], strides = [1, 1]} : vector<32x16xbf16> to vector<16x16xbf16>
    %95 = vector.extract_strided_slice %74 {offsets = [16, 0], sizes = [16, 16], strides = [1, 1]} : vector<32x16xbf16> to vector<16x16xbf16>
    %cst_28 = arith.constant dense<0.000000e+00> : vector<16x16xf32>
    %96 = tpu.matmul %94, %95, %cst_28 {dimension_numbers = #tpu.dot_dimension_numbers<[1], [1], [0], [0], [0, 0, 1, 0], [], []>} : vector<16x16xbf16>, vector<16x16xbf16>, vector<16x16xf32> -> vector<16x16xf32>
    %cst_29 = arith.constant dense<0xFF800000> : vector<16xf32>
    %97 = vector.multi_reduction <maximumf>, %96, %cst_29 [1] : vector<16x16xf32> to vector<16xf32>
    %98 = vector.shape_cast %97 : vector<16xf32> to vector<16x1xf32>
    %99 = vector.broadcast %98 : vector<16x1xf32> to vector<16x16xf32>
    %100 = arith.subf %96, %99 : vector<16x16xf32>
    %101 = math.exp %100 : vector<16x16xf32>
    %cst_30 = arith.constant dense<0.000000e+00> : vector<16xf32>
    %102 = vector.multi_reduction <add>, %101, %cst_30 [1] : vector<16x16xf32> to vector<16xf32>
    %103 = vector.shape_cast %102 : vector<16xf32> to vector<16x1xf32>
    %104 = tpu.reciprocal %103 {approx = true} : vector<16x1xf32> -> vector<16x1xf32>
    %105 = arith.truncf %101 : vector<16x16xf32> to vector<16x16xbf16>
    %106 = vector.extract_strided_slice %75 {offsets = [16, 0], sizes = [16, 16], strides = [1, 1]} : vector<32x16xbf16> to vector<16x16xbf16>
    %cst_31 = arith.constant dense<0.000000e+00> : vector<16x16xf32>
    %107 = tpu.matmul %105, %106, %cst_31 {dimension_numbers = #tpu.dot_dimension_numbers<[1], [0], [0], [1], [0, 0, 1, 1], [], []>} : vector<16x16xbf16>, vector<16x16xbf16>, vector<16x16xf32> -> vector<16x16xf32>
    %108 = vector.broadcast %104 : vector<16x1xf32> to vector<16x16xf32>
    %109 = arith.mulf %107, %108 : vector<16x16xf32>
    %110 = arith.truncf %109 : vector<16x16xf32> to vector<16x16xbf16>
    %c16_32 = arith.constant 16 : index
    %c16_33 = arith.constant 16 : index
    %111 = vector.load %arg9[%c16_32, %c16_33] : memref<32x128xbf16, #tpu.memory_space<vmem>>, vector<16x16xbf16>
    tpu.vector_store %arg9[%c16_32, %c16_33], %110 {strides = array<i32>} : memref<32x128xbf16, #tpu.memory_space<vmem>>, vector<16x16xbf16>,
    %112 = vector.extract_strided_slice %16 {offsets = [0, 16], sizes = [32, 8], strides = [1, 1]} : vector<32x128xf32> to vector<32x8xf32>
    %113 = vector.extract_strided_slice %16 {offsets = [0, 80], sizes = [32, 8], strides = [1, 1]} : vector<32x128xf32> to vector<32x8xf32>
    %114 = tpu.concatenate %112, %113 in 1 : vector<32x8xf32>, vector<32x8xf32> -> vector<32x16xf32>
    %115 = arith.truncf %114 : vector<32x16xf32> to vector<32x16xbf16>
    %116 = vector.extract_strided_slice %20 {offsets = [0, 16], sizes = [32, 8], strides = [1, 1]} : vector<32x128xf32> to vector<32x8xf32>
    %117 = vector.extract_strided_slice %20 {offsets = [0, 80], sizes = [32, 8], strides = [1, 1]} : vector<32x128xf32> to vector<32x8xf32>
    %118 = tpu.concatenate %116, %117 in 1 : vector<32x8xf32>, vector<32x8xf32> -> vector<32x16xf32>
    %119 = arith.truncf %118 : vector<32x16xf32> to vector<32x16xbf16>
    %120 = vector.extract_strided_slice %21 {offsets = [0, 32], sizes = [32, 16], strides = [1, 1]} : vector<32x128xbf16> to vector<32x16xbf16>
    %121 = vector.extract_strided_slice %115 {offsets = [0, 0], sizes = [16, 16], strides = [1, 1]} : vector<32x16xbf16> to vector<16x16xbf16>
    %122 = vector.extract_strided_slice %119 {offsets = [0, 0], sizes = [16, 16], strides = [1, 1]} : vector<32x16xbf16> to vector<16x16xbf16>
    %cst_34 = arith.constant dense<0.000000e+00> : vector<16x16xf32>
    %123 = tpu.matmul %121, %122, %cst_34 {dimension_numbers = #tpu.dot_dimension_numbers<[1], [1], [0], [0], [0, 0, 1, 0], [], []>} : vector<16x16xbf16>, vector<16x16xbf16>, vector<16x16xf32> -> vector<16x16xf32>
    %cst_35 = arith.constant dense<0xFF800000> : vector<16xf32>
    %124 = vector.multi_reduction <maximumf>, %123, %cst_35 [1] : vector<16x16xf32> to vector<16xf32>
    %125 = vector.shape_cast %124 : vector<16xf32> to vector<16x1xf32>
    %126 = vector.broadcast %125 : vector<16x1xf32> to vector<16x16xf32>
    %127 = arith.subf %123, %126 : vector<16x16xf32>
    %128 = math.exp %127 : vector<16x16xf32>
    %cst_36 = arith.constant dense<0.000000e+00> : vector<16xf32>
    %129 = vector.multi_reduction <add>, %128, %cst_36 [1] : vector<16x16xf32> to vector<16xf32>
    %130 = vector.shape_cast %129 : vector<16xf32> to vector<16x1xf32>
    %131 = tpu.reciprocal %130 {approx = true} : vector<16x1xf32> -> vector<16x1xf32>
    %132 = arith.truncf %128 : vector<16x16xf32> to vector<16x16xbf16>
    %133 = vector.extract_strided_slice %120 {offsets = [0, 0], sizes = [16, 16], strides = [1, 1]} : vector<32x16xbf16> to vector<16x16xbf16>
    %cst_37 = arith.constant dense<0.000000e+00> : vector<16x16xf32>
    %134 = tpu.matmul %132, %133, %cst_37 {dimension_numbers = #tpu.dot_dimension_numbers<[1], [0], [0], [1], [0, 0, 1, 1], [], []>} : vector<16x16xbf16>, vector<16x16xbf16>, vector<16x16xf32> -> vector<16x16xf32>
    %135 = vector.broadcast %131 : vector<16x1xf32> to vector<16x16xf32>
    %136 = arith.mulf %134, %135 : vector<16x16xf32>
    %137 = arith.truncf %136 : vector<16x16xf32> to vector<16x16xbf16>
    %c0_38 = arith.constant 0 : index
    %c32 = arith.constant 32 : index
    %138 = vector.load %arg9[%c0_38, %c32] : memref<32x128xbf16, #tpu.memory_space<vmem>>, vector<16x16xbf16>
    tpu.vector_store %arg9[%c0_38, %c32], %137 {strides = array<i32>} : memref<32x128xbf16, #tpu.memory_space<vmem>>, vector<16x16xbf16>,
    %139 = vector.extract_strided_slice %115 {offsets = [16, 0], sizes = [16, 16], strides = [1, 1]} : vector<32x16xbf16> to vector<16x16xbf16>
    %140 = vector.extract_strided_slice %119 {offsets = [16, 0], sizes = [16, 16], strides = [1, 1]} : vector<32x16xbf16> to vector<16x16xbf16>
    %cst_39 = arith.constant dense<0.000000e+00> : vector<16x16xf32>
    %141 = tpu.matmul %139, %140, %cst_39 {dimension_numbers = #tpu.dot_dimension_numbers<[1], [1], [0], [0], [0, 0, 1, 0], [], []>} : vector<16x16xbf16>, vector<16x16xbf16>, vector<16x16xf32> -> vector<16x16xf32>
    %cst_40 = arith.constant dense<0xFF800000> : vector<16xf32>
    %142 = vector.multi_reduction <maximumf>, %141, %cst_40 [1] : vector<16x16xf32> to vector<16xf32>
    %143 = vector.shape_cast %142 : vector<16xf32> to vector<16x1xf32>
    %144 = vector.broadcast %143 : vector<16x1xf32> to vector<16x16xf32>
    %145 = arith.subf %141, %144 : vector<16x16xf32>
    %146 = math.exp %145 : vector<16x16xf32>
    %cst_41 = arith.constant dense<0.000000e+00> : vector<16xf32>
    %147 = vector.multi_reduction <add>, %146, %cst_41 [1] : vector<16x16xf32> to vector<16xf32>
    %148 = vector.shape_cast %147 : vector<16xf32> to vector<16x1xf32>
    %149 = tpu.reciprocal %148 {approx = true} : vector<16x1xf32> -> vector<16x1xf32>
    %150 = arith.truncf %146 : vector<16x16xf32> to vector<16x16xbf16>
    %151 = vector.extract_strided_slice %120 {offsets = [16, 0], sizes = [16, 16], strides = [1, 1]} : vector<32x16xbf16> to vector<16x16xbf16>
    %cst_42 = arith.constant dense<0.000000e+00> : vector<16x16xf32>
    %152 = tpu.matmul %150, %151, %cst_42 {dimension_numbers = #tpu.dot_dimension_numbers<[1], [0], [0], [1], [0, 0, 1, 1], [], []>} : vector<16x16xbf16>, vector<16x16xbf16>, vector<16x16xf32> -> vector<16x16xf32>
    %153 = vector.broadcast %149 : vector<16x1xf32> to vector<16x16xf32>
    %154 = arith.mulf %152, %153 : vector<16x16xf32>
    %155 = arith.truncf %154 : vector<16x16xf32> to vector<16x16xbf16>
    %c16_43 = arith.constant 16 : index
    %c32_44 = arith.constant 32 : index
    %156 = vector.load %arg9[%c16_43, %c32_44] : memref<32x128xbf16, #tpu.memory_space<vmem>>, vector<16x16xbf16>
    tpu.vector_store %arg9[%c16_43, %c32_44], %155 {strides = array<i32>} : memref<32x128xbf16, #tpu.memory_space<vmem>>, vector<16x16xbf16>,
    %157 = vector.extract_strided_slice %16 {offsets = [0, 24], sizes = [32, 8], strides = [1, 1]} : vector<32x128xf32> to vector<32x8xf32>
    %158 = vector.extract_strided_slice %16 {offsets = [0, 88], sizes = [32, 8], strides = [1, 1]} : vector<32x128xf32> to vector<32x8xf32>
    %159 = tpu.concatenate %157, %158 in 1 : vector<32x8xf32>, vector<32x8xf32> -> vector<32x16xf32>
    %160 = arith.truncf %159 : vector<32x16xf32> to vector<32x16xbf16>
    %161 = vector.extract_strided_slice %20 {offsets = [0, 24], sizes = [32, 8], strides = [1, 1]} : vector<32x128xf32> to vector<32x8xf32>
    %162 = vector.extract_strided_slice %20 {offsets = [0, 88], sizes = [32, 8], strides = [1, 1]} : vector<32x128xf32> to vector<32x8xf32>
    %163 = tpu.concatenate %161, %162 in 1 : vector<32x8xf32>, vector<32x8xf32> -> vector<32x16xf32>
    %164 = arith.truncf %163 : vector<32x16xf32> to vector<32x16xbf16>
    %165 = vector.extract_strided_slice %21 {offsets = [0, 48], sizes = [32, 16], strides = [1, 1]} : vector<32x128xbf16> to vector<32x16xbf16>
    %166 = vector.extract_strided_slice %160 {offsets = [0, 0], sizes = [16, 16], strides = [1, 1]} : vector<32x16xbf16> to vector<16x16xbf16>
    %167 = vector.extract_strided_slice %164 {offsets = [0, 0], sizes = [16, 16], strides = [1, 1]} : vector<32x16xbf16> to vector<16x16xbf16>
    %cst_45 = arith.constant dense<0.000000e+00> : vector<16x16xf32>
    %168 = tpu.matmul %166, %167, %cst_45 {dimension_numbers = #tpu.dot_dimension_numbers<[1], [1], [0], [0], [0, 0, 1, 0], [], []>} : vector<16x16xbf16>, vector<16x16xbf16>, vector<16x16xf32> -> vector<16x16xf32>
    %cst_46 = arith.constant dense<0xFF800000> : vector<16xf32>
    %169 = vector.multi_reduction <maximumf>, %168, %cst_46 [1] : vector<16x16xf32> to vector<16xf32>
    %170 = vector.shape_cast %169 : vector<16xf32> to vector<16x1xf32>
    %171 = vector.broadcast %170 : vector<16x1xf32> to vector<16x16xf32>
    %172 = arith.subf %168, %171 : vector<16x16xf32>
    %173 = math.exp %172 : vector<16x16xf32>
    %cst_47 = arith.constant dense<0.000000e+00> : vector<16xf32>
    %174 = vector.multi_reduction <add>, %173, %cst_47 [1] : vector<16x16xf32> to vector<16xf32>
    %175 = vector.shape_cast %174 : vector<16xf32> to vector<16x1xf32>
    %176 = tpu.reciprocal %175 {approx = true} : vector<16x1xf32> -> vector<16x1xf32>
    %177 = arith.truncf %173 : vector<16x16xf32> to vector<16x16xbf16>
    %178 = vector.extract_strided_slice %165 {offsets = [0, 0], sizes = [16, 16], strides = [1, 1]} : vector<32x16xbf16> to vector<16x16xbf16>
    %cst_48 = arith.constant dense<0.000000e+00> : vector<16x16xf32>
    %179 = tpu.matmul %177, %178, %cst_48 {dimension_numbers = #tpu.dot_dimension_numbers<[1], [0], [0], [1], [0, 0, 1, 1], [], []>} : vector<16x16xbf16>, vector<16x16xbf16>, vector<16x16xf32> -> vector<16x16xf32>
    %180 = vector.broadcast %176 : vector<16x1xf32> to vector<16x16xf32>
    %181 = arith.mulf %179, %180 : vector<16x16xf32>
    %182 = arith.truncf %181 : vector<16x16xf32> to vector<16x16xbf16>
    %c0_49 = arith.constant 0 : index
    %c48 = arith.constant 48 : index
    %183 = vector.load %arg9[%c0_49, %c48] : memref<32x128xbf16, #tpu.memory_space<vmem>>, vector<16x16xbf16>
    tpu.vector_store %arg9[%c0_49, %c48], %182 {strides = array<i32>} : memref<32x128xbf16, #tpu.memory_space<vmem>>, vector<16x16xbf16>,
    %184 = vector.extract_strided_slice %160 {offsets = [16, 0], sizes = [16, 16], strides = [1, 1]} : vector<32x16xbf16> to vector<16x16xbf16>
    %185 = vector.extract_strided_slice %164 {offsets = [16, 0], sizes = [16, 16], strides = [1, 1]} : vector<32x16xbf16> to vector<16x16xbf16>
    %cst_50 = arith.constant dense<0.000000e+00> : vector<16x16xf32>
    %186 = tpu.matmul %184, %185, %cst_50 {dimension_numbers = #tpu.dot_dimension_numbers<[1], [1], [0], [0], [0, 0, 1, 0], [], []>} : vector<16x16xbf16>, vector<16x16xbf16>, vector<16x16xf32> -> vector<16x16xf32>
    %cst_51 = arith.constant dense<0xFF800000> : vector<16xf32>
    %187 = vector.multi_reduction <maximumf>, %186, %cst_51 [1] : vector<16x16xf32> to vector<16xf32>
    %188 = vector.shape_cast %187 : vector<16xf32> to vector<16x1xf32>
    %189 = vector.broadcast %188 : vector<16x1xf32> to vector<16x16xf32>
    %190 = arith.subf %186, %189 : vector<16x16xf32>
    %191 = math.exp %190 : vector<16x16xf32>
    %cst_52 = arith.constant dense<0.000000e+00> : vector<16xf32>
    %192 = vector.multi_reduction <add>, %191, %cst_52 [1] : vector<16x16xf32> to vector<16xf32>
    %193 = vector.shape_cast %192 : vector<16xf32> to vector<16x1xf32>
    %194 = tpu.reciprocal %193 {approx = true} : vector<16x1xf32> -> vector<16x1xf32>
    %195 = arith.truncf %191 : vector<16x16xf32> to vector<16x16xbf16>
    %196 = vector.extract_strided_slice %165 {offsets = [16, 0], sizes = [16, 16], strides = [1, 1]} : vector<32x16xbf16> to vector<16x16xbf16>
    %cst_53 = arith.constant dense<0.000000e+00> : vector<16x16xf32>
    %197 = tpu.matmul %195, %196, %cst_53 {dimension_numbers = #tpu.dot_dimension_numbers<[1], [0], [0], [1], [0, 0, 1, 1], [], []>} : vector<16x16xbf16>, vector<16x16xbf16>, vector<16x16xf32> -> vector<16x16xf32>
    %198 = vector.broadcast %194 : vector<16x1xf32> to vector<16x16xf32>
    %199 = arith.mulf %197, %198 : vector<16x16xf32>
    %200 = arith.truncf %199 : vector<16x16xf32> to vector<16x16xbf16>
    %c16_54 = arith.constant 16 : index
    %c48_55 = arith.constant 48 : index
    %201 = vector.load %arg9[%c16_54, %c48_55] : memref<32x128xbf16, #tpu.memory_space<vmem>>, vector<16x16xbf16>
    tpu.vector_store %arg9[%c16_54, %c48_55], %200 {strides = array<i32>} : memref<32x128xbf16, #tpu.memory_space<vmem>>, vector<16x16xbf16>,
    %202 = vector.extract_strided_slice %16 {offsets = [0, 32], sizes = [32, 8], strides = [1, 1]} : vector<32x128xf32> to vector<32x8xf32>
    %203 = vector.extract_strided_slice %16 {offsets = [0, 96], sizes = [32, 8], strides = [1, 1]} : vector<32x128xf32> to vector<32x8xf32>
    %204 = tpu.concatenate %202, %203 in 1 : vector<32x8xf32>, vector<32x8xf32> -> vector<32x16xf32>
    %205 = arith.truncf %204 : vector<32x16xf32> to vector<32x16xbf16>
    %206 = vector.extract_strided_slice %20 {offsets = [0, 32], sizes = [32, 8], strides = [1, 1]} : vector<32x128xf32> to vector<32x8xf32>
    %207 = vector.extract_strided_slice %20 {offsets = [0, 96], sizes = [32, 8], strides = [1, 1]} : vector<32x128xf32> to vector<32x8xf32>
    %208 = tpu.concatenate %206, %207 in 1 : vector<32x8xf32>, vector<32x8xf32> -> vector<32x16xf32>
    %209 = arith.truncf %208 : vector<32x16xf32> to vector<32x16xbf16>
    %210 = vector.extract_strided_slice %21 {offsets = [0, 64], sizes = [32, 16], strides = [1, 1]} : vector<32x128xbf16> to vector<32x16xbf16>
    %211 = vector.extract_strided_slice %205 {offsets = [0, 0], sizes = [16, 16], strides = [1, 1]} : vector<32x16xbf16> to vector<16x16xbf16>
    %212 = vector.extract_strided_slice %209 {offsets = [0, 0], sizes = [16, 16], strides = [1, 1]} : vector<32x16xbf16> to vector<16x16xbf16>
    %cst_56 = arith.constant dense<0.000000e+00> : vector<16x16xf32>
    %213 = tpu.matmul %211, %212, %cst_56 {dimension_numbers = #tpu.dot_dimension_numbers<[1], [1], [0], [0], [0, 0, 1, 0], [], []>} : vector<16x16xbf16>, vector<16x16xbf16>, vector<16x16xf32> -> vector<16x16xf32>
    %cst_57 = arith.constant dense<0xFF800000> : vector<16xf32>
    %214 = vector.multi_reduction <maximumf>, %213, %cst_57 [1] : vector<16x16xf32> to vector<16xf32>
    %215 = vector.shape_cast %214 : vector<16xf32> to vector<16x1xf32>
    %216 = vector.broadcast %215 : vector<16x1xf32> to vector<16x16xf32>
    %217 = arith.subf %213, %216 : vector<16x16xf32>
    %218 = math.exp %217 : vector<16x16xf32>
    %cst_58 = arith.constant dense<0.000000e+00> : vector<16xf32>
    %219 = vector.multi_reduction <add>, %218, %cst_58 [1] : vector<16x16xf32> to vector<16xf32>
    %220 = vector.shape_cast %219 : vector<16xf32> to vector<16x1xf32>
    %221 = tpu.reciprocal %220 {approx = true} : vector<16x1xf32> -> vector<16x1xf32>
    %222 = arith.truncf %218 : vector<16x16xf32> to vector<16x16xbf16>
    %223 = vector.extract_strided_slice %210 {offsets = [0, 0], sizes = [16, 16], strides = [1, 1]} : vector<32x16xbf16> to vector<16x16xbf16>
    %cst_59 = arith.constant dense<0.000000e+00> : vector<16x16xf32>
    %224 = tpu.matmul %222, %223, %cst_59 {dimension_numbers = #tpu.dot_dimension_numbers<[1], [0], [0], [1], [0, 0, 1, 1], [], []>} : vector<16x16xbf16>, vector<16x16xbf16>, vector<16x16xf32> -> vector<16x16xf32>
    %225 = vector.broadcast %221 : vector<16x1xf32> to vector<16x16xf32>
    %226 = arith.mulf %224, %225 : vector<16x16xf32>
    %227 = arith.truncf %226 : vector<16x16xf32> to vector<16x16xbf16>
    %c0_60 = arith.constant 0 : index
    %c64 = arith.constant 64 : index
    %228 = vector.load %arg9[%c0_60, %c64] : memref<32x128xbf16, #tpu.memory_space<vmem>>, vector<16x16xbf16>
    tpu.vector_store %arg9[%c0_60, %c64], %227 {strides = array<i32>} : memref<32x128xbf16, #tpu.memory_space<vmem>>, vector<16x16xbf16>,
    %229 = vector.extract_strided_slice %205 {offsets = [16, 0], sizes = [16, 16], strides = [1, 1]} : vector<32x16xbf16> to vector<16x16xbf16>
    %230 = vector.extract_strided_slice %209 {offsets = [16, 0], sizes = [16, 16], strides = [1, 1]} : vector<32x16xbf16> to vector<16x16xbf16>
    %cst_61 = arith.constant dense<0.000000e+00> : vector<16x16xf32>
    %231 = tpu.matmul %229, %230, %cst_61 {dimension_numbers = #tpu.dot_dimension_numbers<[1], [1], [0], [0], [0, 0, 1, 0], [], []>} : vector<16x16xbf16>, vector<16x16xbf16>, vector<16x16xf32> -> vector<16x16xf32>
    %cst_62 = arith.constant dense<0xFF800000> : vector<16xf32>
    %232 = vector.multi_reduction <maximumf>, %231, %cst_62 [1] : vector<16x16xf32> to vector<16xf32>
    %233 = vector.shape_cast %232 : vector<16xf32> to vector<16x1xf32>
    %234 = vector.broadcast %233 : vector<16x1xf32> to vector<16x16xf32>
    %235 = arith.subf %231, %234 : vector<16x16xf32>
    %236 = math.exp %235 : vector<16x16xf32>
    %cst_63 = arith.constant dense<0.000000e+00> : vector<16xf32>
    %237 = vector.multi_reduction <add>, %236, %cst_63 [1] : vector<16x16xf32> to vector<16xf32>
    %238 = vector.shape_cast %237 : vector<16xf32> to vector<16x1xf32>
    %239 = tpu.reciprocal %238 {approx = true} : vector<16x1xf32> -> vector<16x1xf32>
    %240 = arith.truncf %236 : vector<16x16xf32> to vector<16x16xbf16>
    %241 = vector.extract_strided_slice %210 {offsets = [16, 0], sizes = [16, 16], strides = [1, 1]} : vector<32x16xbf16> to vector<16x16xbf16>
    %cst_64 = arith.constant dense<0.000000e+00> : vector<16x16xf32>
    %242 = tpu.matmul %240, %241, %cst_64 {dimension_numbers = #tpu.dot_dimension_numbers<[1], [0], [0], [1], [0, 0, 1, 1], [], []>} : vector<16x16xbf16>, vector<16x16xbf16>, vector<16x16xf32> -> vector<16x16xf32>
    %243 = vector.broadcast %239 : vector<16x1xf32> to vector<16x16xf32>
    %244 = arith.mulf %242, %243 : vector<16x16xf32>
    %245 = arith.truncf %244 : vector<16x16xf32> to vector<16x16xbf16>
    %c16_65 = arith.constant 16 : index
    %c64_66 = arith.constant 64 : index
    %246 = vector.load %arg9[%c16_65, %c64_66] : memref<32x128xbf16, #tpu.memory_space<vmem>>, vector<16x16xbf16>
    tpu.vector_store %arg9[%c16_65, %c64_66], %245 {strides = array<i32>} : memref<32x128xbf16, #tpu.memory_space<vmem>>, vector<16x16xbf16>,
    %247 = vector.extract_strided_slice %16 {offsets = [0, 40], sizes = [32, 8], strides = [1, 1]} : vector<32x128xf32> to vector<32x8xf32>
    %248 = vector.extract_strided_slice %16 {offsets = [0, 104], sizes = [32, 8], strides = [1, 1]} : vector<32x128xf32> to vector<32x8xf32>
    %249 = tpu.concatenate %247, %248 in 1 : vector<32x8xf32>, vector<32x8xf32> -> vector<32x16xf32>
    %250 = arith.truncf %249 : vector<32x16xf32> to vector<32x16xbf16>
    %251 = vector.extract_strided_slice %20 {offsets = [0, 40], sizes = [32, 8], strides = [1, 1]} : vector<32x128xf32> to vector<32x8xf32>
    %252 = vector.extract_strided_slice %20 {offsets = [0, 104], sizes = [32, 8], strides = [1, 1]} : vector<32x128xf32> to vector<32x8xf32>
    %253 = tpu.concatenate %251, %252 in 1 : vector<32x8xf32>, vector<32x8xf32> -> vector<32x16xf32>
    %254 = arith.truncf %253 : vector<32x16xf32> to vector<32x16xbf16>
    %255 = vector.extract_strided_slice %21 {offsets = [0, 80], sizes = [32, 16], strides = [1, 1]} : vector<32x128xbf16> to vector<32x16xbf16>
    %256 = vector.extract_strided_slice %250 {offsets = [0, 0], sizes = [16, 16], strides = [1, 1]} : vector<32x16xbf16> to vector<16x16xbf16>
    %257 = vector.extract_strided_slice %254 {offsets = [0, 0], sizes = [16, 16], strides = [1, 1]} : vector<32x16xbf16> to vector<16x16xbf16>
    %cst_67 = arith.constant dense<0.000000e+00> : vector<16x16xf32>
    %258 = tpu.matmul %256, %257, %cst_67 {dimension_numbers = #tpu.dot_dimension_numbers<[1], [1], [0], [0], [0, 0, 1, 0], [], []>} : vector<16x16xbf16>, vector<16x16xbf16>, vector<16x16xf32> -> vector<16x16xf32>
    %cst_68 = arith.constant dense<0xFF800000> : vector<16xf32>
    %259 = vector.multi_reduction <maximumf>, %258, %cst_68 [1] : vector<16x16xf32> to vector<16xf32>
    %260 = vector.shape_cast %259 : vector<16xf32> to vector<16x1xf32>
    %261 = vector.broadcast %260 : vector<16x1xf32> to vector<16x16xf32>
    %262 = arith.subf %258, %261 : vector<16x16xf32>
    %263 = math.exp %262 : vector<16x16xf32>
    %cst_69 = arith.constant dense<0.000000e+00> : vector<16xf32>
    %264 = vector.multi_reduction <add>, %263, %cst_69 [1] : vector<16x16xf32> to vector<16xf32>
    %265 = vector.shape_cast %264 : vector<16xf32> to vector<16x1xf32>
    %266 = tpu.reciprocal %265 {approx = true} : vector<16x1xf32> -> vector<16x1xf32>
    %267 = arith.truncf %263 : vector<16x16xf32> to vector<16x16xbf16>
    %268 = vector.extract_strided_slice %255 {offsets = [0, 0], sizes = [16, 16], strides = [1, 1]} : vector<32x16xbf16> to vector<16x16xbf16>
    %cst_70 = arith.constant dense<0.000000e+00> : vector<16x16xf32>
    %269 = tpu.matmul %267, %268, %cst_70 {dimension_numbers = #tpu.dot_dimension_numbers<[1], [0], [0], [1], [0, 0, 1, 1], [], []>} : vector<16x16xbf16>, vector<16x16xbf16>, vector<16x16xf32> -> vector<16x16xf32>
    %270 = vector.broadcast %266 : vector<16x1xf32> to vector<16x16xf32>
    %271 = arith.mulf %269, %270 : vector<16x16xf32>
    %272 = arith.truncf %271 : vector<16x16xf32> to vector<16x16xbf16>
    %c0_71 = arith.constant 0 : index
    %c80 = arith.constant 80 : index
    %273 = vector.load %arg9[%c0_71, %c80] : memref<32x128xbf16, #tpu.memory_space<vmem>>, vector<16x16xbf16>
    tpu.vector_store %arg9[%c0_71, %c80], %272 {strides = array<i32>} : memref<32x128xbf16, #tpu.memory_space<vmem>>, vector<16x16xbf16>,
    %274 = vector.extract_strided_slice %250 {offsets = [16, 0], sizes = [16, 16], strides = [1, 1]} : vector<32x16xbf16> to vector<16x16xbf16>
    %275 = vector.extract_strided_slice %254 {offsets = [16, 0], sizes = [16, 16], strides = [1, 1]} : vector<32x16xbf16> to vector<16x16xbf16>
    %cst_72 = arith.constant dense<0.000000e+00> : vector<16x16xf32>
    %276 = tpu.matmul %274, %275, %cst_72 {dimension_numbers = #tpu.dot_dimension_numbers<[1], [1], [0], [0], [0, 0, 1, 0], [], []>} : vector<16x16xbf16>, vector<16x16xbf16>, vector<16x16xf32> -> vector<16x16xf32>
    %cst_73 = arith.constant dense<0xFF800000> : vector<16xf32>
    %277 = vector.multi_reduction <maximumf>, %276, %cst_73 [1] : vector<16x16xf32> to vector<16xf32>
    %278 = vector.shape_cast %277 : vector<16xf32> to vector<16x1xf32>
    %279 = vector.broadcast %278 : vector<16x1xf32> to vector<16x16xf32>
    %280 = arith.subf %276, %279 : vector<16x16xf32>
    %281 = math.exp %280 : vector<16x16xf32>
    %cst_74 = arith.constant dense<0.000000e+00> : vector<16xf32>
    %282 = vector.multi_reduction <add>, %281, %cst_74 [1] : vector<16x16xf32> to vector<16xf32>
    %283 = vector.shape_cast %282 : vector<16xf32> to vector<16x1xf32>
    %284 = tpu.reciprocal %283 {approx = true} : vector<16x1xf32> -> vector<16x1xf32>
    %285 = arith.truncf %281 : vector<16x16xf32> to vector<16x16xbf16>
    %286 = vector.extract_strided_slice %255 {offsets = [16, 0], sizes = [16, 16], strides = [1, 1]} : vector<32x16xbf16> to vector<16x16xbf16>
    %cst_75 = arith.constant dense<0.000000e+00> : vector<16x16xf32>
    %287 = tpu.matmul %285, %286, %cst_75 {dimension_numbers = #tpu.dot_dimension_numbers<[1], [0], [0], [1], [0, 0, 1, 1], [], []>} : vector<16x16xbf16>, vector<16x16xbf16>, vector<16x16xf32> -> vector<16x16xf32>
    %288 = vector.broadcast %284 : vector<16x1xf32> to vector<16x16xf32>
    %289 = arith.mulf %287, %288 : vector<16x16xf32>
    %290 = arith.truncf %289 : vector<16x16xf32> to vector<16x16xbf16>
    %c16_76 = arith.constant 16 : index
    %c80_77 = arith.constant 80 : index
    %291 = vector.load %arg9[%c16_76, %c80_77] : memref<32x128xbf16, #tpu.memory_space<vmem>>, vector<16x16xbf16>
    tpu.vector_store %arg9[%c16_76, %c80_77], %290 {strides = array<i32>} : memref<32x128xbf16, #tpu.memory_space<vmem>>, vector<16x16xbf16>,
    %292 = vector.extract_strided_slice %16 {offsets = [0, 48], sizes = [32, 8], strides = [1, 1]} : vector<32x128xf32> to vector<32x8xf32>
    %293 = vector.extract_strided_slice %16 {offsets = [0, 112], sizes = [32, 8], strides = [1, 1]} : vector<32x128xf32> to vector<32x8xf32>
    %294 = tpu.concatenate %292, %293 in 1 : vector<32x8xf32>, vector<32x8xf32> -> vector<32x16xf32>
    %295 = arith.truncf %294 : vector<32x16xf32> to vector<32x16xbf16>
    %296 = vector.extract_strided_slice %20 {offsets = [0, 48], sizes = [32, 8], strides = [1, 1]} : vector<32x128xf32> to vector<32x8xf32>
    %297 = vector.extract_strided_slice %20 {offsets = [0, 112], sizes = [32, 8], strides = [1, 1]} : vector<32x128xf32> to vector<32x8xf32>
    %298 = tpu.concatenate %296, %297 in 1 : vector<32x8xf32>, vector<32x8xf32> -> vector<32x16xf32>
    %299 = arith.truncf %298 : vector<32x16xf32> to vector<32x16xbf16>
    %300 = vector.extract_strided_slice %21 {offsets = [0, 96], sizes = [32, 16], strides = [1, 1]} : vector<32x128xbf16> to vector<32x16xbf16>
    %301 = vector.extract_strided_slice %295 {offsets = [0, 0], sizes = [16, 16], strides = [1, 1]} : vector<32x16xbf16> to vector<16x16xbf16>
    %302 = vector.extract_strided_slice %299 {offsets = [0, 0], sizes = [16, 16], strides = [1, 1]} : vector<32x16xbf16> to vector<16x16xbf16>
    %cst_78 = arith.constant dense<0.000000e+00> : vector<16x16xf32>
    %303 = tpu.matmul %301, %302, %cst_78 {dimension_numbers = #tpu.dot_dimension_numbers<[1], [1], [0], [0], [0, 0, 1, 0], [], []>} : vector<16x16xbf16>, vector<16x16xbf16>, vector<16x16xf32> -> vector<16x16xf32>
    %cst_79 = arith.constant dense<0xFF800000> : vector<16xf32>
    %304 = vector.multi_reduction <maximumf>, %303, %cst_79 [1] : vector<16x16xf32> to vector<16xf32>
    %305 = vector.shape_cast %304 : vector<16xf32> to vector<16x1xf32>
    %306 = vector.broadcast %305 : vector<16x1xf32> to vector<16x16xf32>
    %307 = arith.subf %303, %306 : vector<16x16xf32>
    %308 = math.exp %307 : vector<16x16xf32>
    %cst_80 = arith.constant dense<0.000000e+00> : vector<16xf32>
    %309 = vector.multi_reduction <add>, %308, %cst_80 [1] : vector<16x16xf32> to vector<16xf32>
    %310 = vector.shape_cast %309 : vector<16xf32> to vector<16x1xf32>
    %311 = tpu.reciprocal %310 {approx = true} : vector<16x1xf32> -> vector<16x1xf32>
    %312 = arith.truncf %308 : vector<16x16xf32> to vector<16x16xbf16>
    %313 = vector.extract_strided_slice %300 {offsets = [0, 0], sizes = [16, 16], strides = [1, 1]} : vector<32x16xbf16> to vector<16x16xbf16>
    %cst_81 = arith.constant dense<0.000000e+00> : vector<16x16xf32>
    %314 = tpu.matmul %312, %313, %cst_81 {dimension_numbers = #tpu.dot_dimension_numbers<[1], [0], [0], [1], [0, 0, 1, 1], [], []>} : vector<16x16xbf16>, vector<16x16xbf16>, vector<16x16xf32> -> vector<16x16xf32>
    %315 = vector.broadcast %311 : vector<16x1xf32> to vector<16x16xf32>
    %316 = arith.mulf %314, %315 : vector<16x16xf32>
    %317 = arith.truncf %316 : vector<16x16xf32> to vector<16x16xbf16>
    %c0_82 = arith.constant 0 : index
    %c96 = arith.constant 96 : index
    %318 = vector.load %arg9[%c0_82, %c96] : memref<32x128xbf16, #tpu.memory_space<vmem>>, vector<16x16xbf16>
    tpu.vector_store %arg9[%c0_82, %c96], %317 {strides = array<i32>} : memref<32x128xbf16, #tpu.memory_space<vmem>>, vector<16x16xbf16>,
    %319 = vector.extract_strided_slice %295 {offsets = [16, 0], sizes = [16, 16], strides = [1, 1]} : vector<32x16xbf16> to vector<16x16xbf16>
    %320 = vector.extract_strided_slice %299 {offsets = [16, 0], sizes = [16, 16], strides = [1, 1]} : vector<32x16xbf16> to vector<16x16xbf16>
    %cst_83 = arith.constant dense<0.000000e+00> : vector<16x16xf32>
    %321 = tpu.matmul %319, %320, %cst_83 {dimension_numbers = #tpu.dot_dimension_numbers<[1], [1], [0], [0], [0, 0, 1, 0], [], []>} : vector<16x16xbf16>, vector<16x16xbf16>, vector<16x16xf32> -> vector<16x16xf32>
    %cst_84 = arith.constant dense<0xFF800000> : vector<16xf32>
    %322 = vector.multi_reduction <maximumf>, %321, %cst_84 [1] : vector<16x16xf32> to vector<16xf32>
    %323 = vector.shape_cast %322 : vector<16xf32> to vector<16x1xf32>
    %324 = vector.broadcast %323 : vector<16x1xf32> to vector<16x16xf32>
    %325 = arith.subf %321, %324 : vector<16x16xf32>
    %326 = math.exp %325 : vector<16x16xf32>
    %cst_85 = arith.constant dense<0.000000e+00> : vector<16xf32>
    %327 = vector.multi_reduction <add>, %326, %cst_85 [1] : vector<16x16xf32> to vector<16xf32>
    %328 = vector.shape_cast %327 : vector<16xf32> to vector<16x1xf32>
    %329 = tpu.reciprocal %328 {approx = true} : vector<16x1xf32> -> vector<16x1xf32>
    %330 = arith.truncf %326 : vector<16x16xf32> to vector<16x16xbf16>
    %331 = vector.extract_strided_slice %300 {offsets = [16, 0], sizes = [16, 16], strides = [1, 1]} : vector<32x16xbf16> to vector<16x16xbf16>
    %cst_86 = arith.constant dense<0.000000e+00> : vector<16x16xf32>
    %332 = tpu.matmul %330, %331, %cst_86 {dimension_numbers = #tpu.dot_dimension_numbers<[1], [0], [0], [1], [0, 0, 1, 1], [], []>} : vector<16x16xbf16>, vector<16x16xbf16>, vector<16x16xf32> -> vector<16x16xf32>
    %333 = vector.broadcast %329 : vector<16x1xf32> to vector<16x16xf32>
    %334 = arith.mulf %332, %333 : vector<16x16xf32>
    %335 = arith.truncf %334 : vector<16x16xf32> to vector<16x16xbf16>
    %c16_87 = arith.constant 16 : index
    %c96_88 = arith.constant 96 : index
    %336 = vector.load %arg9[%c16_87, %c96_88] : memref<32x128xbf16, #tpu.memory_space<vmem>>, vector<16x16xbf16>
    tpu.vector_store %arg9[%c16_87, %c96_88], %335 {strides = array<i32>} : memref<32x128xbf16, #tpu.memory_space<vmem>>, vector<16x16xbf16>,
    %337 = vector.extract_strided_slice %16 {offsets = [0, 56], sizes = [32, 8], strides = [1, 1]} : vector<32x128xf32> to vector<32x8xf32>
    %338 = vector.extract_strided_slice %16 {offsets = [0, 120], sizes = [32, 8], strides = [1, 1]} : vector<32x128xf32> to vector<32x8xf32>
    %339 = tpu.concatenate %337, %338 in 1 : vector<32x8xf32>, vector<32x8xf32> -> vector<32x16xf32>
    %340 = arith.truncf %339 : vector<32x16xf32> to vector<32x16xbf16>
    %341 = vector.extract_strided_slice %20 {offsets = [0, 56], sizes = [32, 8], strides = [1, 1]} : vector<32x128xf32> to vector<32x8xf32>
    %342 = vector.extract_strided_slice %20 {offsets = [0, 120], sizes = [32, 8], strides = [1, 1]} : vector<32x128xf32> to vector<32x8xf32>
    %343 = tpu.concatenate %341, %342 in 1 : vector<32x8xf32>, vector<32x8xf32> -> vector<32x16xf32>
    %344 = arith.truncf %343 : vector<32x16xf32> to vector<32x16xbf16>
    %345 = vector.extract_strided_slice %21 {offsets = [0, 112], sizes = [32, 16], strides = [1, 1]} : vector<32x128xbf16> to vector<32x16xbf16>
    %346 = vector.extract_strided_slice %340 {offsets = [0, 0], sizes = [16, 16], strides = [1, 1]} : vector<32x16xbf16> to vector<16x16xbf16>
    %347 = vector.extract_strided_slice %344 {offsets = [0, 0], sizes = [16, 16], strides = [1, 1]} : vector<32x16xbf16> to vector<16x16xbf16>
    %cst_89 = arith.constant dense<0.000000e+00> : vector<16x16xf32>
    %348 = tpu.matmul %346, %347, %cst_89 {dimension_numbers = #tpu.dot_dimension_numbers<[1], [1], [0], [0], [0, 0, 1, 0], [], []>} : vector<16x16xbf16>, vector<16x16xbf16>, vector<16x16xf32> -> vector<16x16xf32>
    %cst_90 = arith.constant dense<0xFF800000> : vector<16xf32>
    %349 = vector.multi_reduction <maximumf>, %348, %cst_90 [1] : vector<16x16xf32> to vector<16xf32>
    %350 = vector.shape_cast %349 : vector<16xf32> to vector<16x1xf32>
    %351 = vector.broadcast %350 : vector<16x1xf32> to vector<16x16xf32>
    %352 = arith.subf %348, %351 : vector<16x16xf32>
    %353 = math.exp %352 : vector<16x16xf32>
    %cst_91 = arith.constant dense<0.000000e+00> : vector<16xf32>
    %354 = vector.multi_reduction <add>, %353, %cst_91 [1] : vector<16x16xf32> to vector<16xf32>
    %355 = vector.shape_cast %354 : vector<16xf32> to vector<16x1xf32>
    %356 = tpu.reciprocal %355 {approx = true} : vector<16x1xf32> -> vector<16x1xf32>
    %357 = arith.truncf %353 : vector<16x16xf32> to vector<16x16xbf16>
    %358 = vector.extract_strided_slice %345 {offsets = [0, 0], sizes = [16, 16], strides = [1, 1]} : vector<32x16xbf16> to vector<16x16xbf16>
    %cst_92 = arith.constant dense<0.000000e+00> : vector<16x16xf32>
    %359 = tpu.matmul %357, %358, %cst_92 {dimension_numbers = #tpu.dot_dimension_numbers<[1], [0], [0], [1], [0, 0, 1, 1], [], []>} : vector<16x16xbf16>, vector<16x16xbf16>, vector<16x16xf32> -> vector<16x16xf32>
    %360 = vector.broadcast %356 : vector<16x1xf32> to vector<16x16xf32>
    %361 = arith.mulf %359, %360 : vector<16x16xf32>
    %362 = arith.truncf %361 : vector<16x16xf32> to vector<16x16xbf16>
    %c0_93 = arith.constant 0 : index
    %c112 = arith.constant 112 : index
    %363 = vector.load %arg9[%c0_93, %c112] : memref<32x128xbf16, #tpu.memory_space<vmem>>, vector<16x16xbf16>
    tpu.vector_store %arg9[%c0_93, %c112], %362 {strides = array<i32>} : memref<32x128xbf16, #tpu.memory_space<vmem>>, vector<16x16xbf16>,
    %364 = vector.extract_strided_slice %340 {offsets = [16, 0], sizes = [16, 16], strides = [1, 1]} : vector<32x16xbf16> to vector<16x16xbf16>
    %365 = vector.extract_strided_slice %344 {offsets = [16, 0], sizes = [16, 16], strides = [1, 1]} : vector<32x16xbf16> to vector<16x16xbf16>
    %cst_94 = arith.constant dense<0.000000e+00> : vector<16x16xf32>
    %366 = tpu.matmul %364, %365, %cst_94 {dimension_numbers = #tpu.dot_dimension_numbers<[1], [1], [0], [0], [0, 0, 1, 0], [], []>} : vector<16x16xbf16>, vector<16x16xbf16>, vector<16x16xf32> -> vector<16x16xf32>
    %cst_95 = arith.constant dense<0xFF800000> : vector<16xf32>
    %367 = vector.multi_reduction <maximumf>, %366, %cst_95 [1] : vector<16x16xf32> to vector<16xf32>
    %368 = vector.shape_cast %367 : vector<16xf32> to vector<16x1xf32>
    %369 = vector.broadcast %368 : vector<16x1xf32> to vector<16x16xf32>
    %370 = arith.subf %366, %369 : vector<16x16xf32>
    %371 = math.exp %370 : vector<16x16xf32>
    %cst_96 = arith.constant dense<0.000000e+00> : vector<16xf32>
    %372 = vector.multi_reduction <add>, %371, %cst_96 [1] : vector<16x16xf32> to vector<16xf32>
    %373 = vector.shape_cast %372 : vector<16xf32> to vector<16x1xf32>
    %374 = tpu.reciprocal %373 {approx = true} : vector<16x1xf32> -> vector<16x1xf32>
    %375 = arith.truncf %371 : vector<16x16xf32> to vector<16x16xbf16>
    %376 = vector.extract_strided_slice %345 {offsets = [16, 0], sizes = [16, 16], strides = [1, 1]} : vector<32x16xbf16> to vector<16x16xbf16>
    %cst_97 = arith.constant dense<0.000000e+00> : vector<16x16xf32>
    %377 = tpu.matmul %375, %376, %cst_97 {dimension_numbers = #tpu.dot_dimension_numbers<[1], [0], [0], [1], [0, 0, 1, 1], [], []>} : vector<16x16xbf16>, vector<16x16xbf16>, vector<16x16xf32> -> vector<16x16xf32>
    %378 = vector.broadcast %374 : vector<16x1xf32> to vector<16x16xf32>
    %379 = arith.mulf %377, %378 : vector<16x16xf32>
    %380 = arith.truncf %379 : vector<16x16xf32> to vector<16x16xbf16>
    %c16_98 = arith.constant 16 : index
    %c112_99 = arith.constant 112 : index
    %381 = vector.load %arg9[%c16_98, %c112_99] : memref<32x128xbf16, #tpu.memory_space<vmem>>, vector<16x16xbf16>
    tpu.vector_store %arg9[%c16_98, %c112_99], %380 {strides = array<i32>} : memref<32x128xbf16, #tpu.memory_space<vmem>>, vector<16x16xbf16>,
    %c0_100 = arith.constant 0 : index
    %c0_101 = arith.constant 0 : index
    %382 = vector.load %arg9[%c0_100, %c0_101] : memref<32x128xbf16, #tpu.memory_space<vmem>>, vector<32x128xbf16>
    %c0_102 = arith.constant 0 : index
    %c0_103 = arith.constant 0 : index
    %383 = vector.load %arg4[%c0_102, %c0_103] : memref<128x128xbf16, #tpu.memory_space<vmem>>, vector<128x128xbf16>
    %cst_104 = arith.constant dense<0.000000e+00> : vector<32x128xf32>
    %384 = tpu.matmul %382, %383, %cst_104 {dimension_numbers = #tpu.dot_dimension_numbers<[1], [0], [0], [1], [0, 0, 1, 1], [], []>} : vector<32x128xbf16>, vector<128x128xbf16>, vector<32x128xf32> -> vector<32x128xf32>
    %c0_105 = arith.constant 0 : index
    %c0_106 = arith.constant 0 : index
    %385 = vector.load %arg5[%c0_105, %c0_106] : memref<1x128xf32, #tpu.memory_space<vmem>>, vector<1x128xf32>
    %386 = vector.broadcast %385 : vector<1x128xf32> to vector<32x128xf32>
    %387 = arith.addf %384, %386 : vector<32x128xf32>
    %388 = vector.shape_cast %387 : vector<32x128xf32> to vector<2x16x128xf32>
    %c0_107 = arith.constant 0 : index
    %c0_108 = arith.constant 0 : index
    %c0_109 = arith.constant 0 : index
    %389 = vector.load %arg8[%c0_107, %c0_108, %c0_109] : memref<2x16x128xf32, #tpu.memory_space<vmem>>, vector<2x16x128xf32>
    tpu.vector_store %arg8[%c0_107, %c0_108, %c0_109], %388 {strides = array<i32>} : memref<2x16x128xf32, #tpu.memory_space<vmem>>, vector<2x16x128xf32>,
    return
  }
  func.func @transform_0(%arg0: i32) -> (i32, i32, i32) {
    %c0_i32 = arith.constant 0 : i32
    %c0_i32_0 = arith.constant 0 : i32
    %c0_i32_1 = arith.constant 0 : i32
    return %arg0, %c0_i32, %c0_i32_0 : i32, i32, i32
  }
  func.func @transform_1(%arg0: i32) -> (i32, i32) {
    %c0_i32 = arith.constant 0 : i32
    %c0_i32_0 = arith.constant 0 : i32
    %c0_i32_1 = arith.constant 0 : i32
    return %c0_i32, %c0_i32_0 : i32, i32
  }
  func.func @transform_2(%arg0: i32) -> (i32, i32) {
    %c0_i32 = arith.constant 0 : i32
    %c0_i32_0 = arith.constant 0 : i32
    %c0_i32_1 = arith.constant 0 : i32
    return %c0_i32, %c0_i32_0 : i32, i32
  }
  func.func @transform_3(%arg0: i32) -> (i32, i32) {
    %c0_i32 = arith.constant 0 : i32
    %c0_i32_0 = arith.constant 0 : i32
    %c0_i32_1 = arith.constant 0 : i32
    return %c0_i32, %c0_i32_0 : i32, i32
  }
  func.func @transform_4(%arg0: i32) -> (i32, i32) {
    %c0_i32 = arith.constant 0 : i32
    %c0_i32_0 = arith.constant 0 : i32
    %c0_i32_1 = arith.constant 0 : i32
    return %c0_i32, %c0_i32_0 : i32, i32
  }
  func.func @transform_5(%arg0: i32) -> (i32, i32) {
    %c0_i32 = arith.constant 0 : i32
    %c0_i32_0 = arith.constant 0 : i32
    %c0_i32_1 = arith.constant 0 : i32
    return %c0_i32, %c0_i32_0 : i32, i32
  }
  func.func @transform_6(%arg0: i32) -> (i32, i32) {
    %c0_i32 = arith.constant 0 : i32
    %c0_i32_0 = arith.constant 0 : i32
    %c0_i32_1 = arith.constant 0 : i32
    return %c0_i32, %c0_i32_0 : i32, i32
  }
  func.func @transform_7(%arg0: i32) -> (i32, i32, i32) {
    %c0_i32 = arith.constant 0 : i32
    %c0_i32_0 = arith.constant 0 : i32
    %c0_i32_1 = arith.constant 0 : i32
    return %arg0, %c0_i32, %c0_i32_0 : i32, i32, i32
  }
}

</mosaic_0001>

<bundles_post_ra>
// kernel: tpu_custom_call.1
= control target key start
LH: loop header
LB: loop body
LE: loop exit
PB: predicated region body
PF: predicated region fallthrough
CT: control target
= control target key end

     0   :  { %s4896_s0 = inlined_call_operand.hbm [shape: f32[4,16,128], index: 0, kind: input, shape index: {}]   ;;  %s4897_s1 = inlined_call_operand.hbm [shape: bf16[128,384], index: 1, kind: input, shape index: {}]   ;;  %s4898_s2 = inlined_call_operand.hbm [shape: f32[1,384], index: 2, kind: input, shape index: {}]   ;;  %s4899_s3 = inlined_call_operand.hbm [shape: bf16[128,128], index: 3, kind: input, shape index: {}]   ;;  %s4900_s4 = inlined_call_operand.vmem [shape: f32[1,128], index: 4, kind: input, shape index: {}]   ;;  %s4901_s5 = inlined_call_operand.hbm [shape: f32[32,128], index: 5, kind: input, shape index: {}]   ;;  %s4902_s6 = inlined_call_operand.hbm [shape: f32[32,128], index: 6, kind: input, shape index: {}]   ;;  %s4903_s7 = inlined_call_operand.hbm [shape: f32[4,16,128], index: 7, kind: output, shape index: {}]  }
   0x1   :  { %4906 = sst [smem:[#allocation20_spill]] %s4897_s1 }
   0x2   :  { %12 = vsyncpa [#allocation4], 0 }
   0x3   :  { %14 = vsyncpa [#allocation4 + $0x1], 0 }
   0x4   :  { %15 = vsyncpa [#allocation7], 0 }
   0x5   :  { %16 = vsyncpa [#allocation10], 0 }
   0x6   :  { %17 = vsyncpa [#allocation13], 0 }
   0x7   :  { %18 = vsyncpa [#allocation5], 0 }
   0x8   :  { %20 = vsyncpa [#allocation5 + $0x1], 0  ;;  %s3831_s24 = smov 0   ;;  %s3833_s25 = smov 0  }
   0x9   :  { %s3835_s26 = smov 0   ;;  %s3837_s27 = smov 0  }
   0xa LB: > { %s4907_s1 = sld [smem:[#allocation20_spill]]  ;;  %s3855_s8 = sadd.s32 4294967295, %s3762_s27   ;;  %s3762_s27 = sphi %s3837_s27, %s4920_s27   ;;  %s3758_s26 = sphi %s3835_s26, %s4919_s26   ;;  %s3754_s25 = sphi %s3833_s25, %s4918_s25   ;;  %s3750_s24 = sphi %s3831_s24, %s4917_s24  }
   0xb   : > { %p2745_p0 = scmp.ge.s32.totalorder %s3762_s27, 1  ;;  %p47_p1 = scmp.eq.s32.totalorder %s3855_s8, 0 }
   0xc   : > { %p209_p2 = scmp.lt.s32.totalorder %s3762_s27, 3  ;;  %s3764_s10 = smov [#allocation6]  }
   0xd   : > { %s222_s11 = sshll.u32 %s3764_s10, 4  ;;  %s246_s14 = sshll.u32 %s4899_s3, 4  ;;  %s223_s11 = int_to_ptr.vmem [resolvable:$true] %s222_s11  ;;  %s247_s14 = int_to_ptr.hbm [resolvable:$true] %s246_s14 }
   0xe   : > { %p3860_p3 = pnand %p2745_p0, %p209_p2  ;;  %s3765_s16 = smov [#allocation9]  }
   0xf   : > { %s248_s17 = sshll.u32 %s3765_s16, 4  ;;  %s3766_s18 = smov 192   ;;  %s249_s17 = int_to_ptr.vmem [resolvable:$true] %s248_s17 }
  0x10   : > { %s220_s30 = sshll.u32 %s4907_s1, 4  ;;  %p3000_p4 = pneg %p3860_p3  ;;  %s221_s30 = int_to_ptr.hbm [resolvable:$true] %s220_s30 }
  0x11   : > { %s3767_s19 = smov 12   ;;  %s3768_s20 = smov 64  }
  0x12   : > { %p3872_p6 = pnand %p3000_p4, %p47_p1  ;;  %s3769_s21 = smov 4  }
  0x13   : > { %s235_s28 = sshll.u32 %s4898_s2, 4  ;;  %s3770_s29 = smov [#allocation8]   ;;  %s236_s28 = int_to_ptr.hbm [resolvable:$true] %s235_s28 }
  0x14   : > { %3003 = dma.hbm_to_vmem [thread:$0]  (!%p3872_p6), %s221_s30, 3072, %s223_s11, [#allocation7], %s3766_s18, %s3766_s18, %s3767_s19  }
  0x15   : > { %3009 = dma.hbm_to_vmem [thread:$0]  (!%p3872_p6), %s247_s14, 1024, %s249_s17, [#allocation10], %s3768_s20, %s3768_s20, %s3769_s21  }
  0x16   : > { %s237_s10 = sshll.u32 %s3770_s29, 4  ;;  %s263_s30 = sshll.u32 %s4901_s5, 4  ;;  %s238_s10 = int_to_ptr.vmem [resolvable:$true] %s237_s10  ;;  %s264_s30 = int_to_ptr.hbm [resolvable:$true] %s263_s30 }
  0x17   : > { %3006 = dma.hbm_to_vmem [thread:$0]  (!%p3872_p6), %s236_s28, 48, %s238_s10, [#allocation7]  }
  0x18   : > { %s3771_s11 = smov [#allocation11]   ;;  %s4904_s16 = smov 128  }
  0x19   : > { %s265_s14 = sshll.u32 %s3771_s11, 4  ;;  %s4905_s17 = smov 8   ;;  %s266_s14 = int_to_ptr.vmem [resolvable:$true] %s265_s14 }
  0x1a   : > { %3012 = dma.hbm_to_vmem [thread:$0]  (!%p3872_p6), %s264_s30, 512, %s266_s14, [#allocation10], %s4904_s16, %s4904_s16, %s4905_s17  }
  0x1b   : > { %s277_s20 = sshll.u32 %s4902_s6, 4  ;;  %s3774_s21 = smov [#allocation12]   ;;  %s278_s20 = int_to_ptr.hbm [resolvable:$true] %s277_s20 }
  0x1c   : > { %s279_s22 = sshll.u32 %s3774_s21, 4  ;;  %s2744_s23 = sadd.s32 4294967294, %s3762_s27   ;;  %s280_s22 = int_to_ptr.vmem [resolvable:$true] %s279_s22 }
  0x1d   : > { %3015 = dma.hbm_to_vmem [thread:$0]  (!%p3872_p6), %s278_s20, 512, %s280_s22, [#allocation13], %s4904_s16, %s4904_s16, %s4905_s17  }
  0x1e   : > { %s3903_s28 = sadd.s32 1, %s3762_s27   ;;  %s33_s29 = sadd.s32 1, %s3758_s26 }
  0x1f   : > { %s30_s10 = ssub.s32 %s3762_s27, %s3903_s28  ;;  %p40_p7 = scmp.ne.s32.totalorder %s3758_s26, %s3754_s25 }
  0x20   : > { %p31_p8 = scmp.eq.s32.totalorder %s30_s10, 0  ;;  %p41_p9 = scmp.eq.s32.totalorder %s3762_s27, 0 }
  0x21   : > { %p46_p10 = scmp.ne.s32.totalorder %s3754_s25, %s3750_s24  ;;  %p196_p11 = scmp.eq.s32.totalorder %s3855_s8, 1 }
  0x22   : > { %s3915_s12 = scalar_select %p31_p8, %s3758_s26, %s33_s29  }
  0x23   : > { %p3919_p12 = por %p47_p1, %p46_p10  ;;  %p3923_p13 = por %p196_p11, %p40_p7 }
  0x24   : > { %p202_p0 = scmp.eq.s32.totalorder %s2744_s23, 1  ;;  %p42_p2 = por %p41_p9, %p40_p7 }
  0x25   : > { %s293_s30 = sand.u32 1, %s3758_s26   ;;  %p3029_p6 = scmp.lt.s32.totalorder %s3762_s27, 2 }
  0x26   : > { %p3928_p4 = por %p202_p0, %p46_p10  ;;  %s2752_s14 = sshll.u32 %s293_s30, 5 }
  0x27   : > { %s2939_s18 = sshll.u32 %s3762_s27, 5  ;;  %s297_s29 = scalar_lea.vmem [#allocation3], %s2752_s14 }
  0x28   : > { %s303_s21 = scalar_lea.hbm %s4896_s0, %s2939_s18  ;;  %s306_s10 = sshll.u32 %s297_s29, 4  ;;  %s307_s10 = int_to_ptr.vmem [resolvable:$true] %s306_s10 }
  0x29   : > { %s304_s22 = sshll.u32 %s303_s21, 4  ;;  %p3937_p8 = pnand %p3029_p6, %p42_p2  ;;  %s305_s22 = int_to_ptr.hbm [resolvable:$true] %s304_s22 }
  0x2a   : > { %s294_s16 = scalar_lea.sflag [#allocation4], %s293_s30  ;;  %s3654_s17 = sshra.s32 %s305_s22, 4  ;;  %s3655_s17 = int_to_ptr.hbm [resolvable:$true] %s3654_s17 }
  0x2b   : > { %s3656_s1 = scalar_lea.hbm %s3655_s17, 32  ;;  %p3658_p9 = pneg %p3937_p8 }
  0x2c   : > { %p3657_p7 = scmp.ne.s32.totalorder %s3655_s17, %s3656_s1  ;;  %s3661_s14 = scalar_lea.hbm %s4896_s0, 64 }
  0x2d   : > { %p3662_p0 = scmp.lt.s32.totalorder %s3655_s17, %s4896_s0  ;;  %p3663_p2 = scmp.lt.s32.totalorder %s3661_s14, %s3656_s1 }
  0x2e   : > { %p3659_p10 = pnand %p3658_p9, %p3657_p7 }
  0x2f   : > { %p3664_p6 = por %p3663_p2, %p3662_p0 }
  0x30   : > { %p3660_p11 = pneg %p3659_p10 }
  0x32   : > { %p3665_p5 = pnand %p3664_p6, %p3660_p11 }
  0x34   : > { %3668 = shalt.err (!%p3665_p5)
}
  0x35   : > { %s4914_s30 = smov 8   ;;  %s4915_s29 = smov 128  }
  0x36   : > { %3019 = dma.hbm_to_vmem [thread:$0]  (!%p3937_p8), %s305_s22, 512, %s307_s10, %s294_s16, %s4915_s29, %s4915_s29, %s4914_s30  }
  0x37   : > { %318 = sbr.rel (%p3860_p3) target bundleno = 1763 (0x6e3), region = 48  ;;  %s3957_s18 = sand.u32 (!%p3860_p3), 1, %s3754_s25  }
  0x38   : > { %s2757_s1 = sshll.u32 (!%p3860_p3), %s3957_s18, 5  ;;  %s321_s17 = scalar_lea.sflag (!%p3860_p3), [#allocation4], %s3957_s18 }
  0x39   : > { %s3963_s19 = scalar_lea.vmem (!%p3860_p3), [#allocation3], %s2757_s1 }
  0x3c   : > { %3729 = dma.done.wait (%p3919_p12), %s321_s17, 512  }
  0x3d   : > { %3731 = vsyncadd (%p3919_p12), %s321_s17, 4294966784 }
  0x3e   : > { %3733 = dma.done.wait (%p47_p1), [#allocation7], 3120  }
  0x3f   : > { %3735 = vsyncadd (%p47_p1), [#allocation7], 4294964176 }
  0x40   : > { %3737 = dma.done.wait (%p47_p1), [#allocation10], 1536  }
  0x41   : > { %3739 = vsyncadd (%p47_p1), [#allocation10], 4294965760 }
  0x42   : > { %3741 = dma.done.wait (%p47_p1), [#allocation13], 512  }
  0x43   : > { %3743 = vsyncadd (%p47_p1), [#allocation13], 4294966784  ;;  %v2850_v0 = vld [vmem:[#allocation6 + $0xa8] sm:$0xf]  ;;  %v2962_v1 = vld [vmem:[#allocation6 + $0xb0] sm:$0xf0] }
  0x44   : > { %v2838_v2 = vld [vmem:[#allocation6 + $0x90] sm:$0xf]  ;;  %v2851_v3 = vor.u32 %v2962_v1, %v2850_v0  ;;  %v2959_v4 = vld [vmem:[#allocation6 + $0x98] sm:$0xf0]  ;;  %v2826_v6 = vld [vmem:[#allocation6 + $0x78] sm:$0xf] }
  0x45   : > { %v2839_v5 = vor.u32 %v2959_v4, %v2838_v2  ;;  %v2956_v7 = vld [vmem:[#allocation6 + $0x80] sm:$0xf0]  ;;  %v2814_v9 = vld [vmem:[#allocation6 + $0x60] sm:$0xf]  ;;  %v2953_v10 = vld [vmem:[#allocation6 + $0x68] sm:$0xf0] }
  0x46   : > { %558 = vmatpush.bf16.msra.mxu1 %v2851_v3  ;;  %v2827_v8 = vor.u32 %v2956_v7, %v2826_v6  ;;  %v2815_v11 = vor.u32 %v2953_v10, %v2814_v9  ;;  %v2802_v12 = vld [vmem:[#allocation6 + $0x48] sm:$0xf]  ;;  %v2950_v13 = vld [vmem:[#allocation6 + $0x50] sm:$0xf0]  ;;  %v2790_v15 = vld [vmem:[#allocation6 + $0x30] sm:$0xf] }
  0x47   : > { %v2803_v14 = vor.u32 %v2950_v13, %v2802_v12  ;;  %v2947_v16 = vld [vmem:[#allocation6 + $0x38] sm:$0xf0]  ;;  %v2778_v18 = vld [vmem:[#allocation6 + $0x18] sm:$0xf]  ;;  %v2944_v19 = vld [vmem:[#allocation6 + $0x20] sm:$0xf0] }
  0x48   : > { %v2791_v17 = vor.u32 %v2947_v16, %v2790_v15  ;;  %v2779_v20 = vor.u32 %v2944_v19, %v2778_v18  ;;  %v2766_v21 = vld [vmem:[#allocation6] sm:$0xf]  ;;  %v2941_v22 = vld [vmem:[#allocation6 + $0x8] sm:$0xf0]  ;;  %v2852_v24 = vld [vmem:[#allocation6 + $0xb4] sm:$0xf0] }
  0x49   : > { %v2961_v23 = vld [vmem:[#allocation6 + $0xac] sm:$0xf]  ;;  %v2767_v25 = vor.u32 %v2941_v22, %v2766_v21  ;;  %v384_v26 = vld [vmem:[%s3963_s19] sm:$0xff]  ;;  %v2958_v29 = vld [vmem:[#allocation6 + $0x94] sm:$0xf]  ;;  %s3775_s9 = smov 64  }
  0x4a   : > { %559 = vmatpush.bf16.msra.mxu1 %v2839_v5  ;;  %v385_v27 = vld [vmem:[%s3963_s19 + $0x8] sm:$0xff]  ;;  %v2855_v28 = vor.u32 %v2961_v23, %v2852_v24  ;;  %v2840_v30 = vld [vmem:[#allocation6 + $0x9c] sm:$0xf0]  ;;  %v2955_v33 = vld [vmem:[#allocation6 + $0x7c] sm:$0xf]  ;;  %s3776_s16 = smov 72  }
  0x4b   : > { %v3983_v31 = vpack.c.bf16 %v385_v27, %v384_v26  ;;  %v2843_v32 = vor.u32 %v2958_v29, %v2840_v30  ;;  %v2828_v34 = vld [vmem:[#allocation6 + $0x84] sm:$0xf0]  ;;  %v2952_v36 = vld [vmem:[#allocation6 + $0x64] sm:$0xf]  ;;  %v2816_v37 = vld [vmem:[#allocation6 + $0x6c] sm:$0xf0] }
  0x4c   : > { %v2831_v35 = vor.u32 %v2955_v33, %v2828_v34  ;;  %v2819_v38 = vor.u32 %v2952_v36, %v2816_v37  ;;  %v2949_v39 = vld [vmem:[#allocation6 + $0x4c] sm:$0xf]  ;;  %v2804_v40 = vld [vmem:[#allocation6 + $0x54] sm:$0xf0]  ;;  %v386_v41 = vld [vmem:[%s3963_s19 + $0x10] sm:$0xff]  ;;  %s3777_s15 = smov 112  }
  0x4d   : > { %v387_v42 = vld [vmem:[%s3963_s19 + $0x18] sm:$0xff]  ;;  %v2807_v43 = vor.u32 %v2949_v39, %v2804_v40  ;;  %v2946_v44 = vld [vmem:[#allocation6 + $0x34] sm:$0xf]  ;;  %v2792_v45 = vld [vmem:[#allocation6 + $0x3c] sm:$0xf0]  ;;  %s3778_s22 = smov 120  }
  0x4e   : > { %560 = vmatpush.bf16.msra.mxu1 %v2827_v8  ;;  %v389_v46 = vpack.c.bf16 %v387_v42, %v386_v41  ;;  %v2795_v47 = vor.u32 %v2946_v44, %v2792_v45  ;;  %v2943_v48 = vld [vmem:[#allocation6 + $0x1c] sm:$0xf]  ;;  %v2780_v49 = vld [vmem:[#allocation6 + $0x24] sm:$0xf0]  ;;  %v2940_v51 = vld [vmem:[#allocation6 + $0x4] sm:$0xf] }
  0x4f   : > { %v2783_v50 = vor.u32 %v2943_v48, %v2780_v49  ;;  %v2768_v52 = vld [vmem:[#allocation6 + $0xc] sm:$0xf0]  ;;  %v2963_v55 = vld [vmem:[#allocation6 + $0xb8] sm:$0xf0]  ;;  %v2846_v57 = vld [vmem:[#allocation6 + $0x98] sm:$0xf] }
  0x50   : > { %v2771_v53 = vor.u32 %v2940_v51, %v2768_v52  ;;  %v2858_v54 = vld [vmem:[#allocation6 + $0xb0] sm:$0xf]  ;;  %v2960_v58 = vld [vmem:[#allocation6 + $0xa0] sm:$0xf0]  ;;  %v2834_v60 = vld [vmem:[#allocation6 + $0x80] sm:$0xf] }
  0x51   : > { %v2859_v56 = vor.u32 %v2963_v55, %v2858_v54  ;;  %v2847_v59 = vor.u32 %v2960_v58, %v2846_v57  ;;  %v2957_v61 = vld [vmem:[#allocation6 + $0x88] sm:$0xf0]  ;;  %v2822_v63 = vld [vmem:[#allocation6 + $0x68] sm:$0xf]  ;;  %v2954_v0 = vld [vmem:[#allocation6 + $0x70] sm:$0xf0] }
  0x52   : > { %561 = vmatpush.bf16.msra.mxu1 %v2815_v11  ;;  %v2835_v62 = vor.u32 %v2957_v61, %v2834_v60  ;;  %v2823_v1 = vor.u32 %v2954_v0, %v2822_v63  ;;  %v2810_v2 = vld [vmem:[#allocation6 + $0x50] sm:$0xf]  ;;  %v2951_v3 = vld [vmem:[#allocation6 + $0x58] sm:$0xf0]  ;;  %v2798_v5 = vld [vmem:[#allocation6 + $0x38] sm:$0xf] }
  0x53   : > { %596 = vmatpush.bf16.msra.mxu2 %v2859_v56  ;;  %v2811_v4 = vor.u32 %v2951_v3, %v2810_v2  ;;  %v2948_v6 = vld [vmem:[#allocation6 + $0x40] sm:$0xf0]  ;;  %v2786_v8 = vld [vmem:[#allocation6 + $0x20] sm:$0xf]  ;;  %v2945_v9 = vld [vmem:[#allocation6 + $0x28] sm:$0xf0] }
  0x54   : > { %v2799_v7 = vor.u32 %v2948_v6, %v2798_v5  ;;  %v2787_v10 = vor.u32 %v2945_v9, %v2786_v8  ;;  %v3989_v11 = vld [vmem:[#allocation8] sm:$0x7]  ;;  %v2774_v12 = vld [vmem:[#allocation6 + $0x8] sm:$0xf]  ;;  %v2942_v13 = vld [vmem:[#allocation6 + $0x10] sm:$0xf0] }
  0x55   : > { %v424_v15 = vperm.slane %v3989_v11, 0  ;;  %v425_v23 = vperm.slane %v3989_v11, 1  ;;  %v618_v33 = vld [vmem:[#allocation11 + $0x18] sm:$0xff]  ;;  %v619_v39 = vld [vmem:[#allocation12] sm:$0xff]  ;;  %v616_v42 = vld [vmem:[#allocation11 + $0x8] sm:$0xff]  ;;  %s3779_s10 = smov 48  }
  0x56   : > { %562 = vmatpush.bf16.msra.mxu1 %v2803_v14  ;;  %v2775_v14 = vor.u32 %v2942_v13, %v2774_v12  ;;  %v615_v41 = vld [vmem:[#allocation11] sm:$0xff]  ;;  %v622_v51 = vld [vmem:[#allocation12 + $0x18] sm:$0xff]  ;;  %v4011_v54 = vld [vmem:[#allocation11 + $0x10] sm:$0xff]  ;;  %s3780_s23 = smov 96   ;;  %s3781_s14 = smov 56   ;;  %vm683_vm0 = vcmask 64512  }
  0x57   : > { %597 = vmatpush.bf16.msra.mxu2 %v2847_v59  ;;  %v4013_v56 = vld [vmem:[#allocation12 + $0x10] sm:$0xff]  ;;  %s3782_s20 = smov 104   ;;  %s3783_s21 = smov 40   ;;  %vm726_vm1 = vcmask 130048   ;;  %vm795_vm2 = vcmask 125952   ;;  %vm1025_vm3 = vcmask 257152  }
  0x58   : > { %s3784_s30 = smov 88   ;;  %s3785_s29 = smov 32   ;;  %vm1260_vm4 = vcmask 388352   ;;  %vm1495_vm5 = vcmask 519552   ;;  %vm1730_vm6 = vcmask 650752   ;;  %vm1965_vm7 = vcmask 781952  }
  0x59   : > { %s3786_s17 = smov 24   ;;  %s3787_s19 = smov 80   ;;  %vm2200_vm8 = vcmask 913152   ;;  %vm2411_vm9 = vcmask 1044352  }
  0x5a   : > { %563 = vmatpush.bf16.msra.mxu1 %v2791_v17 }
  0x5b   : > { %598 = vmatpush.bf16.msra.mxu2 %v2835_v62 }
  0x5e   : > { %564 = vmatpush.bf16.msra.mxu1 %v2779_v20 }
  0x5f   : > { %599 = vmatpush.bf16.msra.mxu2 %v2823_v1 }
  0x62   : > { %565 = vmatpush.bf16.msra.mxu1 %v2767_v25 }
  0x63   : > { %600 = vmatpush.bf16.msra.mxu2 %v2811_v4  ;;  %v426_v4 = vperm.slane %v3989_v11, 2 }
  0x65   : > { %566 = vmatmul.bf16.vlgmr.msra.gmra.mxu1 %v3983_v31 }
  0x66   : > { %577 = vmatpush.bf16.msrb.mxu1 %v2855_v28 }
  0x67   : > { %601 = vmatpush.bf16.msra.mxu2 %v2799_v7 }
  0x6a   : > { %578 = vmatpush.bf16.msrb.mxu1 %v2843_v32 }
  0x6b   : > { %602 = vmatpush.bf16.msra.mxu2 %v2787_v10 }
  0x6e   : > { %579 = vmatpush.bf16.msrb.mxu1 %v2831_v35 }
  0x6f   : > { %603 = vmatpush.bf16.msra.mxu2 %v2775_v14 }
  0x72   : > { %580 = vmatpush.bf16.msrb.mxu1 %v2819_v38  ;;  %604 = vmatmul.bf16.vlgmr.msra.gmra.mxu2 %v3983_v31 }
  0x75   : > { %571 = vmatmul.bf16.gmra.mxu1 %v389_v46 }
  0x76   : > { %581 = vmatpush.bf16.msrb.mxu1 %v2807_v43  ;;  %v620_v43 = vld [vmem:[#allocation12 + $0x8] sm:$0xff] }
  0x7a   : > { %582 = vmatpush.bf16.msrb.mxu1 %v2795_v47 }
  0x7e   : > { %583 = vmatpush.bf16.msrb.mxu1 %v2783_v50 }
  0x82   : > { %584 = vmatpush.bf16.msrb.mxu1 %v2771_v53  ;;  %609 = vmatmul.bf16.gmra.mxu2 %v389_v46 }
  0x85   : > { %585 = vmatmul.bf16.vlgmr.msrb.gmra.mxu1 %v3983_v31 }
  0x95   : > { %590 = vmatmul.bf16.gmra.mxu1 %v389_v46 }
  0xe2   : > { %v567_v16 = vpop.f32.mrf.mxu1 }
  0xe3   : > { %v568_v17 = vadd.f32 %v567_v16, %v424_v15 }
  0xe5   : > { %627 = vrot.lane.b32.xlu1 %v568_v17, %s3775_s9  ;;  %v623_v0 = vmul.f32 %v615_v41, %v568_v17 }
  0xea   : > { %v569_v18 = vpop.f32.mrf.mxu1 }
  0xeb   : > { %v570_v19 = vadd.f32 %v569_v18, %v424_v15 }
  0xed   : > { %629 = vrot.lane.b32.xlu1 %v570_v19, %s3775_s9  ;;  %v624_v58 = vmul.f32 %v616_v42, %v570_v19 }
  0xf2   : > { %v572_v20 = vpop.f32.mrf.mxu1 }
  0xf3   : > { %v573_v29 = vadd.f32 %v572_v20, %v424_v15 }
  0xf5   : > { %v605_v36 = vpop.f32.mrf.mxu2  ;;  %v625_v61 = vmul.f32 %v4011_v54, %v573_v29 }
  0xf6   : > { %v606_v9 = vadd.f32 %v605_v36, %v426_v4 }
  0xf8   : > { %v663_v13 = vpack.c.bf16 %v606_v9, %v606_v9 }
  0xfa   : > { %v574_v21 = vpop.f32.mrf.mxu1  ;;  %v770_v17 = vunpack.c.l.b16 %v663_v13 }
  0xfb   : > { %v575_v22 = vadd.f32 %v574_v21, %v424_v15 }
  0xfd   : > { %633 = vrot.lane.b32.xlu1 %v575_v22, %s3775_s9  ;;  %v607_v45 = vpop.f32.mrf.mxu2  ;;  %v626_v62 = vmul.f32 %v618_v33, %v575_v22 }
  0xfe   : > { %v608_v10 = vadd.f32 %v607_v45, %v426_v4 }
 0x100   : > { %v664_v14 = vpack.c.bf16 %v608_v10, %v608_v10 }
 0x102   : > { %v586_v24 = vpop.f32.mrf.mxu1  ;;  %v771_v18 = vunpack.c.l.b16 %v664_v14 }
 0x103   : > { %v587_v25 = vadd.f32 %v586_v24, %v425_v23 }
 0x104   : > { %v4052_v21 = vpack.c.b16 %v771_v18, %v770_v17 }
 0x105   : > { %647 = vrot.lane.b32.xlu0 %v587_v25, %s3775_s9  ;;  %v643_v46 = vmul.f32 %v615_v41, %v587_v25  ;;  %v610_v2 = vpop.f32.mrf.mxu2 }
 0x106   : > { %v611_v19 = vadd.f32 %v610_v2, %v426_v4 }
 0x108   : > { %v665_v22 = vpack.c.bf16 %v611_v19, %v611_v19 }
 0x10a   : > { %v588_v26 = vpop.f32.mrf.mxu1  ;;  %v851_v24 = vunpack.c.l.b16 %v665_v22 }
 0x10b   : > { %v589_v27 = vadd.f32 %v588_v26, %v425_v23 }
 0x10d   : > { %649 = vrot.lane.b32.xlu0 %v589_v27, %s3775_s9  ;;  %v644_v47 = vmul.f32 %v616_v42, %v589_v27  ;;  %v612_v16 = vpop.f32.mrf.mxu2 }
 0x10e   : > { %v613_v20 = vadd.f32 %v612_v16, %v426_v4 }
 0x112   : > { %v591_v28 = vpop.f32.mrf.mxu1 }
 0x113   : > { %v3999_v30 = vadd.f32 %v591_v28, %v425_v23 }
 0x115   : > { %631 = vrot.lane.b32.xlu0 %v573_v29, %s3775_s9 }
 0x11a   : > { %v593_v31 = vpop.f32.mrf.mxu1 }
 0x11b   : > { %v594_v32 = vadd.f32 %v593_v31, %v425_v23  ;;  %v666_v23 = vpack.c.bf16 %v613_v20, %v613_v20 }
 0x11d   : > { %v646_v34 = vmul.f32 %v618_v33, %v594_v32  ;;  %653 = vrot.lane.b32.xlu0 %v594_v32, %s3775_s9  ;;  %v852_v25 = vunpack.c.l.b16 %v666_v23 }
 0x11f   : > { %v4060_v26 = vpack.c.b16 %v852_v25, %v851_v24 }
 0x157   : > { %v628_v35 = vpop.permute.xlu1 %627 }
 0x158   : > { %v635_v59 = vmul.f32 %v628_v35, %v619_v39 }
 0x15a   : > { %v4028_v6 = vadd.f32 %v635_v59, %v623_v0 }
 0x15f   : > { %v630_v38 = vpop.permute.xlu1 %629 }
 0x160   : > { %v636_v55 = vmul.f32 %v630_v38, %v620_v43 }
 0x162   : > { %v4021_v1 = vadd.f32 %v636_v55, %v624_v58 }
 0x164   : > { %v4036_v8 = vpack.i.bf16 %v4021_v1, %v4028_v6 }
 0x16f   : > { %v634_v52 = vpop.permute.xlu1 %633 }
 0x170   : > { %v638_v57 = vmul.f32 %v634_v52, %v622_v51 }
 0x172   : > { %v4023_v3 = vadd.f32 %v638_v57, %v626_v62 }
 0x177   : > { %v648_v37 = vpop.permute.xlu0 %647 }
 0x178   : > { %v655_v40 = vmul.f32 %v648_v37, %v619_v39 }
 0x17a   : > { %v4003_v49 = vadd.f32 %v655_v40, %v643_v46 }
 0x17f   : > { %v650_v44 = vpop.permute.xlu0 %649 }
 0x180   : > { %v656_v48 = vmul.f32 %v650_v44, %v620_v43 }
 0x182   : > { %v4005_v50 = vadd.f32 %v656_v48, %v644_v47 }
 0x184   : > { %v4009_v53 = vpack.i.bf16 %v4005_v50, %v4003_v49 }
 0x186   : > { %3096 = vrot.lane.b32.xlu2 %v4009_v53, %s3776_s16  ;;  %3116 = vrot.lane.b32.xlu0 %v4009_v53, %s3775_s9 }
 0x187   : > { %v632_v60 = vpop.permute.xlu0 %631 }
 0x188   : > { %v637_v63 = vmul.f32 %v632_v60, %v4013_v56 }
 0x18a   : > { %v4026_v5 = vadd.f32 %v637_v63, %v625_v61 }
 0x18c   : > { %v4032_v7 = vpack.i.bf16 %v4023_v3, %v4026_v5 }
 0x18e   : > { %3136 = vrot.lane.b32.xlu0 %v4032_v7, %s3775_s9  ;;  %3106 = vrot.lane.b32.xlu1 %v4032_v7, %s3776_s16 }
 0x18f   : > { %3101 = vrot.lane.b32.xlu2 %v4036_v8, %s3776_s16  ;;  %v654_v11 = vpop.permute.xlu0 %653 }
 0x190   : > { %v658_v12 = vmul.f32 %v654_v11, %v622_v51 }
 0x192   : > { %v4044_v15 = vadd.f32 %v658_v12, %v646_v34 }
 0x196   : > { %3146 = vrot.lane.b32.xlu0 %v4032_v7, %s3777_s15  ;;  %3121 = vrot.lane.b32.xlu1 %v4036_v8, %s3778_s22 }
 0x197   : > { %651 = vrot.lane.b32.xlu2 %v3999_v30, %s3775_s9 }
 0x19e   : > { %3166 = vrot.lane.b32.xlu0 %v4036_v8, %s3779_s10  ;;  %993 = vrot.lane.b32.xlu1 %v4052_v21, %s3777_s15 }
 0x19f   : > { %3111 = vrot.lane.b32.xlu2 %v4009_v53, %s3778_s22 }
 0x1a6   : > { %3176 = vrot.lane.b32.xlu0 %v4032_v7, %s3779_s10  ;;  %1079 = vrot.lane.b32.xlu1 %v4060_v26, %s3777_s15 }
 0x1a7   : > { %3126 = vrot.lane.b32.xlu2 %v4036_v8, %s3775_s9 }
 0x1ae   : > { %3181 = vrot.lane.b32.xlu0 %v4036_v8, %s3780_s23  ;;  %3141 = vrot.lane.b32.xlu1 %v4036_v8, %s3777_s15 }
 0x1af   : > { %3131 = vrot.lane.b32.xlu2 %v4032_v7, %s3778_s22 }
 0x1b6   : > { %3191 = vrot.lane.b32.xlu0 %v4032_v7, %s3780_s23  ;;  %3156 = vrot.lane.b32.xlu1 %v4032_v7, %s3781_s14 }
 0x1b7   : > { %3151 = vrot.lane.b32.xlu2 %v4036_v8, %s3781_s14 }
 0x1be   : > { %3196 = vrot.lane.b32.xlu0 %v4009_v53, %s3777_s15  ;;  %3161 = vrot.lane.b32.xlu1 %v4036_v8, %s3782_s20 }
 0x1c6   : > { %3211 = vrot.lane.b32.xlu0 %v4009_v53, %s3779_s10  ;;  %3171 = vrot.lane.b32.xlu1 %v4032_v7, %s3782_s20 }
 0x1ce   : > { %3221 = vrot.lane.b32.xlu0 %v4009_v53, %s3783_s21  ;;  %3186 = vrot.lane.b32.xlu1 %v4036_v8, %s3783_s21 }
 0x1d6   : > { %3201 = vrot.lane.b32.xlu1 %v4009_v53, %s3781_s14 }
 0x1de   : > { %3206 = vrot.lane.b32.xlu1 %v4009_v53, %s3782_s20 }
 0x1e0   : > { %v4096_v27 = vpop.permute.xlu2 %3096 }
 0x1e1   : > { %v3099_v28 = vunpack.i.h.bf16 %v4096_v27  ;;  %v3098_v29 = vunpack.i.l.bf16 %v4096_v27 }
 0x1e3   : > { %v708_v31 = vsel %vm683_vm0, %v4003_v49, %v3098_v29  ;;  %v709_v32 = vsel %vm683_vm0, %v4005_v50, %v3099_v28  ;;  %v645_v50 = vmul.f32 %v4011_v54, %v3999_v30 }
 0x1e4   : > { %v712_v33 = vpack.c.bf16 %v708_v31, %v708_v31  ;;  %v713_v34 = vpack.c.bf16 %v709_v32, %v709_v32 }
 0x1e6   : > { %3216 = vrot.lane.b32.xlu1 %v4009_v53, %s3780_s23  ;;  %v723_v35 = vunpack.c.l.b16 %v712_v33  ;;  %v724_v36 = vunpack.c.l.b16 %v713_v34 }
 0x1e8   : > { %v725_v37 = vpack.c.b16 %v724_v36, %v723_v35 }
 0x1e9   : > { %v4110_v38 = vpop.permute.xlu2 %3101 }
 0x1ea   : > { %v3104_v39 = vunpack.i.h.bf16 %v4110_v38  ;;  %v3103_v40 = vunpack.i.l.bf16 %v4110_v38  ;;  %v731_v41 = vsel %vm726_vm1, %v725_v37, 0 }
 0x1eb   : > { %740 = vmatpush.bf16.xpose.msra.mxu3 %v731_v41 }
 0x1ec   : > { %v684_v42 = vsel %vm683_vm0, %v4028_v6, %v3103_v40  ;;  %v685_v43 = vsel %vm683_vm0, %v4021_v1, %v3104_v39 }
 0x1ed   : > { %v688_v44 = vpack.c.bf16 %v684_v42, %v684_v42  ;;  %v689_v45 = vpack.c.bf16 %v685_v43, %v685_v43 }
 0x1ef   : > { %v718_v46 = vunpack.c.l.b16 %v688_v44  ;;  %v719_v47 = vunpack.c.l.b16 %v689_v45 }
 0x1f1   : > { %v652_v48 = vpop.permute.xlu2 %651  ;;  %v720_v49 = vpack.c.b16 %v719_v47, %v718_v46 }
 0x1f2   : > { %v657_v51 = vmul.f32 %v652_v48, %v4013_v56 }
 0x1f3   : > { %784 = vmatpush.bf16.msrb.mxu3 %v4052_v21 }
 0x1f4   : > { %2860 = vmatmul.msk.bf16.vlgmr.msra.gmra.mxu3 %vm726_vm1, %v720_v49  ;;  %v4128_v52 = vadd.f32 %v657_v51, %v645_v50 }
 0x1f6   : > { %v4132_v55 = vpack.i.bf16 %v4044_v15, %v4128_v52 }
 0x1f8   : > { %3241 = vrot.lane.b32.xlu2 %v4132_v55, %s3777_s15  ;;  %3231 = vrot.lane.b32.xlu1 %v4132_v55, %s3778_s22  ;;  %v3117_v57 = vpop.permute.xlu0 %3116  ;;  %s380_s22 = scalar_lea.vmem [#allocation14], %s2757_s1  ;;  %s2607_s1 = scalar_lea.sflag [#allocation5], %s3957_s18 }
 0x1f9   : > { %3226 = vrot.lane.b32.xlu0 %v4132_v55, %s3776_s16  ;;  %v3119_v30 = vunpack.i.h.bf16 %v3117_v57  ;;  %v3118_v54 = vunpack.i.l.bf16 %v3117_v57  ;;  %v3112_v56 = vpop.permute.xlu2 %3111  ;;  %s3788_s16 = smov 16  }
 0x1fa   : > { %v3114_v58 = vunpack.i.h.bf16 %v3112_v56  ;;  %v3113_v59 = vunpack.i.l.bf16 %v3112_v56 }
 0x1fc   : > { %v934_v60 = vsel %vm683_vm0, %v3113_v59, %v3118_v54  ;;  %v935_v61 = vsel %vm683_vm0, %v3114_v58, %v3119_v30 }
 0x1fd   : > { %v938_v62 = vpack.c.bf16 %v934_v60, %v934_v60  ;;  %v939_v63 = vpack.c.bf16 %v935_v61, %v935_v61 }
 0x1ff   : > { %v949_v0 = vunpack.c.l.b16 %v938_v62  ;;  %v950_v1 = vunpack.c.l.b16 %v939_v63 }
 0x200   : > { %3261 = vrot.lane.b32.xlu2 %v4132_v55, %s3780_s23  ;;  %3251 = vrot.lane.b32.xlu1 %v4132_v55, %s3782_s20  ;;  %v4146_v2 = vpop.permute.xlu1 %3106  ;;  %v4151_v9 = vpop.permute.xlu0 %3136 }
 0x201   : > { %3236 = vrot.lane.b32.xlu0 %v4132_v55, %s3775_s9  ;;  %v951_v4 = vpack.c.b16 %v950_v1, %v949_v0  ;;  %v3127_v10 = vpop.permute.xlu2 %3126 }
 0x202   : > { %v3129_v12 = vunpack.i.h.bf16 %v3127_v10  ;;  %v3128_v13 = vunpack.i.l.bf16 %v3127_v10 }
 0x203   : > { %v956_v6 = vsel %vm726_vm1, %v951_v4, 0 }
 0x204   : > { %965 = vmatpush.bf16.xpose.msra.mxu0 %v956_v6 }
 0x208   : > { %3266 = vrot.lane.b32.xlu1 %v4132_v55, %s3783_s21  ;;  %v3122_v11 = vpop.permute.xlu1 %3121  ;;  %v4159_v24 = vpop.permute.xlu0 %3146 }
 0x209   : > { %3246 = vrot.lane.b32.xlu0 %v4132_v55, %s3781_s14  ;;  %v3124_v14 = vunpack.i.h.bf16 %v3122_v11  ;;  %v3123_v16 = vunpack.i.l.bf16 %v3122_v11 }
 0x20b   : > { %v902_v17 = vsel %vm683_vm0, %v3123_v16, %v3128_v13  ;;  %v903_v18 = vsel %vm683_vm0, %v3124_v14, %v3129_v12 }
 0x20c   : > { %v906_v19 = vpack.c.bf16 %v902_v17, %v902_v17  ;;  %v907_v20 = vpack.c.bf16 %v903_v18, %v903_v18 }
 0x20e   : > { %v944_v22 = vunpack.c.l.b16 %v906_v19  ;;  %v945_v23 = vunpack.c.l.b16 %v907_v20 }
 0x210   : > { %v994_v25 = vpop.permute.xlu1 %993  ;;  %v946_v31 = vpack.c.b16 %v945_v23, %v944_v22  ;;  %v4168_v33 = vpop.permute.xlu0 %3166 }
 0x211   : > { %3256 = vrot.lane.b32.xlu0 %v4132_v55, %s3779_s10  ;;  %1006 = vmatpush.bf16.msrb.mxu0 %v994_v25 }
 0x212   : > { %2864 = vmatmul.msk.bf16.vlgmr.msra.gmra.mxu0 %vm726_vm1, %v946_v31 }
 0x218   : > { %v4164_v32 = vpop.permute.xlu1 %1079  ;;  %v4174_v35 = vpop.permute.xlu0 %3176 }
 0x219   : > { %3276 = vrot.lane.b32.xlu0 %v4009_v53, %s3784_s30 }
 0x220   : > { %v4170_v34 = vpop.permute.xlu1 %3141  ;;  %v4180_v37 = vpop.permute.xlu0 %3181 }
 0x221   : > { %3291 = vrot.lane.b32.xlu0 %v4132_v55, %s3785_s29 }
 0x228   : > { %v4176_v36 = vpop.permute.xlu1 %3156  ;;  %v4186_v42 = vpop.permute.xlu0 %3191 }
 0x229   : > { %3306 = vrot.lane.b32.xlu0 %v4032_v7, %s3784_s30 }
 0x230   : > { %v4182_v41 = vpop.permute.xlu1 %3161  ;;  %v3197_v45 = vpop.permute.xlu0 %3196 }
 0x231   : > { %3321 = vrot.lane.b32.xlu0 %v4009_v53, %s3786_s17  ;;  %v3199_v47 = vunpack.i.h.bf16 %v3197_v45  ;;  %v3198_v48 = vunpack.i.l.bf16 %v3197_v45 }
 0x238   : > { %v4188_v43 = vpop.permute.xlu1 %3171  ;;  %v3212_v30 = vpop.permute.xlu0 %3211 }
 0x239   : > { %3336 = vrot.lane.b32.xlu0 %v4036_v8, %s3787_s19  ;;  %v3214_v62 = vunpack.i.h.bf16 %v3212_v30  ;;  %v3213_v63 = vunpack.i.l.bf16 %v3212_v30 }
 0x240   : > { %v4192_v44 = vpop.permute.xlu1 %3186  ;;  %v3222_v13 = vpop.permute.xlu0 %3221 }
 0x241   : > { %3351 = vrot.lane.b32.xlu0 %v4032_v7, %s3786_s17  ;;  %v3224_v19 = vunpack.i.h.bf16 %v3222_v13  ;;  %v3223_v20 = vunpack.i.l.bf16 %v3222_v13 }
 0x248   : > { %v3202_v46 = vpop.permute.xlu1 %3201 }
 0x249   : > { %3366 = vrot.lane.b32.xlu0 %v4036_v8, %s3788_s16  ;;  %v3204_v49 = vunpack.i.h.bf16 %v3202_v46  ;;  %v3203_v50 = vunpack.i.l.bf16 %v3202_v46 }
 0x24b   : > { %v1170_v51 = vsel %vm683_vm0, %v3199_v47, %v3204_v49  ;;  %v1169_v57 = vsel %vm683_vm0, %v3198_v48, %v3203_v50  ;;  %v3132_v50 = vpop.permute.xlu2 %3131 }
 0x24c   : > { %v1174_v54 = vpack.c.bf16 %v1170_v51, %v1170_v51  ;;  %v1173_v56 = vpack.c.bf16 %v1169_v57, %v1169_v57 }
 0x24e   : > { %v1185_v58 = vunpack.c.l.b16 %v1174_v54  ;;  %v1184_v59 = vunpack.c.l.b16 %v1173_v56 }
 0x250   : > { %v3207_v60 = vpop.permute.xlu1 %3206  ;;  %v1186_v61 = vpack.c.b16 %v1185_v58, %v1184_v59 }
 0x251   : > { %1314 = vrot.lane.b32.xlu0 %v4060_v26, %s3780_s23  ;;  %v3209_v0 = vunpack.i.h.bf16 %v3207_v60  ;;  %v3208_v1 = vunpack.i.l.bf16 %v3207_v60 }
 0x252   : > { %v1191_v4 = vsel %vm726_vm1, %v1186_v61, 0 }
 0x253   : > { %v1405_v6 = vsel %vm683_vm0, %v3209_v0, %v3214_v62  ;;  %v1404_v10 = vsel %vm683_vm0, %v3208_v1, %v3213_v63  ;;  %1200 = vmatpush.bf16.xpose.msra.mxu0 %v1191_v4  ;;  %v4227_v56 = vpop.permute.xlu2 %3151  ;;  %v3134_v0 = vunpack.i.h.bf16 %v3132_v50  ;;  %v3139_v1 = vunpack.i.h.bf16 %v4151_v9 }
 0x254   : > { %v1409_v11 = vpack.c.bf16 %v1405_v6, %v1405_v6  ;;  %v1408_v12 = vpack.c.bf16 %v1404_v10, %v1404_v10  ;;  %v3133_v4 = vunpack.i.l.bf16 %v3132_v50 }
 0x256   : > { %v4205_v14 = vunpack.c.l.b16 %v1409_v11  ;;  %v4207_v16 = vunpack.c.l.b16 %v1408_v12 }
 0x258   : > { %v3217_v17 = vpop.permute.xlu1 %3216  ;;  %v1421_v18 = vpack.c.b16 %v4205_v14, %v4207_v16 }
 0x259   : > { %1784 = vrot.lane.b32.xlu0 %v4060_v26, %s3775_s9  ;;  %v3219_v22 = vunpack.i.h.bf16 %v3217_v17  ;;  %v3218_v23 = vunpack.i.l.bf16 %v3217_v17 }
 0x25b   : > { %v1640_v25 = vsel %vm683_vm0, %v3219_v22, %v3224_v19  ;;  %v1639_v31 = vsel %vm683_vm0, %v3218_v23, %v3223_v20  ;;  %v3242_v22 = vpop.permute.xlu2 %3241 }
 0x25c   : > { %v1644_v45 = vpack.c.bf16 %v1640_v25, %v1640_v25  ;;  %v1643_v46 = vpack.c.bf16 %v1639_v31, %v1639_v31 }
 0x25e   : > { %v4215_v47 = vunpack.c.l.b16 %v1644_v45  ;;  %v4217_v48 = vunpack.c.l.b16 %v1643_v46 }
 0x260   : > { %v1656_v49 = vpack.c.b16 %v4215_v47, %v4217_v48 }
 0x261   : > { %1933 = vrot.lane.b32.xlu0 %v4052_v21, %s3779_s10 }
 0x26a   : > { %v3232_v51 = vpop.permute.xlu1 %3231 }
 0x26b   : > { %v4223_v57 = vpop.permute.xlu0 %3226  ;;  %v3234_v11 = vunpack.i.h.bf16 %v3232_v51  ;;  %v3233_v12 = vunpack.i.l.bf16 %v3232_v51 }
 0x26c   : > { %v3229_v30 = vunpack.i.h.bf16 %v4223_v57  ;;  %v3228_v54 = vunpack.i.l.bf16 %v4223_v57 }
 0x26e   : > { %v711_v58 = vsel %vm683_vm0, %v4044_v15, %v3229_v30  ;;  %v710_v59 = vsel %vm683_vm0, %v4128_v52, %v3228_v54  ;;  %v3138_v15 = vunpack.i.l.bf16 %v4151_v9  ;;  %v905_v52 = vsel %vm683_vm0, %v3134_v0, %v3139_v1 }
 0x26f   : > { %v715_v60 = vpack.c.bf16 %v711_v58, %v711_v58  ;;  %v714_v61 = vpack.c.bf16 %v710_v59, %v710_v59  ;;  %v909_v59 = vpack.c.bf16 %v905_v52, %v905_v52  ;;  %v3243_v0 = vunpack.i.l.bf16 %v3242_v22  ;;  %v3262_v52 = vpop.permute.xlu2 %3261 }
 0x270   : > { %v904_v45 = vsel %vm683_vm0, %v3133_v4, %v3138_v15 }
 0x271   : > { %v806_v62 = vunpack.c.l.b16 %v715_v60  ;;  %v805_v63 = vunpack.c.l.b16 %v714_v61  ;;  %v908_v60 = vpack.c.bf16 %v904_v45, %v904_v45  ;;  %v3159_v45 = vunpack.i.h.bf16 %v4176_v36 }
 0x272   : > { %v3252_v19 = vpop.permute.xlu1 %3251 }
 0x273   : > { %v3237_v6 = vpop.permute.xlu0 %3236  ;;  %v807_v10 = vpack.c.b16 %v806_v62, %v805_v63  ;;  %v3244_v63 = vunpack.i.h.bf16 %v3242_v22  ;;  %v1030_v4 = vunpack.c.l.b16 %v908_v60 }
 0x274   : > { %v3239_v13 = vunpack.i.h.bf16 %v3237_v6  ;;  %v3238_v17 = vunpack.i.l.bf16 %v3237_v6 }
 0x275   : > { %v812_v20 = vsel %vm726_vm1, %v807_v10, 0 }
 0x276   : > { %821 = vmatpush.bf16.xpose.msra.mxu3 %v812_v20  ;;  %v936_v25 = vsel %vm683_vm0, %v3233_v12, %v3238_v17  ;;  %v937_v31 = vsel %vm683_vm0, %v3234_v11, %v3239_v13  ;;  %v1031_v11 = vunpack.c.l.b16 %v909_v59 }
 0x277   : > { %v4241_v23 = vpop.f32.mrf.mxu3  ;;  %v940_v50 = vpack.c.bf16 %v936_v25, %v936_v25  ;;  %v941_v9 = vpack.c.bf16 %v937_v31, %v937_v31 }
 0x278   : > { %v747_v46 = vsel %vm726_vm1, %v4241_v23, -inf }
 0x279   : > { %748 = vmax.xlane.f32.xlu1 %v747_v46  ;;  %v1035_v51 = vunpack.c.l.b16 %v940_v50  ;;  %v1036_v58 = vunpack.c.l.b16 %v941_v9  ;;  %v1032_v50 = vpack.c.b16 %v1031_v11, %v1030_v4  ;;  %v3158_v9 = vunpack.i.l.bf16 %v4176_v36 }
 0x27a   : > { %v3267_v17 = vpop.permute.xlu1 %3266 }
 0x27b   : > { %v3247_v61 = vpop.permute.xlu0 %3246  ;;  %v1037_v62 = vpack.c.b16 %v1036_v58, %v1035_v51  ;;  %v3269_v22 = vunpack.i.h.bf16 %v3267_v17  ;;  %v3268_v46 = vunpack.i.l.bf16 %v3267_v17  ;;  %v3264_v51 = vunpack.i.h.bf16 %v3262_v52 }
 0x27c   : > { %v3249_v1 = vunpack.i.h.bf16 %v3247_v61  ;;  %v3248_v6 = vunpack.i.l.bf16 %v3247_v61  ;;  %v3263_v58 = vunpack.i.l.bf16 %v3262_v52  ;;  %v3254_v61 = vunpack.i.h.bf16 %v3252_v19 }
 0x27d   : > { %v1042_v10 = vsel %vm726_vm1, %v1037_v62, 0  ;;  %v3253_v62 = vunpack.i.l.bf16 %v3252_v19  ;;  %v1642_v36 = vsel %vm683_vm0, %v3264_v51, %v3269_v22 }
 0x27e   : > { %v1171_v12 = vsel %vm683_vm0, %v3243_v0, %v3248_v6  ;;  %v1172_v13 = vsel %vm683_vm0, %v3244_v63, %v3249_v1  ;;  %1051 = vmatpush.bf16.xpose.msrb.mxu2 %v1042_v10  ;;  %v3149_v1 = vunpack.i.h.bf16 %v4159_v24  ;;  %v3148_v6 = vunpack.i.l.bf16 %v4159_v24 }
 0x27f   : > { %v1175_v15 = vpack.c.bf16 %v1171_v12, %v1171_v12  ;;  %v1176_v20 = vpack.c.bf16 %v1172_v13, %v1172_v13  ;;  %v1641_v11 = vsel %vm683_vm0, %v3263_v58, %v3268_v46 }
 0x280   : > { %v1140_v17 = vsel %vm683_vm0, %v3149_v1, %v3159_v45  ;;  %v1645_v24 = vpack.c.bf16 %v1641_v11, %v1641_v11 }
 0x281   : > { %v1270_v25 = vunpack.c.l.b16 %v1175_v15  ;;  %v1271_v31 = vunpack.c.l.b16 %v1176_v20  ;;  %v1139_v15 = vsel %vm683_vm0, %v3148_v6, %v3158_v9  ;;  %v1646_v20 = vpack.c.bf16 %v1642_v36, %v1642_v36 }
 0x282   : > { %v1740_v58 = vunpack.c.l.b16 %v1645_v24  ;;  %v3179_v6 = vunpack.i.h.bf16 %v4174_v35 }
 0x283   : > { %v3257_v59 = vpop.permute.xlu0 %3256  ;;  %v1272_v60 = vpack.c.b16 %v1271_v31, %v1270_v25  ;;  %v1144_v31 = vpack.c.bf16 %v1140_v17, %v1140_v17  ;;  %v1741_v22 = vunpack.c.l.b16 %v1646_v20 }
 0x284   : > { %v3259_v63 = vunpack.i.h.bf16 %v3257_v59  ;;  %v3258_v0 = vunpack.i.l.bf16 %v3257_v59 }
 0x285   : > { %2866 = vmatmul.msk.bf16.vlgmr.msrb.gmra.mxu2 %vm726_vm1, %v1032_v50  ;;  %v1277_v10 = vsel %vm726_vm1, %v1272_v60, 0  ;;  %v1143_v50 = vpack.c.bf16 %v1139_v15, %v1139_v15  ;;  %v1266_v59 = vunpack.c.l.b16 %v1144_v31  ;;  %v1742_v45 = vpack.c.b16 %v1741_v22, %v1740_v58  ;;  %v4299_v15 = vpop.f32.mrf.mxu3 }
 0x286   : > { %v1407_v4 = vsel %vm683_vm0, %v3254_v61, %v3259_v63  ;;  %v1406_v12 = vsel %vm683_vm0, %v3253_v62, %v3258_v0  ;;  %1286 = vmatpush.bf16.xpose.msra.mxu2 %v1277_v10  ;;  %v3174_v63 = vunpack.i.h.bf16 %v4188_v43  ;;  %v3173_v0 = vunpack.i.l.bf16 %v4188_v43 }
 0x287   : > { %v1411_v19 = vpack.c.bf16 %v1407_v4, %v1407_v4  ;;  %v1410_v13 = vpack.c.bf16 %v1406_v12, %v1406_v12  ;;  %v1265_v60 = vunpack.c.l.b16 %v1143_v50  ;;  %v1747_v1 = vsel %vm726_vm1, %v1742_v45, 0 }
 0x288   : > { %v3178_v10 = vunpack.i.l.bf16 %v4174_v35  ;;  %v1375_v11 = vsel %vm683_vm0, %v3174_v63, %v3179_v6  ;;  %v750_v24 = vsel %vm726_vm1, %v4299_v15, -inf }
 0x289   : > { %v1506_v52 = vunpack.c.l.b16 %v1411_v19  ;;  %v1505_v25 = vunpack.c.l.b16 %v1410_v13  ;;  %v1267_v9 = vpack.c.b16 %v1266_v59, %v1265_v60  ;;  %v1379_v4 = vpack.c.bf16 %v1375_v11, %v1375_v11 }
 0x28a   : > { %v1374_v36 = vsel %vm683_vm0, %v3173_v0, %v3178_v10 }
 0x28b   : > { %v1507_v46 = vpack.c.b16 %v1506_v52, %v1505_v25  ;;  %v1378_v12 = vpack.c.bf16 %v1374_v36, %v1374_v36  ;;  %v1501_v19 = vunpack.c.l.b16 %v1379_v4  ;;  %v3194_v52 = vunpack.i.h.bf16 %v4186_v42 }
 0x28d   : > { %v1512_v51 = vsel %vm726_vm1, %v1507_v46, 0  ;;  %v1500_v13 = vunpack.c.l.b16 %v1378_v12 }
 0x28e   : > { %1521 = vmatpush.bf16.xpose.msrb.mxu2 %v1512_v51 }
 0x28f   : > { %v967_v61 = vpop.f32.mrf.mxu0  ;;  %v1502_v17 = vpack.c.b16 %v1501_v19, %v1500_v13  ;;  %v3277_v19 = vpop.permute.xlu0 %3276 }
 0x290   : > { %v972_v62 = vsel %vm726_vm1, %v967_v61, -inf }
 0x291   : > { %973 = vmax.xlane.f32.xlu2 %v972_v62 }
 0x292   : > { %3271 = vrot.lane.b32.xlu1 %v4032_v7, %s3783_s21  ;;  %s2620_s21 = sshll.u32 %s380_s22, 4  ;;  %s2621_s21 = int_to_ptr.vmem [resolvable:$true] %s2620_s21 }
 0x295   : > { %2870 = vmatmul.msk.bf16.vlgmr.msra.gmra.mxu2 %vm726_vm1, %v1267_v9 }
 0x296   : > { %1756 = vmatpush.bf16.xpose.msra.mxu2 %v1747_v1 }
 0x297   : > { %v969_v43 = vpop.f32.mrf.mxu0 }
 0x298   : > { %v975_v35 = vsel %vm726_vm1, %v969_v43, -inf }
 0x2a5   : > { %2874 = vmatmul.msk.bf16.vlgmr.msrb.gmra.mxu2 %vm726_vm1, %v1502_v17 }
 0x2a9   : > { %3281 = vrot.lane.b32.xlu2 %v4009_v53, %s3785_s29 }
 0x2b1   : > { %3296 = vrot.lane.b32.xlu2 %v4036_v8, %s3784_s30 }
 0x2b9   : > { %3311 = vrot.lane.b32.xlu2 %v4032_v7, %s3785_s29 }
 0x2bc   : > { %976 = vmax.xlane.f32.xlu1 %v975_v35  ;;  %v3144_v35 = vunpack.i.h.bf16 %v4170_v34 }
 0x2c1   : > { %3326 = vrot.lane.b32.xlu2 %v4132_v55, %s3787_s19 }
 0x2c9   : > { %3341 = vrot.lane.b32.xlu2 %v4036_v8, %s3786_s17 }
 0x2d1   : > { %3356 = vrot.lane.b32.xlu2 %v4009_v53, %s3788_s16 }
 0x2d5   : > { %3286 = vrot.lane.b32.xlu1 %v4132_v55, %s3784_s30 }
 0x2dd   : > { %3301 = vrot.lane.b32.xlu1 %v4036_v8, %s3785_s29 }
 0x2e5   : > { %3316 = vrot.lane.b32.xlu1 %v4009_v53, %s3787_s19  ;;  %v3193_v53 = vunpack.i.l.bf16 %v4186_v42 }
 0x2ec   : > { %v749_v20 = vpop.xlane.xlu1 %748 }
 0x2ed   : > { %3331 = vrot.lane.b32.xlu1 %v4132_v55, %s3786_s17  ;;  %v753_v0 = vsub.f32 %v4241_v23, %v749_v20 }
 0x2f5   : > { %3346 = vrot.lane.b32.xlu1 %v4032_v7, %s3787_s19 }
 0x2fa   : > { %751 = vmax.xlane.f32.xlu2 %v750_v24  ;;  %v3143_v24 = vunpack.i.l.bf16 %v4170_v34 }
 0x2fd   : > { %3361 = vrot.lane.b32.xlu1 %v4132_v55, %s3788_s16 }
 0x304   : > { %v3272_v8 = vpop.permute.xlu1 %3271  ;;  %v974_v62 = vpop.xlane.xlu2 %973 }
 0x305   : > { %v3274_v25 = vunpack.i.h.bf16 %v3272_v8  ;;  %v3273_v31 = vunpack.i.l.bf16 %v3272_v8  ;;  %1228 = vrot.lane.b32.xlu1 %v4052_v21, %s3780_s23  ;;  %v978_v45 = vsub.f32 %v967_v61, %v974_v62  ;;  %v755_v61 = vmul.f32 1.442695, %v753_v0 }
 0x307   : > { %v1610_v50 = vsel %vm683_vm0, %v3194_v52, %v3274_v25  ;;  %v1609_v46 = vsel %vm683_vm0, %v3193_v53, %v3273_v31  ;;  %v980_v63 = vmul.f32 1.442695, %v978_v45  ;;  %v3154_v52 = vunpack.i.h.bf16 %v4227_v56  ;;  %v3292_v25 = vpop.permute.xlu0 %3291 }
 0x308   : > { %v1614_v58 = vpack.c.bf16 %v1610_v50, %v1610_v50  ;;  %v1613_v22 = vpack.c.bf16 %v1609_v46, %v1609_v46  ;;  %v4311_v51 = vpop.f32.mrf.mxu2  ;;  %v3153_v53 = vunpack.i.l.bf16 %v4227_v56  ;;  %v1426_v31 = vsel %vm726_vm1, %v1421_v18, 0 }
 0x309   : > { %v1058_v60 = vsel %vm726_vm1, %v4311_v51, -inf  ;;  %3376 = vpow2.f32 %v980_v63  ;;  %v1138_v50 = vsel %vm683_vm0, %v3144_v35, %v3154_v52 }
 0x30a   : > { %v1736_v59 = vunpack.c.l.b16 %v1614_v58  ;;  %v1735_v55 = vunpack.c.l.b16 %v1613_v22  ;;  %1059 = vmax.xlane.f32.xlu0 %v1058_v60  ;;  %3378 = vpow2.f32 %v755_v61  ;;  %v1137_v34 = vsel %vm683_vm0, %v3143_v24, %v3153_v53 }
 0x30b   : > { %v1141_v56 = vpack.c.bf16 %v1137_v34, %v1137_v34  ;;  %v1142_v58 = vpack.c.bf16 %v1138_v50, %v1138_v50  ;;  %v3294_v60 = vunpack.i.h.bf16 %v3292_v25  ;;  %v3163_v24 = vunpack.i.l.bf16 %v4182_v41 }
 0x30c   : > { %v1737_v42 = vpack.c.b16 %v1736_v59, %v1735_v55  ;;  %v3282_v12 = vpop.permute.xlu2 %3281 }
 0x30d   : > { %1463 = vrot.lane.b32.xlu1 %v4052_v21, %s3787_s19  ;;  %v1179_v59 = vunpack.c.l.b16 %v1141_v56  ;;  %v1180_v55 = vunpack.c.l.b16 %v1142_v58  ;;  %v3168_v58 = vunpack.i.l.bf16 %v4168_v33 }
 0x30e   : > { %2878 = vmatmul.msk.bf16.vlgmr.msra.gmra.mxu2 %vm726_vm1, %v1737_v42  ;;  %v3293_v42 = vunpack.i.l.bf16 %v3292_v25  ;;  %v3279_v25 = vunpack.i.h.bf16 %v3277_v19 }
 0x30f   : > { %v3377_v10 = vpop.eup %3376  ;;  %v3307_v16 = vpop.permute.xlu0 %3306  ;;  %v1181_v61 = vpack.c.b16 %v1180_v55, %v1179_v59 }
 0x310   : > { %v4318_v9 = vpop.f32.mrf.mxu2  ;;  %v4332_v11 = vpop.eup %3378 }
 0x311   : > { %v759_v23 = vsel %vm726_vm1, %v4332_v11, 0.0  ;;  %v1061_v46 = vsel %vm726_vm1, %v4318_v9, -inf }
 0x312   : > { %3371 = vrot.lane.b32.xlu2 %v4032_v7, %s3788_s16  ;;  %v984_v7 = vsel %vm726_vm1, %v3377_v10, 0.0 }
 0x314   : > { %v4340_v20 = vpop.permute.xlu2 %3296 }
 0x315   : > { %1549 = vrot.lane.b32.xlu1 %v4060_v26, %s3787_s19 }
 0x317   : > { %v3322_v47 = vpop.permute.xlu0 %3321 }
 0x318   : > { %v4325_v1 = vpop.f32.mrf.mxu2 }
 0x319   : > { %v1293_v6 = vsel %vm726_vm1, %v4325_v1, -inf }
 0x31a   : > { %1294 = vmax.xlane.f32.xlu0 %v1293_v6  ;;  %1698 = vrot.lane.b32.xlu2 %v4052_v21, %s3775_s9 }
 0x31c   : > { %v3312_v14 = vpop.permute.xlu2 %3311 }
 0x31d   : > { %v3314_v45 = vunpack.i.h.bf16 %v3312_v14  ;;  %v3313_v63 = vunpack.i.l.bf16 %v3312_v14 }
 0x322   : > { %985 = vadd.xlane.f32.xlu0 %v984_v7  ;;  %v3309_v7 = vunpack.i.h.bf16 %v3307_v16 }
 0x324   : > { %v1845_v34 = vsel %vm683_vm0, %v3309_v7, %v3314_v45 }
 0x325   : > { %v1849_v55 = vpack.c.bf16 %v1845_v34, %v1845_v34  ;;  %v4389_v34 = vpop.permute.xlu0 %3336 }
 0x32a   : > { %760 = vadd.xlane.f32.xlu0 %v759_v23  ;;  %v3308_v23 = vunpack.i.l.bf16 %v3307_v16 }
 0x32c   : > { %v1844_v50 = vsel %vm683_vm0, %v3308_v23, %v3313_v63  ;;  %v3327_v63 = vpop.permute.xlu2 %3326 }
 0x32d   : > { %v1848_v14 = vpack.c.bf16 %v1844_v50, %v1844_v50  ;;  %v3324_v50 = vunpack.i.h.bf16 %v3322_v47 }
 0x32f   : > { %v977_v36 = vpop.xlane.xlu1 %976 }
 0x330   : > { %v979_v4 = vsub.f32 %v969_v43, %v977_v36  ;;  %v4345_v43 = vpop.f32.mrf.mxu2  ;;  %v3284_v36 = vunpack.i.h.bf16 %v3282_v12 }
 0x331   : > { %v1296_v22 = vsel %vm726_vm1, %v4345_v43, -inf }
 0x332   : > { %v982_v13 = vmul.f32 1.442695, %v979_v4  ;;  %v3283_v4 = vunpack.i.l.bf16 %v3282_v12  ;;  %v3169_v12 = vunpack.i.h.bf16 %v4168_v33 }
 0x334   : > { %3380 = vpow2.f32 %v982_v13 }
 0x338   : > { %v4358_v18 = vpop.f32.mrf.mxu2 }
 0x339   : > { %v1528_v53 = vsel %vm726_vm1, %v4358_v18, -inf }
 0x33a   : > { %v4336_v17 = vpop.eup %3380 }
 0x33b   : > { %v992_v8 = vpack.c.bf16 %v4336_v17, %v3377_v10  ;;  %v3164_v10 = vunpack.i.h.bf16 %v4182_v41  ;;  %v1661_v41 = vsel %vm726_vm1, %v1656_v49, 0 }
 0x33d   : > { %2865 = vmatmul.msk.bf16.vlgmr.msrb.gmra.mxu0 %vm726_vm1, %v992_v8  ;;  %v1373_v59 = vsel %vm683_vm0, %v3164_v10, %v3169_v12  ;;  %v3323_v12 = vunpack.i.l.bf16 %v3322_v47 }
 0x33e   : > { %1435 = vmatpush.bf16.xpose.msrb.mxu0 %v1426_v31  ;;  %v3278_v31 = vunpack.i.l.bf16 %v3277_v19  ;;  %v1875_v19 = vsel %vm683_vm0, %v3279_v25, %v3284_v36  ;;  %v1377_v45 = vpack.c.bf16 %v1373_v59, %v1373_v59  ;;  %v3189_v25 = vunpack.i.h.bf16 %v4192_v44 }
 0x33f   : > { %1062 = vmax.xlane.f32.xlu1 %v1061_v46  ;;  %v1879_v48 = vpack.c.bf16 %v1875_v19, %v1875_v19 }
 0x340   : > { %v1415_v36 = vunpack.c.l.b16 %v1377_v45 }
 0x341   : > { %v1890_v7 = vunpack.c.l.b16 %v1879_v48 }
 0x343   : > { %1297 = vmax.xlane.f32.xlu2 %v1296_v22  ;;  %v1874_v22 = vsel %vm683_vm0, %v3278_v31, %v3283_v4  ;;  %v3188_v31 = vunpack.i.l.bf16 %v4192_v44 }
 0x344   : > { %v1878_v49 = vpack.c.bf16 %v1874_v22, %v1874_v22 }
 0x346   : > { %v1889_v23 = vunpack.c.l.b16 %v1878_v49 }
 0x347   : > { %v3287_v62 = vpop.permute.xlu1 %3286 }
 0x348   : > { %v3289_v0 = vunpack.i.h.bf16 %v3287_v62  ;;  %v3288_v6 = vunpack.i.l.bf16 %v3287_v62  ;;  %v4381_v62 = vpop.f32.mrf.mxu2 }
 0x349   : > { %v1531_v10 = vsel %vm726_vm1, %v4381_v62, -inf }
 0x34a   : > { %v1877_v13 = vsel %vm683_vm0, %v3289_v0, %v3294_v60  ;;  %v1876_v35 = vsel %vm683_vm0, %v3288_v6, %v3293_v42  ;;  %v1372_v42 = vsel %vm683_vm0, %v3163_v24, %v3168_v58  ;;  %v1971_v6 = vunpack.c.l.b16 %v1849_v55 }
 0x34b   : > { %v1881_v8 = vpack.c.bf16 %v1877_v13, %v1877_v13  ;;  %v1880_v52 = vpack.c.bf16 %v1876_v35, %v1876_v35  ;;  %1529 = vmax.xlane.f32.xlu2 %v1528_v53  ;;  %v1376_v0 = vpack.c.bf16 %v1372_v42, %v1372_v42  ;;  %v1891_v24 = vpack.c.b16 %v1890_v7, %v1889_v23 }
 0x34d   : > { %v1976_v46 = vunpack.c.l.b16 %v1881_v8  ;;  %v1975_v56 = vunpack.c.l.b16 %v1880_v52  ;;  %2868 = vmatmul.msk.bf16.vlgmr.msra.gmra.mxu0 %vm726_vm1, %v1181_v61  ;;  %v1970_v61 = vunpack.c.l.b16 %v1848_v14  ;;  %v1414_v4 = vunpack.c.l.b16 %v1376_v0 }
 0x34e   : > { %1670 = vmatpush.bf16.xpose.msra.mxu0 %v1661_v41  ;;  %v3183_v41 = vunpack.i.l.bf16 %v4180_v37  ;;  %v1896_v58 = vsel %vm726_vm1, %v1891_v24, 0  ;;  %v3329_v14 = vunpack.i.h.bf16 %v3327_v63 }
 0x34f   : > { %v4378_v16 = vpop.permute.xlu1 %3301  ;;  %v1977_v60 = vpack.c.b16 %v1976_v46, %v1975_v56  ;;  %v1972_v13 = vpack.c.b16 %v1971_v6, %v1970_v61  ;;  %v1416_v53 = vpack.c.b16 %v1415_v36, %v1414_v4  ;;  %v4391_v46 = vpop.permute.xlu2 %3341  ;;  %v3184_v56 = vunpack.i.h.bf16 %v4180_v37 }
 0x350   : > { %v1607_v59 = vsel %vm683_vm0, %v3183_v41, %v3188_v31 }
 0x351   : > { %v1982_v33 = vsel %vm726_vm1, %v1977_v60, 0  ;;  %v1608_v44 = vsel %vm683_vm0, %v3184_v56, %v3189_v25  ;;  %v3328_v60 = vunpack.i.l.bf16 %v3327_v63  ;;  %v1611_v0 = vpack.c.bf16 %v1607_v59, %v1607_v59 }
 0x352   : > { %1991 = vmatpush.bf16.xpose.msrb.mxu2 %v1982_v33  ;;  %v1612_v45 = vpack.c.bf16 %v1608_v44, %v1608_v44  ;;  %v3304_v44 = vunpack.i.h.bf16 %v4378_v16 }
 0x353   : > { %1532 = vmax.xlane.f32.xlu2 %v1531_v10  ;;  %v3352_v10 = vpop.permute.xlu0 %3351  ;;  %v1649_v63 = vunpack.c.l.b16 %v1611_v0 }
 0x357   : > { %v3317_v35 = vpop.permute.xlu1 %3316 }
 0x358   : > { %v3319_v8 = vunpack.i.h.bf16 %v3317_v35  ;;  %v3318_v52 = vunpack.i.l.bf16 %v3317_v35  ;;  %v1650_v35 = vunpack.c.l.b16 %v1612_v45 }
 0x359   : > { %2882 = vmatmul.msk.bf16.vlgmr.msrb.gmra.mxu2 %vm726_vm1, %v1972_v13  ;;  %v3357_v13 = vpop.permute.xlu2 %3356 }
 0x35a   : > { %v2110_v19 = vsel %vm683_vm0, %v3319_v8, %v3324_v50  ;;  %v2109_v22 = vsel %vm683_vm0, %v3318_v52, %v3323_v12  ;;  %v3354_v52 = vunpack.i.h.bf16 %v3352_v10  ;;  %v3359_v56 = vunpack.i.h.bf16 %v3357_v13 }
 0x35b   : > { %v2114_v48 = vpack.c.bf16 %v2110_v19, %v2110_v19  ;;  %v2113_v37 = vpack.c.bf16 %v2109_v22, %v2109_v22  ;;  %v3358_v41 = vunpack.i.l.bf16 %v3357_v13  ;;  %v1651_v22 = vpack.c.b16 %v1650_v35, %v1649_v63 }
 0x35d   : > { %2872 = vmatmul.msk.bf16.vlgmr.msrb.gmra.mxu0 %vm726_vm1, %v1416_v53  ;;  %v2125_v7 = vunpack.c.l.b16 %v2114_v48  ;;  %v2124_v23 = vunpack.c.l.b16 %v2113_v37  ;;  %v3353_v53 = vunpack.i.l.bf16 %v3352_v10  ;;  %v3298_v37 = vunpack.i.l.bf16 %v4340_v20  ;;  %v4420_v10 = vpop.permute.xlu0 %3366 }
 0x35e   : > { %1905 = vmatpush.bf16.xpose.msrb.mxu0 %v1896_v58 }
 0x35f   : > { %v3332_v55 = vpop.permute.xlu1 %3331  ;;  %v2126_v12 = vpack.c.b16 %v2125_v7, %v2124_v23 }
 0x360   : > { %v3334_v42 = vunpack.i.h.bf16 %v3332_v55  ;;  %v3333_v47 = vunpack.i.l.bf16 %v3332_v55 }
 0x361   : > { %v2131_v48 = vsel %vm726_vm1, %v2126_v12, 0 }
 0x362   : > { %v2112_v49 = vsel %vm683_vm0, %v3329_v14, %v3334_v42  ;;  %v2111_v33 = vsel %vm683_vm0, %v3328_v60, %v3333_v47  ;;  %v3303_v14 = vunpack.i.l.bf16 %v4378_v16  ;;  %v3299_v60 = vunpack.i.h.bf16 %v4340_v20 }
 0x363   : > { %v2116_v6 = vpack.c.bf16 %v2112_v49, %v2112_v49  ;;  %v2115_v61 = vpack.c.bf16 %v2111_v33, %v2111_v33  ;;  %v2321_v49 = vsel %vm683_vm0, %v3099_v28, %v3359_v56  ;;  %v2320_v33 = vsel %vm683_vm0, %v3098_v29, %v3358_v41 }
 0x364   : > { %v1843_v45 = vsel %vm683_vm0, %v3299_v60, %v3304_v44  ;;  %v1842_v20 = vsel %vm683_vm0, %v3298_v37, %v3303_v14  ;;  %v2324_v28 = vpack.c.bf16 %v2320_v33, %v2320_v33 }
 0x365   : > { %v2211_v36 = vunpack.c.l.b16 %v2116_v6  ;;  %v2210_v4 = vunpack.c.l.b16 %v2115_v61  ;;  %v1847_v27 = vpack.c.bf16 %v1843_v45, %v1843_v45  ;;  %v1846_v13 = vpack.c.bf16 %v1842_v20, %v1842_v20 }
 0x366   : > { %v3338_v45 = vunpack.i.l.bf16 %v4389_v34 }
 0x367   : > { %v3347_v24 = vpop.permute.xlu1 %3346  ;;  %v2212_v8 = vpack.c.b16 %v2211_v36, %v2210_v4  ;;  %v2325_v36 = vpack.c.bf16 %v2321_v49, %v2321_v49  ;;  %v1884_v56 = vunpack.c.l.b16 %v1846_v13  ;;  %v3369_v13 = vunpack.i.h.bf16 %v4420_v10 }
 0x368   : > { %v3349_v25 = vunpack.i.h.bf16 %v3347_v24  ;;  %v3348_v31 = vunpack.i.l.bf16 %v3347_v24 }
 0x369   : > { %v2217_v50 = vsel %vm726_vm1, %v2212_v8, 0  ;;  %v2336_v24 = vunpack.c.l.b16 %v2325_v36  ;;  %v2335_v8 = vunpack.c.l.b16 %v2324_v28 }
 0x36a   : > { %v2080_v58 = vsel %vm683_vm0, %v3349_v25, %v3354_v52  ;;  %v2079_v19 = vsel %vm683_vm0, %v3348_v31, %v3353_v53  ;;  %2226 = vmatpush.bf16.xpose.msra.mxu2 %v2217_v50  ;;  %v3109_v25 = vunpack.i.h.bf16 %v4146_v2  ;;  %v3108_v31 = vunpack.i.l.bf16 %v4146_v2 }
 0x36b   : > { %v2084_v59 = vpack.c.bf16 %v2080_v58, %v2080_v58  ;;  %v2083_v55 = vpack.c.bf16 %v2079_v19, %v2079_v19  ;;  %v1885_v50 = vunpack.c.l.b16 %v1847_v27 }
 0x36d   : > { %v2206_v42 = vunpack.c.l.b16 %v2084_v59  ;;  %v2205_v47 = vunpack.c.l.b16 %v2083_v55  ;;  %2876 = vmatmul.msk.bf16.vlgmr.msra.gmra.mxu0 %vm726_vm1, %v1651_v22  ;;  %v752_v16 = vpop.xlane.xlu2 %751  ;;  %v2337_v59 = vpack.c.b16 %v2336_v24, %v2335_v8  ;;  %v4437_v55 = vpop.permute.xlu0 %1314  ;;  %v2301_v8 = vsel %vm683_vm0, %v3104_v39, %v3369_v13 }
 0x36e   : > { %2140 = vmatpush.bf16.xpose.msra.mxu0 %v2131_v48  ;;  %v754_v61 = vsub.f32 %v4299_v15, %v752_v16  ;;  %v3343_v48 = vunpack.i.l.bf16 %v4391_v46  ;;  %v3339_v16 = vunpack.i.h.bf16 %v4389_v34  ;;  %v987_v39 = vsel %vm726_vm1, %v4336_v17, 0.0 }
 0x36f   : > { %v2207_v0 = vpack.c.b16 %v2206_v42, %v2205_v47  ;;  %v3362_v6 = vpop.permute.xlu1 %3361  ;;  %v1886_v42 = vpack.c.b16 %v1885_v50, %v1884_v56  ;;  %v3344_v47 = vunpack.i.h.bf16 %v4391_v46  ;;  %v2342_v33 = vsel %vm726_vm1, %v2337_v59, 0 }
 0x370   : > { %v3364_v7 = vunpack.i.h.bf16 %v3362_v6  ;;  %v3363_v23 = vunpack.i.l.bf16 %v3362_v6  ;;  %v757_v4 = vmul.f32 1.442695, %v754_v61  ;;  %v686_v46 = vsel %vm683_vm0, %v4026_v5, %v3108_v31 }
 0x371   : > { %2886 = vmatmul.msk.bf16.vlgmr.msra.gmra.mxu2 %vm726_vm1, %v2207_v0  ;;  %v687_v0 = vsel %vm683_vm0, %v4023_v3, %v3109_v25  ;;  %v2078_v61 = vsel %vm683_vm0, %v3339_v16, %v3344_v47  ;;  %v2077_v20 = vsel %vm683_vm0, %v3338_v45, %v3343_v48 }
 0x372   : > { %v2323_v29 = vsel %vm683_vm0, %v3229_v30, %v3364_v7  ;;  %v2322_v15 = vsel %vm683_vm0, %v3228_v54, %v3363_v23  ;;  %3382 = vpow2.f32 %v757_v4  ;;  %v691_v7 = vpack.c.bf16 %v687_v0, %v687_v0 }
 0x373   : > { %v2327_v35 = vpack.c.bf16 %v2323_v29, %v2323_v29  ;;  %v2326_v63 = vpack.c.bf16 %v2322_v15, %v2322_v15  ;;  %v690_v23 = vpack.c.bf16 %v686_v46, %v686_v46  ;;  %v2082_v36 = vpack.c.bf16 %v2078_v61, %v2078_v61 }
 0x374   : > { %v2081_v34 = vpack.c.bf16 %v2077_v20, %v2077_v20  ;;  %v801_v4 = vunpack.c.l.b16 %v691_v7 }
 0x375   : > { %v2422_v52 = vunpack.c.l.b16 %v2327_v35  ;;  %v2421_v53 = vunpack.c.l.b16 %v2326_v63  ;;  %v3372_v12 = vpop.permute.xlu2 %3371  ;;  %v4456_v28 = vpop.permute.xlu0 %1784  ;;  %v800_v27 = vunpack.c.l.b16 %v690_v23  ;;  %v2120_v3 = vunpack.c.l.b16 %v2082_v36 }
 0x376   : > { %v3374_v41 = vunpack.i.h.bf16 %v3372_v12  ;;  %v3373_v57 = vunpack.i.l.bf16 %v3372_v12  ;;  %v2119_v29 = vunpack.c.l.b16 %v2081_v34  ;;  %v3368_v35 = vunpack.i.l.bf16 %v4420_v10 }
 0x377   : > { %v1229_v30 = vpop.permute.xlu1 %1228  ;;  %v2423_v58 = vpack.c.b16 %v2422_v52, %v2421_v53  ;;  %v802_v15 = vpack.c.b16 %v801_v4, %v800_v27 }
 0x378   : > { %1241 = vmatpush.bf16.msra.mxu1 %v1229_v30  ;;  %v4432_v54 = vpop.eup %3382  ;;  %v2303_v19 = vsel %vm683_vm0, %v3109_v25, %v3374_v41  ;;  %v2302_v22 = vsel %vm683_vm0, %v3108_v31, %v3373_v57  ;;  %v2121_v5 = vpack.c.b16 %v2120_v3, %v2119_v29  ;;  %v2300_v24 = vsel %vm683_vm0, %v3103_v40, %v3368_v35 }
 0x379   : > { %v2428_v44 = vsel %vm726_vm1, %v2423_v58, 0  ;;  %v2307_v2 = vpack.c.bf16 %v2303_v19, %v2303_v19  ;;  %v2306_v14 = vpack.c.bf16 %v2302_v22, %v2302_v22  ;;  %v767_v60 = vpack.c.bf16 %v4432_v54, %v4332_v11 }
 0x37a   : > { %2437 = vmatpush.bf16.xpose.msrb.mxu2 %v2428_v44  ;;  %v2304_v53 = vpack.c.bf16 %v2300_v24, %v2300_v24  ;;  %v2305_v25 = vpack.c.bf16 %v2301_v8, %v2301_v8  ;;  %v762_v41 = vsel %vm726_vm1, %v4432_v54, 0.0 }
 0x37b   : > { %v2417_v37 = vunpack.c.l.b16 %v2307_v2  ;;  %v2416_v49 = vunpack.c.l.b16 %v2306_v14  ;;  %2861 = vmatmul.msk.bf16.vlgmr.msrb.gmra.mxu3 %vm726_vm1, %v767_v60 }
 0x37c   : > { %865 = vmatpush.bf16.msrb.mxu3 %v4060_v26  ;;  %v2330_v31 = vunpack.c.l.b16 %v2304_v53  ;;  %v2331_v50 = vunpack.c.l.b16 %v2305_v25 }
 0x37d   : > { %2880 = vmatmul.msk.bf16.vlgmr.msrb.gmra.mxu0 %vm726_vm1, %v1886_v42  ;;  %v2418_v11 = vpack.c.b16 %v2417_v37, %v2416_v49  ;;  %v4463_v63 = vpop.permute.xlu0 %1933  ;;  %v4491_v17 = vpop.permute.xlu2 %1698 }
 0x37e   : > { %2351 = vmatpush.bf16.xpose.msrb.mxu0 %v2342_v33  ;;  %v2332_v40 = vpack.c.b16 %v2331_v50, %v2330_v31 }
 0x37f   : > { %v1464_v6 = vpop.permute.xlu1 %1463 }
 0x380   : > { %1476 = vmatpush.bf16.msrb.mxu1 %v1464_v6 }
 0x381   : > { %2890 = vmatmul.msk.bf16.vlgmr.msrb.gmra.mxu2 %vm726_vm1, %v2418_v11 }
 0x387   : > { %v4487_v57 = vpop.permute.xlu1 %1549 }
 0x38b   : > { %2862 = vmatmul.msk.bf16.vlgmr.msra.gmra.mxu3 %vm726_vm1, %v802_v15 }
 0x38c   : > { %1092 = vmatpush.bf16.msra.mxu3 %v4164_v32  ;;  %v1060_v32 = vpop.xlane.xlu0 %1059 }
 0x38d   : > { %2884 = vmatmul.msk.bf16.vlgmr.msra.gmra.mxu0 %vm726_vm1, %v2121_v5  ;;  %v1064_v12 = vsub.f32 %v4311_v51, %v1060_v32 }
 0x38f   : > { %v1066_v30 = vmul.f32 1.442695, %v1064_v12 }
 0x391   : > { %v4471_v52 = vpop.f32.mrf.mxu2  ;;  %3384 = vpow2.f32 %v1066_v30 }
 0x392   : > { %v1763_v10 = vsel %vm726_vm1, %v4471_v52, -inf }
 0x393   : > { %1764 = vmax.xlane.f32.xlu2 %v1763_v10 }
 0x394   : > { %v1295_v19 = vpop.xlane.xlu0 %1294 }
 0x395   : > { %v1299_v44 = vsub.f32 %v4325_v1, %v1295_v19 }
 0x397   : > { %v4485_v51 = vpop.eup %3384  ;;  %v1301_v14 = vmul.f32 1.442695, %v1299_v44 }
 0x398   : > { %v1070_v58 = vsel %vm726_vm1, %v4485_v51, 0.0 }
 0x399   : > { %v4476_v56 = vpop.f32.mrf.mxu2 }
 0x39a   : > { %v1766_v38 = vsel %vm726_vm1, %v4476_v56, -inf }
 0x39b   : > { %1767 = vmax.xlane.f32.xlu1 %v1766_v38  ;;  %988 = vadd.xlane.f32.xlu2 %v987_v39 }
 0x39d   : > { %2888 = vmatmul.msk.bf16.vlgmr.msrb.gmra.mxu0 %vm726_vm1, %v2332_v40 }
 0x3a3   : > { %763 = vadd.xlane.f32.xlu2 %v762_v41 }
 0x3ab   : > { %1071 = vadd.xlane.f32.xlu2 %v1070_v58 }
 0x3b2   : > { %v1063_v22 = vpop.xlane.xlu1 %1062 }
 0x3b3   : > { %v1065_v59 = vsub.f32 %v4318_v9, %v1063_v22 }
 0x3b5   : > { %v1068_v2 = vmul.f32 1.442695, %v1065_v59 }
 0x3b6   : > { %v1298_v54 = vpop.xlane.xlu2 %1297 }
 0x3b7   : > { %3386 = vpow2.f32 %v1068_v2  ;;  %v1300_v60 = vsub.f32 %v4345_v43, %v1298_v54  ;;  %v986_v43 = vpop.xlane.xlu0 %985 }
 0x3b8   : > { %3388 = vpow2.f32 %v1301_v14 }
 0x3b9   : > { %v1303_v42 = vmul.f32 1.442695, %v1300_v60 }
 0x3ba   : > { %v1008_v47 = vpop.f32.mrf.mxu0 }
 0x3bb   : > { %3390 = vpow2.f32 %v1303_v42 }
 0x3bc   : > { %3392 = vrcp.f32 %v986_v43 }
 0x3bd   : > { %v4496_v48 = vpop.eup %3386 }
 0x3be   : > { %v1078_v37 = vpack.c.bf16 %v4496_v48, %v4485_v51  ;;  %v1073_v1 = vsel %vm726_vm1, %v4496_v48, 0.0  ;;  %v1530_v9 = vpop.xlane.xlu2 %1529  ;;  %v4502_v49 = vpop.eup %3388 }
 0x3bf   : > { %1074 = vadd.xlane.f32.xlu0 %v1073_v1  ;;  %v1534_v11 = vsub.f32 %v4358_v18, %v1530_v9  ;;  %v761_v10 = vpop.xlane.xlu0 %760  ;;  %v1305_v51 = vsel %vm726_vm1, %v4502_v49, 0.0 }
 0x3c1   : > { %v4504_v33 = vpop.eup %3390  ;;  %v1536_v0 = vmul.f32 1.442695, %v1534_v11 }
 0x3c2   : > { %v4506_v16 = vpop.f32.mrf.mxu0  ;;  %v1313_v45 = vpack.c.bf16 %v4504_v33, %v4502_v49  ;;  %v3393_v7 = vpop.eup %3392 }
 0x3c3   : > { %3394 = vpow2.f32 %v1536_v0  ;;  %v1013_v23 = vmul.f32 %v3393_v7, %v1008_v47 }
 0x3c5   : > { %v1015_v34 = vpack.c.bf16 %v1013_v23, %v1013_v23 }
 0x3c6   : > { %v1533_v46 = vpop.xlane.xlu2 %1532 }
 0x3c7   : > { %v1535_v6 = vsub.f32 %v4381_v62, %v1533_v46 }
 0x3c9   : > { %v1538_v61 = vmul.f32 1.442695, %v1535_v6  ;;  %v4514_v36 = vpop.eup %3394 }
 0x3ca   : > { %v4512_v20 = vpop.f32.mrf.mxu0 }
 0x3cb   : > { %3396 = vpow2.f32 %v1538_v61  ;;  %v1207_v23 = vsel %vm726_vm1, %v4512_v20, -inf }
 0x3cc   : > { %3398 = vrcp.f32 %v761_v10 }
 0x3d1   : > { %v4516_v4 = vpop.eup %3396 }
 0x3d2   : > { %v4518_v27 = vpop.f32.mrf.mxu0  ;;  %v1548_v18 = vpack.c.bf16 %v4516_v4, %v4514_v36  ;;  %v3399_v32 = vpop.eup %3398 }
 0x3d3   : > { %1019 = vrot.lane.b32.xlu0 %v1015_v34, %s3788_s16  ;;  %v1210_v24 = vsel %vm726_vm1, %v4518_v27, -inf }
 0x3da   : > { %v4523_v62 = vpop.f32.mrf.mxu0 }
 0x3db   : > { %v1442_v25 = vsel %vm726_vm1, %v4523_v62, -inf }
 0x3dc   : > { %v4525_v3 = vpop.f32.mrf.mxu2 }
 0x3dd   : > { %v1998_v29 = vsel %vm726_vm1, %v4525_v3, -inf }
 0x3de   : > { %1999 = vmax.xlane.f32.xlu1 %v1998_v29 }
 0x3e2   : > { %v4529_v15 = vpop.f32.mrf.mxu0 }
 0x3e4   : > { %v4531_v5 = vpop.f32.mrf.mxu2 }
 0x3e5   : > { %v2001_v13 = vsel %vm726_vm1, %v4531_v5, -inf }
 0x3e6   : > { %2002 = vmax.xlane.f32.xlu1 %v2001_v13 }
 0x3ea   : > { %v4535_v35 = vpop.f32.mrf.mxu0 }
 0x3ee   : > { %1211 = vmax.xlane.f32.xlu1 %v1210_v24 }
 0x3f2   : > { %v4539_v8 = vpop.f32.mrf.mxu0 }
 0x3f3   : > { %v1680_v39 = vsel %vm726_vm1, %v4539_v8, -inf }
 0x3fa   : > { %v4541_v53 = vpop.f32.mrf.mxu0 }
 0x3fd   : > { %1443 = vmax.xlane.f32.xlu0 %v1442_v25 }
 0x3fe   : > { %v786_v31 = vpop.f32.mrf.mxu3 }
 0x3ff   : > { %v791_v50 = vmul.f32 %v3399_v32, %v786_v31 }
 0x401   : > { %v793_v12 = vpack.c.bf16 %v791_v50, %v791_v50 }
 0x402   : > { %v4545_v38 = vpop.f32.mrf.mxu0 }
 0x403   : > { %796 = vst.msk [vmem:[#allocation2] sm:$0xf] %vm795_vm2, %v793_v12  ;;  %v1915_v19 = vsel %vm726_vm1, %v4545_v38, -inf }
 0x405   : > { %1681 = vmax.xlane.f32.xlu0 %v1680_v39 }
 0x406   : > { %v1765_v40 = vpop.xlane.xlu2 %1764  ;;  %v788_v30 = vpop.f32.mrf.mxu3 }
 0x407   : > { %v1769_v41 = vsub.f32 %v4471_v52, %v1765_v40 }
 0x409   : > { %v1771_v22 = vmul.f32 1.442695, %v1769_v41 }
 0x40a   : > { %v4551_v58 = vpop.f32.mrf.mxu0 }
 0x40b   : > { %v2147_v31 = vsel %vm726_vm1, %v4551_v58, -inf }
 0x40d   : > { %1916 = vmax.xlane.f32.xlu0 %v1915_v19 }
 0x40e   : > { %v1768_v44 = vpop.xlane.xlu1 %1767  ;;  %v989_v59 = vpop.xlane.xlu2 %988 }
 0x40f   : > { %v1770_v2 = vsub.f32 %v4476_v56, %v1768_v44  ;;  %3400 = vrcp.f32 %v989_v59  ;;  %v4556_v14 = vpop.f32.mrf.mxu3 }
 0x410   : > { %v828_v54 = vsel %vm726_vm1, %v4556_v14, -inf  ;;  %3402 = vpow2.f32 %v1771_v22  ;;  %v1540_v22 = vsel %vm726_vm1, %v4514_v36, 0.0 }
 0x411   : > { %v1773_v60 = vmul.f32 1.442695, %v1770_v2  ;;  %829 = vmax.xlane.f32.xlu1 %v828_v54 }
 0x412   : > { %v4560_v52 = vpop.f32.mrf.mxu0 }
 0x413   : > { %3404 = vpow2.f32 %v1773_v60  ;;  %v2150_v42 = vsel %vm726_vm1, %v4560_v52, -inf }
 0x415   : > { %v3401_v47 = vpop.eup %3400  ;;  %2151 = vmax.xlane.f32.xlu0 %v2150_v42 }
 0x416   : > { %v764_v1 = vpop.xlane.xlu2 %763  ;;  %v1014_v56 = vmul.f32 %v3401_v47, %v4506_v16  ;;  %v4565_v9 = vpop.eup %3402 }
 0x417   : > { %3406 = vrcp.f32 %v764_v1  ;;  %v4577_v16 = vpop.f32.mrf.mxu2  ;;  %v4597_v12 = vpop.f32.mrf.mxu3  ;;  %v1677_v1 = vsel %vm726_vm1, %v4535_v35, -inf }
 0x418   : > { %v1016_v43 = vpack.c.bf16 %v1014_v56, %v1014_v56  ;;  %v2233_v13 = vsel %vm726_vm1, %v4577_v16, -inf  ;;  %v831_v19 = vsel %vm726_vm1, %v4597_v12, -inf }
 0x419   : > { %v4567_v11 = vpop.eup %3404 }
 0x41a   : > { %v1783_v0 = vpack.c.bf16 %v4567_v11, %v4565_v9  ;;  %1021 = vrot.lane.b32.xlu2 %v1016_v43, %s3788_s16  ;;  %v4608_v59 = vpop.f32.mrf.mxu0  ;;  %v1778_v2 = vsel %vm726_vm1, %v4567_v11, 0.0  ;;  %v1912_v43 = vsel %vm726_vm1, %v4541_v53, -inf }
 0x41b   : > { %v2358_v60 = vsel %vm726_vm1, %v4608_v59, -inf }
 0x41d   : > { %v3407_v46 = vpop.eup %3406 }
 0x41e   : > { %v792_v6 = vmul.f32 %v3407_v46, %v788_v30  ;;  %v4624_v56 = vpop.xlane.xlu2 %1071 }
 0x41f   : > { %v4583_v34 = vpop.f32.mrf.mxu2 }
 0x420   : > { %v794_v61 = vpack.c.bf16 %v792_v6, %v792_v6  ;;  %v2236_v25 = vsel %vm726_vm1, %v4583_v34, -inf }
 0x422   : > { %797 = vst.msk [vmem:[#allocation2 + $0x4] sm:$0xf] %vm795_vm2, %v794_v61 }
 0x427   : > { %v4588_v24 = vpop.f32.mrf.mxu2 }
 0x428   : > { %v2444_v32 = vsel %vm726_vm1, %v4588_v24, -inf }
 0x429   : > { %2254 = vrot.lane.b32.xlu0 %v4060_v26, %s3785_s29 }
 0x42a   : > { %2019 = vrot.lane.b32.xlu1 %v4060_v26, %s3779_s10 }
 0x42f   : > { %v4599_v39 = vpop.f32.mrf.mxu2 }
 0x430   : > { %v2447_v44 = vsel %vm726_vm1, %v4599_v39, -inf }
 0x432   : > { %v4579_v7 = vpop.xlane.xlu0 %1074 }
 0x443   : > { %1208 = vmax.xlane.f32.xlu2 %v1207_v23  ;;  %v1308_v23 = vsel %vm726_vm1, %v4504_v33, 0.0 }
 0x445   : > { %v1020_v29 = vpop.permute.xlu0 %1019 }
 0x446   : > { %1026 = vst.msk [vmem:[#allocation2] sm:$0xf] %vm1025_vm3, %v1020_v29 }
 0x44b   : > { %2234 = vmax.xlane.f32.xlu2 %v2233_v13  ;;  %v1775_v13 = vsel %vm726_vm1, %v4565_v9, 0.0 }
 0x451   : > { %v2000_v10 = vpop.xlane.xlu1 %1999 }
 0x452   : > { %v2004_v50 = vsub.f32 %v4525_v3, %v2000_v10 }
 0x453   : > { %2237 = vmax.xlane.f32.xlu2 %v2236_v25  ;;  %2445 = vmax.xlane.f32.xlu0 %v2444_v32  ;;  %v4641_v25 = vpop.f32.mrf.mxu0 }
 0x454   : > { %2148 = vmax.xlane.f32.xlu1 %v2147_v31  ;;  %v2006_v40 = vmul.f32 1.442695, %v2004_v50 }
 0x456   : > { %3408 = vpow2.f32 %v2006_v40 }
 0x459   : > { %v2003_v30 = vpop.xlane.xlu1 %2002 }
 0x45a   : > { %v2005_v41 = vsub.f32 %v4531_v5, %v2003_v30  ;;  %v1445_v5 = vsel %vm726_vm1, %v4529_v15, -inf }
 0x45b   : > { %832 = vmax.xlane.f32.xlu2 %v831_v19  ;;  %1541 = vadd.xlane.f32.xlu0 %v1540_v22 }
 0x45c   : > { %v2008_v3 = vmul.f32 1.442695, %v2005_v41  ;;  %2448 = vmax.xlane.f32.xlu1 %v2447_v44  ;;  %v4614_v54 = vpop.eup %3408 }
 0x45e   : > { %3410 = vpow2.f32 %v2008_v3 }
 0x461   : > { %v1212_v10 = vpop.xlane.xlu1 %1211 }
 0x462   : > { %v1214_v32 = vsub.f32 %v4518_v27, %v1212_v10 }
 0x463   : > { %1446 = vmax.xlane.f32.xlu2 %v1445_v5  ;;  %1779 = vadd.xlane.f32.xlu0 %v1778_v2 }
 0x464   : > { %v4618_v42 = vpop.eup %3410  ;;  %2359 = vmax.xlane.f32.xlu1 %v2358_v60  ;;  %v1217_v31 = vmul.f32 1.442695, %v1214_v32 }
 0x465   : > { %v2018_v47 = vpack.c.bf16 %v4618_v42, %v4614_v54  ;;  %v2013_v30 = vsel %vm726_vm1, %v4618_v42, 0.0 }
 0x466   : > { %3412 = vpow2.f32 %v1217_v31 }
 0x46b   : > { %1678 = vmax.xlane.f32.xlu2 %v1677_v1 }
 0x46c   : > { %v4656_v2 = vpop.eup %3412 }
 0x470   : > { %v1444_v6 = vpop.xlane.xlu0 %1443 }
 0x473   : > { %1913 = vmax.xlane.f32.xlu2 %v1912_v43 }
 0x474   : > { %v1022_v46 = vpop.permute.xlu2 %1021 }
 0x475   : > { %1027 = vst.msk [vmem:[#allocation2 + $0x4] sm:$0xf] %vm1025_vm3, %v1022_v46 }
 0x478   : > { %v4633_v61 = vpop.xlane.xlu0 %1681 }
 0x47d   : > { %2379 = vrot.lane.b32.xlu1 %v4052_v21, %s3788_s16 }
 0x480   : > { %v4637_v29 = vpop.xlane.xlu0 %1916 }
 0x484   : > { %v830_v41 = vpop.xlane.xlu1 %829 }
 0x485   : > { %v834_v32 = vsub.f32 %v4556_v14, %v830_v41  ;;  %v1448_v14 = vsub.f32 %v4523_v62, %v1444_v6  ;;  %v1919_v62 = vsub.f32 %v4545_v38, %v4637_v29 }
 0x488   : > { %v4646_v50 = vpop.xlane.xlu0 %2151 }
 0x489   : > { %v2154_v49 = vsub.f32 %v4560_v52, %v4646_v50 }
 0x48b   : > { %2168 = vrot.lane.b32.xlu2 %v4052_v21, %s3785_s29  ;;  %v2361_v21 = vsel %vm726_vm1, %v4641_v25, -inf }
 0x49b   : > { %v4651_v44 = vpop.permute.xlu0 %2254 }
 0x49c   : > { %v4653_v3 = vpop.permute.xlu1 %2019 }
 0x4a7   : > { %1309 = vadd.xlane.f32.xlu1 %v1308_v23 }
 0x4af   : > { %1776 = vadd.xlane.f32.xlu1 %v1775_v13 }
 0x4b4   : > { %2362 = vmax.xlane.f32.xlu2 %v2361_v21 }
 0x4b6   : > { %v1209_v40 = vpop.xlane.xlu2 %1208 }
 0x4b7   : > { %v1213_v19 = vsub.f32 %v4512_v20, %v1209_v40  ;;  %2014 = vadd.xlane.f32.xlu1 %v2013_v30 }
 0x4b9   : > { %v1215_v22 = vmul.f32 1.442695, %v1213_v19 }
 0x4bb   : > { %3414 = vpow2.f32 %v1215_v22 }
 0x4be   : > { %v2235_v27 = vpop.xlane.xlu2 %2234 }
 0x4bf   : > { %v2239_v5 = vsub.f32 %v4577_v16, %v2235_v27 }
 0x4c1   : > { %v3415_v60 = vpop.eup %3414  ;;  %v2241_v1 = vmul.f32 1.442695, %v2239_v5 }
 0x4c2   : > { %v1227_v43 = vpack.c.bf16 %v4656_v2, %v3415_v60 }
 0x4c3   : > { %3416 = vpow2.f32 %v2241_v1 }
 0x4c4   : > { %2869 = vmatmul.msk.bf16.vlgmr.msra.gmra.mxu1 %vm726_vm1, %v1227_v43 }
 0x4c5   : > { %1711 = vmatpush.bf16.msra.mxu1 %v4491_v17  ;;  %v836_v17 = vmul.f32 1.442695, %v834_v32 }
 0x4c6   : > { %v4661_v20 = vpop.xlane.xlu2 %2237  ;;  %v2446_v46 = vpop.xlane.xlu0 %2445 }
 0x4c7   : > { %v2450_v23 = vsub.f32 %v4588_v24, %v2446_v46  ;;  %v4664_v13 = vpop.xlane.xlu1 %2148 }
 0x4c9   : > { %v4666_v10 = vpop.eup %3416  ;;  %v2452_v16 = vmul.f32 1.442695, %v2450_v23 }
 0x4ca   : > { %v2245_v21 = vsel %vm726_vm1, %v4666_v10, 0.0 }
 0x4cb   : > { %2246 = vadd.xlane.f32.xlu0 %v2245_v21  ;;  %3418 = vpow2.f32 %v2452_v16  ;;  %v1219_v16 = vsel %vm726_vm1, %v3415_v60, 0.0 }
 0x4cc   : > { %2465 = vrot.lane.b32.xlu2 %v4060_v26, %s3788_s16  ;;  %3420 = vpow2.f32 %v836_v17  ;;  %v1450_v26 = vmul.f32 1.442695, %v1448_v14 }
 0x4ce   : > { %v833_v31 = vpop.xlane.xlu2 %832 }
 0x4cf   : > { %v835_v40 = vsub.f32 %v4597_v12, %v833_v31  ;;  %v2449_v24 = vpop.xlane.xlu1 %2448 }
 0x4d0   : > { %v2451_v30 = vsub.f32 %v4599_v39, %v2449_v24  ;;  %v1684_v24 = vsub.f32 %v4539_v8, %v4633_v61 }
 0x4d1   : > { %v838_v19 = vmul.f32 1.442695, %v835_v40  ;;  %v4675_v22 = vpop.eup %3418 }
 0x4d2   : > { %v2454_v41 = vmul.f32 1.442695, %v2451_v30  ;;  %v2456_v27 = vsel %vm726_vm1, %v4675_v22, 0.0  ;;  %v3421_v1 = vpop.eup %3420  ;;  %v1687_v14 = vmul.f32 1.442695, %v1684_v24 }
 0x4d3   : > { %3422 = vpow2.f32 %v838_v19  ;;  %2457 = vadd.xlane.f32.xlu1 %v2456_v27  ;;  %v840_v61 = vsel %vm726_vm1, %v3421_v1, 0.0 }
 0x4d4   : > { %3424 = vpow2.f32 %v2454_v41 }
 0x4d5   : > { %3426 = vpow2.f32 %v1450_v26 }
 0x4d6   : > { %v1447_v5 = vpop.xlane.xlu2 %1446 }
 0x4d7   : > { %v1449_v12 = vsub.f32 %v4529_v15, %v1447_v5  ;;  %v1922_v15 = vmul.f32 1.442695, %v1919_v62  ;;  %v2360_v17 = vpop.xlane.xlu1 %2359 }
 0x4d8   : > { %v2364_v40 = vsub.f32 %v4608_v59, %v2360_v17 }
 0x4d9   : > { %v3423_v43 = vpop.eup %3422  ;;  %v1452_v39 = vmul.f32 1.442695, %v1449_v12 }
 0x4da   : > { %v4681_v46 = vpop.eup %3424  ;;  %v848_v6 = vpack.c.bf16 %v3423_v43, %v3421_v1  ;;  %v843_v30 = vsel %vm726_vm1, %v3423_v43, 0.0 }
 0x4db   : > { %v2464_v23 = vpack.c.bf16 %v4681_v46, %v4675_v22  ;;  %3428 = vpow2.f32 %v1452_v39  ;;  %v2459_v32 = vsel %vm726_vm1, %v4681_v46, 0.0  ;;  %1220 = vadd.xlane.f32.xlu1 %v1219_v16  ;;  %v4692_v38 = vpop.eup %3426  ;;  %v2157_v16 = vmul.f32 1.442695, %v2154_v49 }
 0x4dc   : > { %2863 = vmatmul.msk.bf16.vlgmr.msrb.gmra.mxu3 %vm726_vm1, %v848_v6  ;;  %2460 = vadd.xlane.f32.xlu0 %v2459_v32  ;;  %3430 = vpow2.f32 %v1922_v15  ;;  %v2153_v6 = vsub.f32 %v4551_v58, %v4664_v13 }
 0x4dd   : > { %1327 = vmatpush.bf16.msrb.mxu3 %v4437_v55  ;;  %v1222_v55 = vsel %vm726_vm1, %v4656_v2, 0.0 }
 0x4de   : > { %v1679_v21 = vpop.xlane.xlu2 %1678 }
 0x4df   : > { %v1683_v31 = vsub.f32 %v4535_v35, %v1679_v21  ;;  %v2366_v35 = vmul.f32 1.442695, %v2364_v40  ;;  %v1454_v21 = vsel %vm726_vm1, %v4692_v38, 0.0 }
 0x4e1   : > { %v3429_v29 = vpop.eup %3428  ;;  %v1685_v19 = vmul.f32 1.442695, %v1683_v31 }
 0x4e2   : > { %v1462_v60 = vpack.c.bf16 %v3429_v29, %v4692_v38  ;;  %v3431_v41 = vpop.eup %3430 }
 0x4e3   : > { %844 = vadd.xlane.f32.xlu1 %v843_v30  ;;  %3432 = vpow2.f32 %v1685_v19  ;;  %v1927_v8 = vsel %vm726_vm1, %v3431_v41, 0.0 }
 0x4e4   : > { %2873 = vmatmul.msk.bf16.vlgmr.msrb.gmra.mxu1 %vm726_vm1, %v1462_v60  ;;  %1223 = vadd.xlane.f32.xlu0 %v1222_v55  ;;  %3434 = vpow2.f32 %v2366_v35 }
 0x4e5   : > { %1946 = vmatpush.bf16.msrb.mxu1 %v4463_v63  ;;  %3436 = vpow2.f32 %v1687_v14 }
 0x4e6   : > { %v1914_v59 = vpop.xlane.xlu2 %1913 }
 0x4e7   : > { %v1918_v26 = vsub.f32 %v4541_v53, %v1914_v59  ;;  %v1543_v53 = vsel %vm726_vm1, %v4516_v4, 0.0 }
 0x4e9   : > { %v3433_v63 = vpop.eup %3432  ;;  %v1920_v48 = vmul.f32 1.442695, %v1918_v26 }
 0x4ea   : > { %v4711_v2 = vpop.eup %3434  ;;  %v1689_v1 = vsel %vm726_vm1, %v3433_v63, 0.0 }
 0x4eb   : > { %1928 = vadd.xlane.f32.xlu1 %v1927_v8  ;;  %v3437_v27 = vpop.eup %3436  ;;  %v2370_v12 = vsel %vm726_vm1, %v4711_v2, 0.0  ;;  %3438 = vpow2.f32 %v1920_v48 }
 0x4ec   : > { %2867 = vmatmul.msk.bf16.vlgmr.msra.gmra.mxu3 %vm726_vm1, %v1078_v37  ;;  %841 = vadd.xlane.f32.xlu0 %v840_v61  ;;  %v1697_v5 = vpack.c.bf16 %v3437_v27, %v3433_v63  ;;  %v2240_v37 = vsub.f32 %v4583_v34, %v4661_v20  ;;  %v1692_v20 = vsel %vm726_vm1, %v3437_v27, 0.0 }
 0x4ed   : > { %1562 = vmatpush.bf16.msra.mxu3 %v4487_v57  ;;  %v1457_v57 = vsel %vm726_vm1, %v3429_v29, 0.0 }
 0x4ee   : > { %v2169_v43 = vpop.permute.xlu2 %2168  ;;  %v2243_v62 = vmul.f32 1.442695, %v2240_v37 }
 0x4ef   : > { %v2380_v33 = vpop.permute.xlu1 %2379 }
 0x4f0   : > { %3440 = vpow2.f32 %v2243_v62 }
 0x4f1   : > { %v3439_v39 = vpop.eup %3438 }
 0x4f2   : > { %v1932_v34 = vpack.c.bf16 %v3431_v41, %v3439_v39  ;;  %v1924_v52 = vsel %vm726_vm1, %v3439_v39, 0.0 }
 0x4f3   : > { %2371 = vadd.xlane.f32.xlu1 %v2370_v12 }
 0x4f4   : > { %2877 = vmatmul.msk.bf16.vlgmr.msra.gmra.mxu1 %vm726_vm1, %v1697_v5  ;;  %1458 = vadd.xlane.f32.xlu0 %v1457_v57 }
 0x4f5   : > { %2181 = vmatpush.bf16.msra.mxu1 %v2169_v43  ;;  %1306 = vadd.xlane.f32.xlu2 %v1305_v51 }
 0x4f6   : > { %v3441_v32 = vpop.eup %3440 }
 0x4f7   : > { %v2248_v58 = vsel %vm726_vm1, %v3441_v32, 0.0  ;;  %v2253_v31 = vpack.c.bf16 %v3441_v32, %v4666_v10 }
 0x4fc   : > { %2871 = vmatmul.msk.bf16.vlgmr.msrb.gmra.mxu3 %vm726_vm1, %v1313_v45  ;;  %1690 = vadd.xlane.f32.xlu0 %v1689_v1  ;;  %v2155_v45 = vmul.f32 1.442695, %v2153_v6 }
 0x4fd   : > { %1797 = vmatpush.bf16.msrb.mxu3 %v4456_v28  ;;  %1544 = vadd.xlane.f32.xlu2 %v1543_v53  ;;  %v2010_v28 = vsel %vm726_vm1, %v4614_v54, 0.0 }
 0x4fe   : > { %3442 = vpow2.f32 %v2155_v45 }
 0x4ff   : > { %3444 = vpow2.f32 %v2157_v16 }
 0x504   : > { %2881 = vmatmul.msk.bf16.vlgmr.msrb.gmra.mxu1 %vm726_vm1, %v1932_v34  ;;  %1693 = vadd.xlane.f32.xlu0 %v1692_v20  ;;  %v3443_v50 = vpop.eup %3442 }
 0x505   : > { %2392 = vmatpush.bf16.msrb.mxu1 %v2380_v33  ;;  %2011 = vadd.xlane.f32.xlu2 %v2010_v28  ;;  %v3445_v13 = vpop.eup %3444  ;;  %v2159_v36 = vsel %vm726_vm1, %v3443_v50, 0.0 }
 0x506   : > { %v2167_v15 = vpack.c.bf16 %v3445_v13, %v3443_v50  ;;  %v2162_v4 = vsel %vm726_vm1, %v3445_v13, 0.0 }
 0x50c   : > { %2875 = vmatmul.msk.bf16.vlgmr.msra.gmra.mxu3 %vm726_vm1, %v1548_v18  ;;  %1925 = vadd.xlane.f32.xlu0 %v1924_v52 }
 0x50d   : > { %2032 = vmatpush.bf16.msra.mxu3 %v4653_v3  ;;  %2249 = vadd.xlane.f32.xlu2 %v2248_v58 }
 0x514   : > { %2885 = vmatmul.msk.bf16.vlgmr.msra.gmra.mxu1 %vm726_vm1, %v2167_v15  ;;  %2160 = vadd.xlane.f32.xlu0 %v2159_v36 }
 0x515   : > { %1455 = vadd.xlane.f32.xlu2 %v1454_v21 }
 0x51a   : > { %v4756_v29 = vpop.xlane.xlu1 %1309 }
 0x51c   : > { %2879 = vmatmul.msk.bf16.vlgmr.msrb.gmra.mxu3 %vm726_vm1, %v1783_v0 }
 0x51d   : > { %2267 = vmatpush.bf16.msrb.mxu3 %v4651_v44  ;;  %2163 = vadd.xlane.f32.xlu2 %v2162_v4 }
 0x522   : > { %v4764_v38 = vpop.xlane.xlu1 %1776 }
 0x527   : > { %v2363_v18 = vpop.xlane.xlu2 %2362 }
 0x528   : > { %v2365_v3 = vsub.f32 %v4641_v25, %v2363_v18  ;;  %v4767_v25 = vpop.xlane.xlu0 %1541 }
 0x52a   : > { %v2368_v17 = vmul.f32 1.442695, %v2365_v3  ;;  %v4771_v54 = vpop.xlane.xlu1 %2014 }
 0x52c   : > { %3446 = vpow2.f32 %v2368_v17  ;;  %2883 = vmatmul.msk.bf16.vlgmr.msra.gmra.mxu3 %vm726_vm1, %v2018_v47 }
 0x52f   : > { %v2466_v9 = vpop.permute.xlu2 %2465 }
 0x530   : > { %2478 = vmatpush.bf16.msra.mxu3 %v2466_v9  ;;  %v4773_v42 = vpop.xlane.xlu0 %1779 }
 0x532   : > { %v3447_v11 = vpop.eup %3446 }
 0x533   : > { %v2378_v0 = vpack.c.bf16 %v3447_v11, %v4711_v2  ;;  %v2373_v44 = vsel %vm726_vm1, %v3447_v11, 0.0 }
 0x534   : > { %2374 = vadd.xlane.f32.xlu0 %v2373_v44 }
 0x535   : > { %2889 = vmatmul.msk.bf16.vlgmr.msrb.gmra.mxu1 %vm726_vm1, %v2378_v0 }
 0x53c   : > { %2887 = vmatmul.msk.bf16.vlgmr.msrb.gmra.mxu3 %vm726_vm1, %v2253_v31 }
 0x53e   : > { %v4777_v60 = vpop.xlane.xlu0 %2246 }
 0x541   : > { %v1243_v40 = vpop.f32.mrf.mxu1 }
 0x546   : > { %v4775_v47 = vpop.xlane.xlu1 %2457 }
 0x549   : > { %v1245_v35 = vpop.f32.mrf.mxu1 }
 0x54c   : > { %2891 = vmatmul.msk.bf16.vlgmr.msra.gmra.mxu3 %vm726_vm1, %v2464_v23 }
 0x54e   : > { %v1221_v24 = vpop.xlane.xlu1 %1220 }
 0x54f   : > { %3448 = vrcp.f32 %v1221_v24  ;;  %v4783_v30 = vpop.xlane.xlu0 %2460 }
 0x555   : > { %v3449_v10 = vpop.eup %3448 }
 0x556   : > { %v1248_v55 = vmul.f32 %v3449_v10, %v1243_v40  ;;  %v845_v41 = vpop.xlane.xlu1 %844 }
 0x557   : > { %v1224_v19 = vpop.xlane.xlu0 %1223 }
 0x558   : > { %3450 = vrcp.f32 %v1224_v19  ;;  %v1250_v14 = vpack.c.bf16 %v1248_v55, %v1248_v55 }
 0x559   : > { %3452 = vrcp.f32 %v845_v41 }
 0x55a   : > { %1254 = vrot.lane.b32.xlu2 %v1250_v14, %s3785_s29 }
 0x55e   : > { %v3451_v59 = vpop.eup %3450 }
 0x55f   : > { %v867_v8 = vpop.f32.mrf.mxu3  ;;  %v1249_v22 = vmul.f32 %v3451_v59, %v1245_v35  ;;  %v842_v46 = vpop.xlane.xlu0 %841 }
 0x560   : > { %3454 = vrcp.f32 %v842_v46  ;;  %v3453_v63 = vpop.eup %3452 }
 0x561   : > { %v1478_v23 = vpop.f32.mrf.mxu1  ;;  %v1251_v61 = vpack.c.bf16 %v1249_v22, %v1249_v22 }
 0x563   : > { %1256 = vrot.lane.b32.xlu1 %v1251_v61, %s3785_s29 }
 0x566   : > { %v3455_v2 = vpop.eup %3454 }
 0x567   : > { %v869_v27 = vpop.f32.mrf.mxu3  ;;  %v872_v26 = vmul.f32 %v3455_v2, %v867_v8  ;;  %v1459_v43 = vpop.xlane.xlu0 %1458 }
 0x568   : > { %v873_v5 = vmul.f32 %v3453_v63, %v869_v27  ;;  %v1307_v12 = vpop.xlane.xlu2 %1306  ;;  %3456 = vrcp.f32 %v1459_v43 }
 0x569   : > { %v1480_v51 = vpop.f32.mrf.mxu1  ;;  %v874_v48 = vpack.c.bf16 %v872_v26, %v872_v26  ;;  %3458 = vrcp.f32 %v4624_v56  ;;  %v1929_v26 = vpop.xlane.xlu1 %1928 }
 0x56a   : > { %v875_v57 = vpack.c.bf16 %v873_v5, %v873_v5 }
 0x56b   : > { %876 = vst.msk [vmem:[#allocation2 + $0x8] sm:$0xf] %vm795_vm2, %v874_v48 }
 0x56c   : > { %877 = vst.msk [vmem:[#allocation2 + $0xc] sm:$0xf] %vm795_vm2, %v875_v57 }
 0x56e   : > { %v3457_v53 = vpop.eup %3456 }
 0x56f   : > { %v1094_v37 = vpop.f32.mrf.mxu3  ;;  %v1484_v39 = vmul.f32 %v3457_v53, %v1480_v51  ;;  %v1691_v62 = vpop.xlane.xlu0 %1690 }
 0x570   : > { %v1545_v1 = vpop.xlane.xlu2 %1544  ;;  %v3459_v49 = vpop.eup %3458 }
 0x571   : > { %v1713_v6 = vpop.f32.mrf.mxu1  ;;  %v1486_v34 = vpack.c.bf16 %v1484_v39, %v1484_v39  ;;  %v1099_v33 = vmul.f32 %v3459_v49, %v1094_v37 }
 0x573   : > { %1491 = vrot.lane.b32.xlu2 %v1486_v34, %s3779_s10  ;;  %v1101_v32 = vpack.c.bf16 %v1099_v33, %v1099_v33  ;;  %v2372_v34 = vpop.xlane.xlu1 %2371 }
 0x577   : > { %v1096_v28 = vpop.f32.mrf.mxu3  ;;  %v1694_v20 = vpop.xlane.xlu0 %1693 }
 0x578   : > { %v4791_v45 = vpop.xlane.xlu2 %2011  ;;  %3460 = vrcp.f32 %v1694_v20 }
 0x579   : > { %v1715_v16 = vpop.f32.mrf.mxu1 }
 0x57b   : > { %1105 = vrot.lane.b32.xlu2 %v1101_v32, %s3788_s16 }
 0x57e   : > { %v3461_v56 = vpop.eup %3460 }
 0x57f   : > { %v1329_v58 = vpop.f32.mrf.mxu3  ;;  %v1719_v50 = vmul.f32 %v3461_v56, %v1715_v16  ;;  %v1926_v13 = vpop.xlane.xlu0 %1925 }
 0x580   : > { %v4794_v52 = vpop.xlane.xlu2 %2249  ;;  %3462 = vrcp.f32 %v1926_v13 }
 0x581   : > { %v1948_v15 = vpop.f32.mrf.mxu1  ;;  %v1721_v21 = vpack.c.bf16 %v1719_v50, %v1719_v50  ;;  %3464 = vrcp.f32 %v1307_v12 }
 0x583   : > { %1726 = vrot.lane.b32.xlu1 %v1721_v21, %s3775_s9 }
 0x586   : > { %v3463_v4 = vpop.eup %3462 }
 0x587   : > { %v4797_v36 = vpop.f32.mrf.mxu3  ;;  %v1953_v3 = vmul.f32 %v3463_v4, %v1948_v15  ;;  %v2161_v17 = vpop.xlane.xlu0 %2160 }
 0x588   : > { %v1456_v18 = vpop.xlane.xlu2 %1455  ;;  %v3465_v0 = vpop.eup %3464 }
 0x589   : > { %3466 = vrcp.f32 %v1456_v18  ;;  %v1950_v9 = vpop.f32.mrf.mxu1  ;;  %v1955_v11 = vpack.c.bf16 %v1953_v3, %v1953_v3  ;;  %v1334_v31 = vmul.f32 %v3465_v0, %v1329_v58 }
 0x58a   : > { %3468 = vrcp.f32 %v2161_v17 }
 0x58b   : > { %3470 = vrcp.f32 %v1691_v62  ;;  %1959 = vrot.lane.b32.xlu2 %v1955_v11, %s3787_s19  ;;  %v1336_v59 = vpack.c.bf16 %v1334_v31, %v1334_v31 }
 0x58c   : > { %3472 = vrcp.f32 %v4767_v25 }
 0x58f   : > { %v3467_v44 = vpop.eup %3466  ;;  %v1564_v40 = vpop.f32.mrf.mxu3 }
 0x590   : > { %v1483_v24 = vmul.f32 %v3467_v44, %v1478_v23  ;;  %v2164_v10 = vpop.xlane.xlu2 %2163  ;;  %v3469_v55 = vpop.eup %3468 }
 0x591   : > { %v2183_v19 = vpop.f32.mrf.mxu1  ;;  %v3471_v41 = vpop.eup %3470  ;;  %3474 = vrcp.f32 %v2164_v10 }
 0x592   : > { %v2188_v35 = vmul.f32 %v3469_v55, %v2183_v19  ;;  %v1485_v14 = vpack.c.bf16 %v1483_v24, %v1483_v24  ;;  %v1718_v22 = vmul.f32 %v3471_v41, %v1713_v6  ;;  %v3473_v46 = vpop.eup %3472  ;;  %3476 = vrcp.f32 %v4579_v7 }
 0x593   : > { %1340 = vrot.lane.b32.xlu2 %v1336_v59, %s3785_s29  ;;  %v1569_v61 = vmul.f32 %v3473_v46, %v1564_v40  ;;  %3478 = vrcp.f32 %v1545_v1 }
 0x594   : > { %v2190_v8 = vpack.c.bf16 %v2188_v35, %v2188_v35  ;;  %1489 = vrot.lane.b32.xlu0 %v1485_v14, %s3779_s10  ;;  %v1720_v2 = vpack.c.bf16 %v1718_v22, %v1718_v22  ;;  %3480 = vrcp.f32 %v1929_v26  ;;  %v2973_v26 = vld [vmem:[#allocation9 + $0x38] sm:$0xff] }
 0x595   : > { %v1571_v5 = vpack.c.bf16 %v1569_v61, %v1569_v61  ;;  %3482 = vrcp.f32 %v4756_v29  ;;  %2583 = vmatpush.bf16.msra.mxu0 %v2973_v26 }
 0x596   : > { %2194 = vrot.lane.b32.xlu1 %v2190_v8, %s3780_s23  ;;  %3484 = vrcp.f32 %v4791_v45 }
 0x597   : > { %v1566_v23 = vpop.f32.mrf.mxu3  ;;  %v3475_v25 = vpop.eup %3474  ;;  %3486 = vrcp.f32 %v2372_v34 }
 0x598   : > { %v3477_v43 = vpop.eup %3476 }
 0x599   : > { %v2185_v63 = vpop.f32.mrf.mxu1  ;;  %v1100_v51 = vmul.f32 %v3477_v43, %v1096_v28  ;;  %v3479_v48 = vpop.eup %3478 }
 0x59a   : > { %v2189_v27 = vmul.f32 %v3475_v25, %v2185_v63  ;;  %v1570_v57 = vmul.f32 %v3479_v48, %v1566_v23  ;;  %v3481_v1 = vpop.eup %3480  ;;  %v2970_v48 = vld [vmem:[#allocation9 + $0x20] sm:$0xff] }
 0x59b   : > { %v1102_v37 = vpack.c.bf16 %v1100_v51, %v1100_v51  ;;  %v1954_v39 = vmul.f32 %v3481_v1, %v1950_v9  ;;  %v3483_v49 = vpop.eup %3482  ;;  %v2967_v1 = vld [vmem:[#allocation9 + $0x8] sm:$0xff] }
 0x59c   : > { %v2191_v12 = vpack.c.bf16 %v2189_v27, %v2189_v27  ;;  %1724 = vrot.lane.b32.xlu0 %v1720_v2, %s3775_s9  ;;  %v1572_v53 = vpack.c.bf16 %v1570_v57, %v1570_v57  ;;  %v1335_v33 = vmul.f32 %v3483_v49, %v4797_v36  ;;  %v3485_v28 = vpop.eup %3484 }
 0x59d   : > { %v1956_v6 = vpack.c.bf16 %v1954_v39, %v1954_v39  ;;  %v3487_v29 = vpop.eup %3486 }
 0x59e   : > { %1575 = vrot.lane.b32.xlu1 %v1571_v5, %s3779_s10  ;;  %2196 = vrot.lane.b32.xlu2 %v2191_v12, %s3780_s23  ;;  %v1337_v58 = vpack.c.bf16 %v1335_v33, %v1335_v33  ;;  %v2972_v5 = vld [vmem:[#allocation9 + $0x30] sm:$0xff]  ;;  %v2971_v12 = vld [vmem:[#allocation9 + $0x28] sm:$0xff] }
 0x59f   : > { %v1799_v7 = vpop.f32.mrf.mxu3  ;;  %2584 = vmatpush.bf16.msra.mxu0 %v2972_v5 }
 0x5a3   : > { %2585 = vmatpush.bf16.msra.mxu0 %v2971_v12 }
 0x5a4   : > { %1107 = vrot.lane.b32.xlu0 %v1102_v37, %s3788_s16  ;;  %v2968_v37 = vld [vmem:[#allocation9 + $0x10] sm:$0xff]  ;;  %s3704_s16 = scalar_lea.hbm %s4903_s7, 64 }
 0x5a6   : > { %1577 = vrot.lane.b32.xlu2 %v1572_v53, %s3779_s10  ;;  %s2975_s10 = sshll.u32 %s3855_s8, 5 }
 0x5a7   : > { %v1801_v62 = vpop.f32.mrf.mxu3  ;;  %v2375_v32 = vpop.xlane.xlu0 %2374  ;;  %2586 = vmatpush.bf16.msra.mxu0 %v2970_v48  ;;  %s2619_s20 = scalar_lea.hbm %s4903_s7, %s2975_s10 }
 0x5a8   : > { %3488 = vrcp.f32 %v2375_v32  ;;  %s2622_s30 = sshll.u32 %s2619_s20, 4  ;;  %s2623_s30 = int_to_ptr.hbm [resolvable:$true] %s2622_s30 }
 0x5a9   : > { %3490 = vrcp.f32 %v4764_v38 }
 0x5aa   : > { %3492 = vrcp.f32 %v4773_v42 }
 0x5ab   : > { %3494 = vrcp.f32 %v4771_v54 }
 0x5ac   : > { %1961 = vrot.lane.b32.xlu0 %v1956_v6, %s3787_s19  ;;  %3496 = vrcp.f32 %v4794_v52 }
 0x5ad   : > { %3498 = vrcp.f32 %v4777_v60 }
 0x5ae   : > { %v3489_v21 = vpop.eup %3488  ;;  %3500 = vrcp.f32 %v4775_v47 }
 0x5af   : > { %v2034_v20 = vpop.f32.mrf.mxu3  ;;  %v3491_v3 = vpop.eup %3490  ;;  %3502 = vrcp.f32 %v4783_v30 }
 0x5b0   : > { %v2039_v16 = vmul.f32 %v3485_v28, %v2034_v20  ;;  %v1804_v9 = vmul.f32 %v3491_v3, %v1799_v7  ;;  %v3493_v0 = vpop.eup %3492  ;;  %v2969_v7 = vld [vmem:[#allocation9 + $0x18] sm:$0xff] }
 0x5b1   : > { %v1805_v38 = vmul.f32 %v3493_v0, %v1801_v62  ;;  %v3495_v44 = vpop.eup %3494  ;;  %2587 = vmatpush.bf16.msra.mxu0 %v2969_v7  ;;  %v2966_v62 = vld [vmem:[#allocation9] sm:$0xff] }
 0x5b2   : > { %v2041_v56 = vpack.c.bf16 %v2039_v16, %v2039_v16  ;;  %v2394_v50 = vpop.f32.mrf.mxu1  ;;  %v1806_v42 = vpack.c.bf16 %v1804_v9, %v1804_v9  ;;  %v3497_v24 = vpop.eup %3496 }
 0x5b3   : > { %v2399_v13 = vmul.f32 %v3487_v29, %v2394_v50  ;;  %v1807_v31 = vpack.c.bf16 %v1805_v38, %v1805_v38  ;;  %v3499_v54 = vpop.eup %3498 }
 0x5b4   : > { %2045 = vrot.lane.b32.xlu2 %v2041_v56, %s3787_s19  ;;  %1342 = vrot.lane.b32.xlu0 %v1337_v58, %s3785_s29  ;;  %v1255_v45 = vpop.permute.xlu2 %1254  ;;  %v3501_v14 = vpop.eup %3500  ;;  %s3698_s29 = sshra.s32 %s2623_s30, 4  ;;  %s3699_s29 = int_to_ptr.hbm [resolvable:$true] %s3698_s29 }
 0x5b5   : > { %1261 = vst.msk [vmem:[#allocation2] sm:$0xf] %vm1260_vm4, %v1255_v45  ;;  %v2401_v36 = vpack.c.bf16 %v2399_v13, %v2399_v13  ;;  %v3503_v46 = vpop.eup %3502  ;;  %2588 = vmatpush.bf16.msra.mxu0 %v2968_v37  ;;  %s3700_s17 = scalar_lea.hbm %s3699_s29, 32  ;;  %p3705_p12 = scmp.lt.s32.totalorder %s3699_s29, %s4903_s7 }
 0x5b6   : > { %p3701_p1 = scmp.ne.s32.totalorder %s3699_s29, %s3700_s17  ;;  %p3706_p8 = scmp.lt.s32.totalorder %s3704_s16, %s3700_s17 }
 0x5b7   : > { %v2036_v15 = vpop.f32.mrf.mxu3 }
 0x5b8   : > { %v2040_v40 = vmul.f32 %v3495_v44, %v2036_v15  ;;  %p3702_p3 = pnand %p3701_p1, %p3923_p13  ;;  %p3707_p7 = por %p3706_p8, %p3705_p12 }
 0x5b9   : > { %2589 = vmatpush.bf16.msra.mxu0 %v2967_v1 }
 0x5ba   : > { %v2396_v4 = vpop.f32.mrf.mxu1  ;;  %v2042_v35 = vpack.c.bf16 %v2040_v40, %v2040_v40  ;;  %p3703_p5 = pneg %p3702_p3 }
 0x5bb   : > { %v2400_v18 = vmul.f32 %v3489_v21, %v2396_v4 }
 0x5bc   : > { %2405 = vrot.lane.b32.xlu0 %v2401_v36, %s3777_s15  ;;  %v3375_v36 = vld [vmem:[%s4900_s4] ss:$0 sm:$0xff]  ;;  %p3708_p9 = pnand %p3707_p7, %p3703_p5 }
 0x5bd   : > { %v2402_v17 = vpack.c.bf16 %v2400_v18, %v2400_v18  ;;  %2590 = vmatpush.bf16.msra.mxu0 %v2966_v62 }
 0x5bf   : > { %v2269_v11 = vpop.f32.mrf.mxu3  ;;  %2407 = vrot.lane.b32.xlu1 %v2402_v17, %s3777_s15 }
 0x5c0   : > { %v2274_v19 = vmul.f32 %v3499_v54, %v2269_v11 }
 0x5c2   : > { %v2276_v60 = vpack.c.bf16 %v2274_v19, %v2274_v19 }
 0x5c4   : > { %1810 = vrot.lane.b32.xlu0 %v1806_v42, %s3775_s9 }
 0x5c7   : > { %v2271_v10 = vpop.f32.mrf.mxu3  ;;  %1812 = vrot.lane.b32.xlu1 %v1807_v31, %s3775_s9 }
 0x5c8   : > { %v2275_v55 = vmul.f32 %v3497_v24, %v2271_v10 }
 0x5ca   : > { %v2277_v52 = vpack.c.bf16 %v2275_v55, %v2275_v55 }
 0x5cc   : > { %2282 = vrot.lane.b32.xlu2 %v2277_v52, %s3780_s23  ;;  %2047 = vrot.lane.b32.xlu0 %v2042_v35, %s3787_s19 }
 0x5cd   : > { %v1492_v41 = vpop.permute.xlu2 %1491 }
 0x5cf   : > { %v2480_v59 = vpop.f32.mrf.mxu3  ;;  %2280 = vrot.lane.b32.xlu1 %v2276_v60, %s3780_s23 }
 0x5d0   : > { %v2485_v8 = vmul.f32 %v3501_v14, %v2480_v59 }
 0x5d2   : > { %v2487_v22 = vpack.c.bf16 %v2485_v8, %v2485_v8 }
 0x5d4   : > { %2491 = vrot.lane.b32.xlu0 %v2487_v22, %s3777_s15 }
 0x5d5   : > { %v1257_v47 = vpop.permute.xlu1 %1256  ;;  %v1106_v23 = vpop.permute.xlu2 %1105 }
 0x5d6   : > { %1262 = vst.msk [vmem:[#allocation2 + $0x4] sm:$0xf] %vm1260_vm4, %v1257_v47 }
 0x5d7   : > { %v2482_v61 = vpop.f32.mrf.mxu3  ;;  %1111 = vst.msk [vmem:[#allocation2 + $0x8] sm:$0xf] %vm1025_vm3, %v1106_v23 }
 0x5d8   : > { %v2486_v25 = vmul.f32 %v3503_v46, %v2482_v61  ;;  %1497 = vst.msk [vmem:[#allocation2 + $0x4] sm:$0xf] %vm1495_vm5, %v1492_v41 }
 0x5da   : > { %v2488_v63 = vpack.c.bf16 %v2486_v25, %v2486_v25 }
 0x5dc   : > { %2493 = vrot.lane.b32.xlu1 %v2488_v63, %s3777_s15 }
 0x5e5   : > { %v1960_v2 = vpop.permute.xlu2 %1959 }
 0x5ed   : > { %v1341_v30 = vpop.permute.xlu2 %1340 }
 0x5ee   : > { %1346 = vst.msk [vmem:[#allocation2 + $0x8] sm:$0xf] %vm1260_vm4, %v1341_v30 }
 0x5f5   : > { %v1727_v27 = vpop.permute.xlu1 %1726 }
 0x5f6   : > { %1732 = vst.msk [vmem:[#allocation2 + $0x4] sm:$0xf] %vm1730_vm6, %v1727_v27 }
 0x5f8   : > { %v2197_v6 = vpop.permute.xlu2 %2196 }
 0x600   : > { %v1578_v33 = vpop.permute.xlu2 %1577 }
 0x606   : > { %v1490_v43 = vpop.permute.xlu0 %1489 }
 0x607   : > { %1496 = vst.msk [vmem:[#allocation2] sm:$0xf] %vm1495_vm5, %v1490_v43 }
 0x608   : > { %v2195_v51 = vpop.permute.xlu1 %2194 }
 0x60e   : > { %v1725_v57 = vpop.permute.xlu0 %1724  ;;  %v2046_v32 = vpop.permute.xlu2 %2045 }
 0x60f   : > { %1731 = vst.msk [vmem:[#allocation2] sm:$0xf] %vm1730_vm6, %v1725_v57 }
 0x610   : > { %1966 = vst.msk [vmem:[#allocation2] sm:$0xf] %vm1965_vm7, %v1960_v2  ;;  %v1576_v53 = vpop.permute.xlu1 %1575 }
 0x611   : > { %1581 = vst.msk [vmem:[#allocation2 + $0x8] sm:$0xf] %vm1495_vm5, %v1576_v53 }
 0x612   : > { %2201 = vst.msk [vmem:[#allocation2] sm:$0xf] %vm2200_vm8, %v2195_v51 }
 0x616   : > { %v1108_v39 = vpop.permute.xlu0 %1107 }
 0x617   : > { %1112 = vst.msk [vmem:[#allocation2 + $0xc] sm:$0xf] %vm1025_vm3, %v1108_v39 }
 0x61e   : > { %v1962_v34 = vpop.permute.xlu0 %1961 }
 0x61f   : > { %1967 = vst.msk [vmem:[#allocation2 + $0x4] sm:$0xf] %vm1965_vm7, %v1962_v34 }
 0x620   : > { %2202 = vst.msk [vmem:[#allocation2 + $0x4] sm:$0xf] %vm2200_vm8, %v2197_v6 }
 0x626   : > { %v1343_v49 = vpop.permute.xlu0 %1342  ;;  %v2283_v29 = vpop.permute.xlu2 %2282 }
 0x627   : > { %1347 = vst.msk [vmem:[#allocation2 + $0xc] sm:$0xf] %vm1260_vm4, %v1343_v49 }
 0x628   : > { %1582 = vst.msk [vmem:[#allocation2 + $0xc] sm:$0xf] %vm1495_vm5, %v1578_v33 }
 0x62e   : > { %v2406_v28 = vpop.permute.xlu0 %2405 }
 0x62f   : > { %2412 = vst.msk [vmem:[#allocation2] sm:$0xf] %vm2411_vm9, %v2406_v28 }
 0x631   : > { %v2408_v20 = vpop.permute.xlu1 %2407 }
 0x632   : > { %2413 = vst.msk [vmem:[#allocation2 + $0x4] sm:$0xf] %vm2411_vm9, %v2408_v20 }
 0x636   : > { %v1811_v16 = vpop.permute.xlu0 %1810 }
 0x637   : > { %1816 = vst.msk [vmem:[#allocation2 + $0x8] sm:$0xf] %vm1730_vm6, %v1811_v16 }
 0x638   : > { %2051 = vst.msk [vmem:[#allocation2 + $0x8] sm:$0xf] %vm1965_vm7, %v2046_v32 }
 0x639   : > { %v1813_v58 = vpop.permute.xlu1 %1812  ;;  %v2964_v56 = vld [vmem:[#allocation2] sm:$0xff] }
 0x63a   : > { %1817 = vst.msk [vmem:[#allocation2 + $0xc] sm:$0xf] %vm1730_vm6, %v1813_v58  ;;  %2591 = vmatmul.bf16.vlgmr.msra.gmra.mxu0 %v2964_v56 }
 0x63e   : > { %v2048_v50 = vpop.permute.xlu0 %2047 }
 0x63f   : > { %2052 = vst.msk [vmem:[#allocation2 + $0xc] sm:$0xf] %vm1965_vm7, %v2048_v50 }
 0x640   : > { %2287 = vst.msk [vmem:[#allocation2 + $0xc] sm:$0xf] %vm2200_vm8, %v2283_v29 }
 0x641   : > { %v2281_v45 = vpop.permute.xlu1 %2280 }
 0x642   : > { %2286 = vst.msk [vmem:[#allocation2 + $0x8] sm:$0xf] %vm2200_vm8, %v2281_v45 }
 0x646   : > { %v2492_v13 = vpop.permute.xlu0 %2491 }
 0x647   : > { %2497 = vst.msk [vmem:[#allocation2 + $0x8] sm:$0xf] %vm2411_vm9, %v2492_v13 }
 0x64e   : > { %v2494_v15 = vpop.permute.xlu1 %2493 }
 0x64f   : > { %2498 = vst.msk [vmem:[#allocation2 + $0xc] sm:$0xf] %vm2411_vm9, %v2494_v15 }
 0x656   : > { %v2965_v21 = vld [vmem:[#allocation2 + $0x8] sm:$0xff] }
 0x657   : > { %2596 = vmatmul.bf16.gmra.mxu0 %v2965_v21 }
 0x6b7   : > { %v2592_v4 = vpop.f32.mrf.mxu0 }
 0x6b8   : > { %v2593_v18 = vadd.f32 %v3375_v36, %v2592_v4 }
 0x6ba   : > { %2602 = vst [vmem:[%s380_s22] sm:$0xff] %v2593_v18 }
 0x6bf   : > { %v2594_v3 = vpop.f32.mrf.mxu0 }
 0x6c0   : > { %v2595_v17 = vadd.f32 %v3375_v36, %v2594_v3 }
 0x6c2   : > { %2603 = vst [vmem:[%s380_s22 + $0x8] sm:$0xff] %v2595_v17 }
 0x6d4   : > { %v2597_v9 = vpop.f32.mrf.mxu0 }
 0x6d5   : > { %v2598_v11 = vadd.f32 %v3375_v36, %v2597_v9 }
 0x6d7   : > { %2604 = vst [vmem:[%s380_s22 + $0x10] sm:$0xff] %v2598_v11 }
 0x6dc   : > { %v2599_v0 = vpop.f32.mrf.mxu0 }
 0x6dd   : > { %v2600_v38 = vadd.f32 %v3375_v36, %v2599_v0 }
 0x6df   : > { %2605 = vst [vmem:[%s380_s22 + $0x18] sm:$0xff] %v2600_v38 }
 0x6e0   : > { %3711 = shalt.err (!%p3708_p9)
}
 0x6e1   : > { %s3789_s18 = smov 128   ;;  %s3790_s22 = smov 8  }
 0x6e2   : > { %2998 = dma.vmem_to_hbm [thread:$0]  (%p3923_p13), %s2621_s21, 512, %s2623_s30, %s2607_s1, %s3789_s18, %s3789_s18, %s3790_s22  }
 0x6e3 PF: > { %s2637_s10 = sand.u32 1, %s3750_s24   ;;  %p4916_p10 = scmp.ge.s32.totalorder %s3762_s27, 2 }
 0x6e4   : > { %s2638_s23 = scalar_lea.sflag [#allocation5], %s2637_s10 }
 0x6e5   : > { %p3021_p11 = pnand %p4916_p10, %p3928_p4 }
 0x6e7   : > { %p3022_p0 = pneg %p3021_p11 }
 0x6e9   : > { %3745 = dma.done.wait (%p3022_p0), %s2638_s23, 512  }
 0x6ea   : > { %3747 = vsyncadd (%p3022_p0), %s2638_s23, 4294966784  ;;  %p23_p2 = scmp.ge.s32.totalorder %s3903_s28, 4   ;;  %s4917_s24 = smov %s3754_s25 }
 0x6eb   : > { %s4918_s25 = smov %s3758_s26  ;;  %s4919_s26 = smov %s3915_s12 }
 0x6ec   : > { %s4920_s27 = smov %s3903_s28  ;;  %25 = sbr.rel (!%p23_p2) target bundleno = 10 (0xa), region = 113 }
 0x6f1   :  { %2644 = vsyncpa [#allocation4], 1 }
 0x6f2   :  { %2646 = vsyncpa [#allocation4 + $0x1], 1 }
 0x6f3   :  { %2647 = vsyncpa [#allocation7], 1 }
 0x6f4   :  { %2648 = vsyncpa [#allocation10], 1 }
 0x6f5   :  { %2649 = vsyncpa [#allocation13], 1 }
 0x6f6   :  { %2650 = vsyncpa [#allocation5], 1 }
 0x6f7   :  { %2652 = vsyncpa [#allocation5 + $0x1], 1 }

</bundles_post_ra>
